<compile_context>
chip_gen: v7x
topology: tpu7x:2x2x1
jax: 0.10.0
libtpu: 0.0.40
codegen_flags: <defaults>
</compile_context>

<pallas_src>
import math

import jax
import jax.numpy as jnp
from jax.experimental import pallas as pl
from jax.experimental.pallas import tpu as pltpu

_HALF_LOG_2PI = 0.5 * math.log(2.0 * math.pi)


def _vae_kernel(x_ref, eps_ref,
                w1_ref, b1_ref, w2_ref, b2_ref, w3_ref, b3_ref,
                dw1_ref, db1_ref, dw2_ref, db2_ref, dw3_ref, db3_ref,
                enc_ref, dec_ref, part_ref):
    f32, bf16 = jnp.float32, jnp.bfloat16
    tm, d = x_ref.shape                       # batch-tile rows, input features
    rows, zdim = eps_ref.shape                # rows = tm * L (batch-major: b*L + l)
    lcount = rows // tm

    x = x_ref[...]                                                    # [TM, D] f32

    # ---- encoder: Linear(D,512) -> ReLU -> Linear(512,256) -> ReLU -> Linear(256, 128-pad)
    h1 = jnp.maximum(
        jnp.dot(x.astype(bf16), w1_ref[...], preferred_element_type=f32) + b1_ref[...], 0.0)
    h2 = jnp.maximum(
        jnp.dot(h1.astype(bf16), w2_ref[...], preferred_element_type=f32) + b2_ref[...], 0.0)
    enc = jnp.dot(h2.astype(bf16), w3_ref[...], preferred_element_type=f32) + b3_ref[...]  # [TM,128]

    # lane-mask pack: lanes [0,Z)=mu, [Z,2Z)=softplus->sigma, rest 0 (single VPU pass)
    lane_e = jax.lax.broadcasted_iota(jnp.int32, enc.shape, 1)
    enc_ref[...] = jnp.where(lane_e < zdim, enc,
                             jnp.where(lane_e < 2 * zdim, jax.nn.softplus(enc), 0.0))

    mu = enc[:, :zdim]                                                # [TM, Z]
    sigma = jax.nn.softplus(enc[:, zdim:2 * zdim])                    # [TM, Z]
    # TODO(synk): reference relies on softplus staying strictly > 0; no extra clamp added.

    # ---- replicate each batch row L times (batch-major rows b*L + l) via a tiny
    #      0/1 replication matmul: stays 2-D, exact, and runs on the MXU.
    ridx = jax.lax.broadcasted_iota(jnp.int32, (rows, tm), 0)
    cidx = jax.lax.broadcasted_iota(jnp.int32, (rows, tm), 1)
    rep = jnp.logical_and(ridx >= cidx * lcount,
                          ridx < (cidx + 1) * lcount).astype(f32)     # [TM*L, TM]
    mu_rep = jnp.dot(rep, mu, preferred_element_type=f32)             # [TM*L, Z]
    sg_rep = jnp.dot(rep, sigma, preferred_element_type=f32)          # [TM*L, Z]
    x_rep = jnp.dot(rep, x, preferred_element_type=f32)               # [TM*L, D]

    z = mu_rep + sg_rep * eps_ref[...]                                # [TM*L, Z] f32

    # ---- decoder: Linear(Z,256) -> ReLU -> Linear(256,512) -> ReLU -> Linear(512, 2D)
    g1 = jnp.maximum(
        jnp.dot(z.astype(bf16), dw1_ref[...], preferred_element_type=f32) + db1_ref[...], 0.0)
    g2 = jnp.maximum(
        jnp.dot(g1.astype(bf16), dw2_ref[...], preferred_element_type=f32) + db2_ref[...], 0.0)
    dec = jnp.dot(g2.astype(bf16), dw3_ref[...], preferred_element_type=f32) + db3_ref[...]  # [TM*L, 2D]

    # lane-mask pack [rmu | rsigma], then append z + zero pad into one 128-lane slab
    lane_d = jax.lax.broadcasted_iota(jnp.int32, dec.shape, 1)
    packed = jnp.where(lane_d < d, dec, jax.nn.softplus(dec))         # [TM*L, 2D]
    pad_w = dec_ref.shape[1] - dec.shape[1] - zdim
    dec_ref[...] = jnp.concatenate(
        [packed, z, jnp.zeros((rows, pad_w), f32)], axis=1)           # [TM*L, 128]

    rmu = dec[:, :d]
    rsigma = jax.nn.softplus(dec[:, d:])

    # ---- per-tile partial sums for log_lik / KL (finalized in the wrapper)
    diff = (x_rep - rmu) / rsigma                                     # exact divide (parity)
    logp = -0.5 * diff * diff - jnp.log(rsigma) - _HALF_LOG_2PI       # [TM*L, D]
    logp_sum = jnp.sum(jnp.sum(logp, axis=1, keepdims=True), axis=0, keepdims=True)   # (1,1)

    kl_elem = -jnp.log(sigma) + 0.5 * (sigma * sigma + mu * mu) - 0.5                 # [TM, Z]
    kl_sum = jnp.sum(jnp.sum(kl_elem, axis=1, keepdims=True), axis=0, keepdims=True)  # (1,1)

    lane_p = jax.lax.broadcasted_iota(jnp.int32, part_ref.shape, 1)
    sub_p = jax.lax.broadcasted_iota(jnp.int32, part_ref.shape, 0)
    vals = jnp.where(lane_p == 0, logp_sum, jnp.where(lane_p == 1, kl_sum, 0.0))
    part_ref[...] = jnp.where(sub_p == 0, vals, 0.0)                  # [8, 128]


def vae_anomaly_forward(x, eps_bm, params, *, tm=None):
    """x: [B, D] f32.  eps_bm: [B*L, Z] f32, batch-major rows (row = b*L + l).
    Returns dict(loss, kl, recon_loss, latent_mu, latent_sigma, recon_mu, recon_sigma, z)."""
    (w1, b1, w2, b2, w3, b3, dw1, db1, dw2, db2, dw3, db3) = params
    batch, d = x.shape
    rows, zdim = eps_bm.shape
    l = rows // batch
    if tm is None:
        tm = min(batch, 128)   # production: 128 rows (v5e) / 256 rows (v6e, v7x)
    assert batch % tm == 0, "batch must be a multiple of the batch tile"
    grid = (batch // tm,)

    tile2 = lambda i: (i, 0)           # per-step tiles (x / eps / outputs)
    fixed = lambda i: (0, 0)           # parameters: same block every step -> VMEM-resident
    wspec = lambda arr: pl.BlockSpec(arr.shape, fixed)

    in_specs = [
        pl.BlockSpec((tm, d), tile2),                     # x
        pl.BlockSpec((tm * l, zdim), tile2),              # eps (batch-major)
        wspec(w1), wspec(b1), wspec(w2), wspec(b2), wspec(w3), wspec(b3),
        wspec(dw1), wspec(db1), wspec(dw2), wspec(db2), wspec(dw3), wspec(db3),
    ]
    out_specs = (
        pl.BlockSpec((tm, 128), tile2),                   # enc slab
        pl.BlockSpec((tm * l, 128), tile2),               # dec slab (rmu|rsigma|z)
        pl.BlockSpec((8, 128), tile2),                    # per-tile partial sums
    )
    out_shapes = (
        jax.ShapeDtypeStruct((batch, 128), jnp.float32),
        jax.ShapeDtypeStruct((batch * l, 128), jnp.float32),
        jax.ShapeDtypeStruct((grid[0] * 8, 128), jnp.float32),
    )

    enc_slab, dec_slab, partials = pl.pallas_call(
        _vae_kernel,
        out_shape=out_shapes,
        grid_spec=pltpu.PrefetchScalarGridSpec(
            num_scalar_prefetch=0, grid=grid,
            in_specs=in_specs, out_specs=out_specs),
        compiler_params=pltpu.CompilerParams(
            dimension_semantics=("parallel",)),            # shards across v7x TensorCores
    )(x, eps_bm, w1, b1, w2, b2, w3, b3, dw1, db1, dw2, db2, dw3, db3)

    latent_mu = enc_slab[:, :zdim]
    latent_sigma = enc_slab[:, zdim:2 * zdim]
    # dec slab rows are batch-major (b*L + l); reference layouts are L-major.
    recon_mu = dec_slab[:, :d].reshape(batch, l, d).transpose(1, 0, 2)          # [L, B, D]
    recon_sigma = dec_slab[:, d:2 * d].reshape(batch, l, d).transpose(1, 0, 2)  # [L, B, D]
    z = dec_slab[:, 2 * d:2 * d + zdim].reshape(batch, l, zdim)
    z = z.transpose(1, 0, 2).reshape(l * batch, zdim)                           # matches .view(L*B, Z)

    log_lik = jnp.sum(partials[:, 0]) / (l * batch)   # mean over L, mean over B, sum over D
    kl = jnp.sum(partials[:, 1]) / batch              # mean over B, sum over Z
    loss = kl - log_lik
    # TODO(synk): torch's `latent_dist` (a Normal object) has no array equivalent; mu/sigma returned.
    return dict(loss=loss, kl=kl, recon_loss=log_lik,
                latent_mu=latent_mu, latent_sigma=latent_sigma,
                recon_mu=recon_mu, recon_sigma=recon_sigma, z=z)


def init_linear(key, fan_in, fan_out, pad_in=None, pad_out=None):
    """PyTorch nn.Linear default init, weight stored [in, out] (so x @ W + b), cast to bf16.
    Zero-padding keeps the math identical to the unpadded network (bf16 cast aside)."""
    kw, kb = jax.random.split(key)
    bound = 1.0 / float(fan_in) ** 0.5
    w = jax.random.uniform(kw, (fan_in, fan_out), jnp.float32, -bound, bound)
    b = jax.random.uniform(kb, (1, fan_out), jnp.float32, -bound, bound)
    pad_in = fan_in if pad_in is None else pad_in
    pad_out = fan_out if pad_out is None else pad_out
    w = jnp.pad(w, ((0, pad_in - fan_in), (0, pad_out - fan_out)))
    b = jnp.pad(b, ((0, 0), (0, pad_out - fan_out)))
    return w.astype(jnp.bfloat16), b


if __name__ == "__main__":
    B, D, Z, L = 16, 16, 4, 10          # batch, input_size, latent_size, L samples
    TM = 8                              # batch tile for the demo (production: 128/256)

    key = jax.random.PRNGKey(0)
    keys = jax.random.split(key, 8)

    # encoder (An_paper): D -> 500 -> 200 -> 2Z ; padded D -> 512 -> 256 -> 128-lane out
    w1, b1 = init_linear(keys[0], D, 500, pad_out=512)
    w2, b2 = init_linear(keys[1], 500, 200, pad_in=512, pad_out=256)
    w3, b3 = init_linear(keys[2], 200, 2 * Z, pad_in=256, pad_out=128)
    # decoder (An_paper): Z -> 200 -> 500 -> 2D ; padded Z -> 256 -> 512 -> 2D
    dw1, db1 = init_linear(keys[3], Z, 200, pad_out=256)
    dw2, db2 = init_linear(keys[4], 200, 500, pad_in=256, pad_out=512)
    dw3, db3 = init_linear(keys[5], 500, 2 * D, pad_in=512)
    params = (w1, b1, w2, b2, w3, b3, dw1, db1, dw2, db2, dw3, db3)

    x = jax.random.normal(keys[6], (B, D), jnp.float32)
    # TODO(synk): torch dist.rsample uses torch's RNG; here eps ~ N(0,1) is drawn with JAX RNG,
    # laid out batch-major ([B*L, Z], row = b*L + l) so each batch tile's rows are contiguous.
    eps = jax.random.normal(keys[7], (B * L, Z), jnp.float32)

    out = vae_anomaly_forward(x, eps, params, tm=TM)
    jax.block_until_ready(out)
    print("KERNEL_OK")
</pallas_src>

<mosaic_0001>
module attributes {stable_mosaic.version = 11 : i64} {
  func.func @_vae_kernel(%arg0: i32, %arg1: memref<8x16xf32, #tpu.memory_space<vmem>>, %arg2: memref<80x4xf32, #tpu.memory_space<vmem>>, %arg3: memref<16x512xbf16, #tpu.memory_space<vmem>>, %arg4: memref<1x512xf32, #tpu.memory_space<vmem>>, %arg5: memref<512x256xbf16, #tpu.memory_space<vmem>>, %arg6: memref<1x256xf32, #tpu.memory_space<vmem>>, %arg7: memref<256x128xbf16, #tpu.memory_space<vmem>>, %arg8: memref<1x128xf32, #tpu.memory_space<vmem>>, %arg9: memref<4x256xbf16, #tpu.memory_space<vmem>>, %arg10: memref<1x256xf32, #tpu.memory_space<vmem>>, %arg11: memref<256x512xbf16, #tpu.memory_space<vmem>>, %arg12: memref<1x512xf32, #tpu.memory_space<vmem>>, %arg13: memref<512x32xbf16, #tpu.memory_space<vmem>>, %arg14: memref<1x32xf32, #tpu.memory_space<vmem>>, %arg15: memref<8x128xf32, #tpu.memory_space<vmem>>, %arg16: memref<80x128xf32, #tpu.memory_space<vmem>>, %arg17: memref<8x128xf32, #tpu.memory_space<vmem>>) attributes {dimension_semantics = [#tpu.dimension_semantics<parallel>], iteration_bounds = array<i64: 2>, scalar_prefetch = 0 : i64, scratch_operands = 0 : i64, tpu.core_type = #tpu.core_type<tc>, window_params = [{transform_indices = @transform_0, window_bounds = array<i64: 8, 16>}, {transform_indices = @transform_1, window_bounds = array<i64: 80, 4>}, {pipeline_mode = #tpu.pipeline_mode<synchronous>, transform_indices = @transform_2, window_bounds = array<i64: 16, 512>}, {pipeline_mode = #tpu.pipeline_mode<synchronous>, transform_indices = @transform_3, window_bounds = array<i64: 1, 512>}, {pipeline_mode = #tpu.pipeline_mode<synchronous>, transform_indices = @transform_4, window_bounds = array<i64: 512, 256>}, {pipeline_mode = #tpu.pipeline_mode<synchronous>, transform_indices = @transform_5, window_bounds = array<i64: 1, 256>}, {pipeline_mode = #tpu.pipeline_mode<synchronous>, transform_indices = @transform_6, window_bounds = array<i64: 256, 128>}, {pipeline_mode = #tpu.pipeline_mode<synchronous>, transform_indices = @transform_7, window_bounds = array<i64: 1, 128>}, {pipeline_mode = #tpu.pipeline_mode<synchronous>, transform_indices = @transform_8, window_bounds = array<i64: 4, 256>}, {pipeline_mode = #tpu.pipeline_mode<synchronous>, transform_indices = @transform_9, window_bounds = array<i64: 1, 256>}, {pipeline_mode = #tpu.pipeline_mode<synchronous>, transform_indices = @transform_10, window_bounds = array<i64: 256, 512>}, {pipeline_mode = #tpu.pipeline_mode<synchronous>, transform_indices = @transform_11, window_bounds = array<i64: 1, 512>}, {pipeline_mode = #tpu.pipeline_mode<synchronous>, transform_indices = @transform_12, window_bounds = array<i64: 512, 32>}, {pipeline_mode = #tpu.pipeline_mode<synchronous>, transform_indices = @transform_13, window_bounds = array<i64: 1, 32>}, {transform_indices = @transform_14, window_bounds = array<i64: 8, 128>}, {transform_indices = @transform_15, window_bounds = array<i64: 80, 128>}, {transform_indices = @transform_16, window_bounds = array<i64: 8, 128>}]} {
    %c0 = arith.constant 0 : index
    %c0_0 = arith.constant 0 : index
    %0 = vector.load %arg1[%c0, %c0_0] : memref<8x16xf32, #tpu.memory_space<vmem>>, vector<8x16xf32>
    %1 = arith.truncf %0 : vector<8x16xf32> to vector<8x16xbf16>
    %c0_1 = arith.constant 0 : index
    %c0_2 = arith.constant 0 : index
    %2 = vector.load %arg3[%c0_1, %c0_2] : memref<16x512xbf16, #tpu.memory_space<vmem>>, vector<16x512xbf16>
    %cst = arith.constant dense<0.000000e+00> : vector<8x512xf32>
    %3 = tpu.matmul %1, %2, %cst {dimension_numbers = #tpu.dot_dimension_numbers<[1], [0], [0], [1], [0, 0, 1, 1], [], []>} : vector<8x16xbf16>, vector<16x512xbf16>, vector<8x512xf32> -> vector<8x512xf32>
    %c0_3 = arith.constant 0 : index
    %c0_4 = arith.constant 0 : index
    %4 = vector.load %arg4[%c0_3, %c0_4] : memref<1x512xf32, #tpu.memory_space<vmem>>, vector<1x512xf32>
    %5 = vector.broadcast %4 : vector<1x512xf32> to vector<8x512xf32>
    %6 = arith.addf %3, %5 : vector<8x512xf32>
    %cst_5 = arith.constant 0.000000e+00 : f32
    %7 = vector.broadcast %cst_5 : f32 to vector<8x512xf32>
    %8 = arith.maximumf %6, %7 : vector<8x512xf32>
    %9 = arith.truncf %8 : vector<8x512xf32> to vector<8x512xbf16>
    %c0_6 = arith.constant 0 : index
    %c0_7 = arith.constant 0 : index
    %10 = vector.load %arg5[%c0_6, %c0_7] : memref<512x256xbf16, #tpu.memory_space<vmem>>, vector<512x256xbf16>
    %cst_8 = arith.constant dense<0.000000e+00> : vector<8x256xf32>
    %11 = tpu.matmul %9, %10, %cst_8 {dimension_numbers = #tpu.dot_dimension_numbers<[1], [0], [0], [1], [0, 0, 1, 1], [], []>} : vector<8x512xbf16>, vector<512x256xbf16>, vector<8x256xf32> -> vector<8x256xf32>
    %c0_9 = arith.constant 0 : index
    %c0_10 = arith.constant 0 : index
    %12 = vector.load %arg6[%c0_9, %c0_10] : memref<1x256xf32, #tpu.memory_space<vmem>>, vector<1x256xf32>
    %13 = vector.broadcast %12 : vector<1x256xf32> to vector<8x256xf32>
    %14 = arith.addf %11, %13 : vector<8x256xf32>
    %cst_11 = arith.constant 0.000000e+00 : f32
    %15 = vector.broadcast %cst_11 : f32 to vector<8x256xf32>
    %16 = arith.maximumf %14, %15 : vector<8x256xf32>
    %17 = arith.truncf %16 : vector<8x256xf32> to vector<8x256xbf16>
    %c0_12 = arith.constant 0 : index
    %c0_13 = arith.constant 0 : index
    %18 = vector.load %arg7[%c0_12, %c0_13] : memref<256x128xbf16, #tpu.memory_space<vmem>>, vector<256x128xbf16>
    %cst_14 = arith.constant dense<0.000000e+00> : vector<8x128xf32>
    %19 = tpu.matmul %17, %18, %cst_14 {dimension_numbers = #tpu.dot_dimension_numbers<[1], [0], [0], [1], [0, 0, 1, 1], [], []>} : vector<8x256xbf16>, vector<256x128xbf16>, vector<8x128xf32> -> vector<8x128xf32>
    %c0_15 = arith.constant 0 : index
    %c0_16 = arith.constant 0 : index
    %20 = vector.load %arg8[%c0_15, %c0_16] : memref<1x128xf32, #tpu.memory_space<vmem>>, vector<1x128xf32>
    %21 = vector.broadcast %20 : vector<1x128xf32> to vector<8x128xf32>
    %22 = arith.addf %19, %21 : vector<8x128xf32>
    %23 = tpu.iota {dimensions = array<i32: 1>} : vector<8x128xi32>
    %c4_i32 = arith.constant 4 : i32
    %24 = vector.broadcast %c4_i32 : i32 to vector<8x128xi32>
    %25 = arith.cmpi slt, %23, %24 : vector<8x128xi32>
    %c8_i32 = arith.constant 8 : i32
    %26 = vector.broadcast %c8_i32 : i32 to vector<8x128xi32>
    %27 = arith.cmpi slt, %23, %26 : vector<8x128xi32>
    %cst_17 = arith.constant 0.000000e+00 : f32
    %28 = vector.broadcast %cst_17 : f32 to vector<8x128xf32>
    %29 = arith.maximumf %22, %28 : vector<8x128xf32>
    %30 = vector.broadcast %cst_17 : f32 to vector<8x128xf32>
    %31 = arith.subf %22, %30 : vector<8x128xf32>
    %32 = arith.cmpf one, %31, %31 : vector<8x128xf32>
    %33 = vector.broadcast %cst_17 : f32 to vector<8x128xf32>
    %34 = arith.addf %22, %33 : vector<8x128xf32>
    %35 = math.absf %31 : vector<8x128xf32>
    %cst_18 = arith.constant 0.000000e+00 : f32
    %36 = vector.broadcast %cst_18 : f32 to vector<8x128xf32>
    %37 = arith.subf %36, %35 : vector<8x128xf32>
    %38 = math.exp %37 : vector<8x128xf32>
    %39 = math.log1p %38 : vector<8x128xf32>
    %40 = arith.addf %29, %39 : vector<8x128xf32>
    %41 = arith.select %32, %34, %40 : vector<8x128xi1>, vector<8x128xf32>
    %cst_19 = arith.constant 0.000000e+00 : f32
    %42 = vector.broadcast %cst_19 : f32 to vector<8x128xf32>
    %43 = arith.select %27, %41, %42 : vector<8x128xi1>, vector<8x128xf32>
    %44 = arith.select %25, %22, %43 : vector<8x128xi1>, vector<8x128xf32>
    %c0_20 = arith.constant 0 : index
    %c0_21 = arith.constant 0 : index
    %45 = vector.load %arg15[%c0_20, %c0_21] : memref<8x128xf32, #tpu.memory_space<vmem>>, vector<8x128xf32>
    tpu.vector_store %arg15[%c0_20, %c0_21], %44 {strides = array<i32>} : memref<8x128xf32, #tpu.memory_space<vmem>>, vector<8x128xf32>,
    %46 = vector.extract_strided_slice %22 {offsets = [0, 0], sizes = [8, 4], strides = [1, 1]} : vector<8x128xf32> to vector<8x4xf32>
    %47 = vector.extract_strided_slice %22 {offsets = [0, 4], sizes = [8, 4], strides = [1, 1]} : vector<8x128xf32> to vector<8x4xf32>
    %cst_22 = arith.constant 0.000000e+00 : f32
    %48 = vector.broadcast %cst_22 : f32 to vector<8x4xf32>
    %49 = arith.maximumf %47, %48 : vector<8x4xf32>
    %50 = vector.broadcast %cst_22 : f32 to vector<8x4xf32>
    %51 = arith.subf %47, %50 : vector<8x4xf32>
    %52 = arith.cmpf one, %51, %51 : vector<8x4xf32>
    %53 = vector.broadcast %cst_22 : f32 to vector<8x4xf32>
    %54 = arith.addf %47, %53 : vector<8x4xf32>
    %55 = math.absf %51 : vector<8x4xf32>
    %cst_23 = arith.constant 0.000000e+00 : f32
    %56 = vector.broadcast %cst_23 : f32 to vector<8x4xf32>
    %57 = arith.subf %56, %55 : vector<8x4xf32>
    %58 = math.exp %57 : vector<8x4xf32>
    %59 = math.log1p %58 : vector<8x4xf32>
    %60 = arith.addf %49, %59 : vector<8x4xf32>
    %61 = arith.select %52, %54, %60 : vector<8x4xi1>, vector<8x4xf32>
    %62 = tpu.iota {dimensions = array<i32: 0>} : vector<80x8xi32>
    %63 = tpu.iota {dimensions = array<i32: 1>} : vector<80x8xi32>
    %c10_i32 = arith.constant 10 : i32
    %64 = vector.broadcast %c10_i32 : i32 to vector<80x8xi32>
    %65 = arith.muli %63, %64 : vector<80x8xi32>
    %66 = arith.cmpi sge, %62, %65 : vector<80x8xi32>
    %c1_i32 = arith.constant 1 : i32
    %67 = vector.broadcast %c1_i32 : i32 to vector<80x8xi32>
    %68 = arith.addi %63, %67 : vector<80x8xi32>
    %c10_i32_24 = arith.constant 10 : i32
    %69 = vector.broadcast %c10_i32_24 : i32 to vector<80x8xi32>
    %70 = arith.muli %68, %69 : vector<80x8xi32>
    %71 = arith.cmpi slt, %62, %70 : vector<80x8xi32>
    %72 = arith.andi %66, %71 : vector<80x8xi1>
    %73 = arith.extui %72 : vector<80x8xi1> to vector<80x8xi32>
    %74 = arith.sitofp %73 : vector<80x8xi32> to vector<80x8xf32>
    %cst_25 = arith.constant dense<0.000000e+00> : vector<80x4xf32>
    %75 = tpu.matmul %74, %46, %cst_25 {dimension_numbers = #tpu.dot_dimension_numbers<[1], [0], [0], [1], [0, 0, 1, 1], [], []>} : vector<80x8xf32>, vector<8x4xf32>, vector<80x4xf32> -> vector<80x4xf32>
    %cst_26 = arith.constant dense<0.000000e+00> : vector<80x4xf32>
    %76 = tpu.matmul %74, %61, %cst_26 {dimension_numbers = #tpu.dot_dimension_numbers<[1], [0], [0], [1], [0, 0, 1, 1], [], []>} : vector<80x8xf32>, vector<8x4xf32>, vector<80x4xf32> -> vector<80x4xf32>
    %cst_27 = arith.constant dense<0.000000e+00> : vector<80x16xf32>
    %77 = tpu.matmul %74, %0, %cst_27 {dimension_numbers = #tpu.dot_dimension_numbers<[1], [0], [0], [1], [0, 0, 1, 1], [], []>} : vector<80x8xf32>, vector<8x16xf32>, vector<80x16xf32> -> vector<80x16xf32>
    %c0_28 = arith.constant 0 : index
    %c0_29 = arith.constant 0 : index
    %78 = vector.load %arg2[%c0_28, %c0_29] : memref<80x4xf32, #tpu.memory_space<vmem>>, vector<80x4xf32>
    %79 = arith.mulf %76, %78 : vector<80x4xf32>
    %80 = arith.addf %75, %79 : vector<80x4xf32>
    %81 = arith.truncf %80 : vector<80x4xf32> to vector<80x4xbf16>
    %c0_30 = arith.constant 0 : index
    %c0_31 = arith.constant 0 : index
    %82 = vector.load %arg9[%c0_30, %c0_31] : memref<4x256xbf16, #tpu.memory_space<vmem>>, vector<4x256xbf16>
    %cst_32 = arith.constant dense<0.000000e+00> : vector<80x256xf32>
    %83 = tpu.matmul %81, %82, %cst_32 {dimension_numbers = #tpu.dot_dimension_numbers<[1], [0], [0], [1], [0, 0, 1, 1], [], []>} : vector<80x4xbf16>, vector<4x256xbf16>, vector<80x256xf32> -> vector<80x256xf32>
    %c0_33 = arith.constant 0 : index
    %c0_34 = arith.constant 0 : index
    %84 = vector.load %arg10[%c0_33, %c0_34] : memref<1x256xf32, #tpu.memory_space<vmem>>, vector<1x256xf32>
    %85 = vector.broadcast %84 : vector<1x256xf32> to vector<80x256xf32>
    %86 = arith.addf %83, %85 : vector<80x256xf32>
    %cst_35 = arith.constant 0.000000e+00 : f32
    %87 = vector.broadcast %cst_35 : f32 to vector<80x256xf32>
    %88 = arith.maximumf %86, %87 : vector<80x256xf32>
    %89 = arith.truncf %88 : vector<80x256xf32> to vector<80x256xbf16>
    %c0_36 = arith.constant 0 : index
    %c0_37 = arith.constant 0 : index
    %90 = vector.load %arg11[%c0_36, %c0_37] : memref<256x512xbf16, #tpu.memory_space<vmem>>, vector<256x512xbf16>
    %cst_38 = arith.constant dense<0.000000e+00> : vector<80x512xf32>
    %91 = tpu.matmul %89, %90, %cst_38 {dimension_numbers = #tpu.dot_dimension_numbers<[1], [0], [0], [1], [0, 0, 1, 1], [], []>} : vector<80x256xbf16>, vector<256x512xbf16>, vector<80x512xf32> -> vector<80x512xf32>
    %c0_39 = arith.constant 0 : index
    %c0_40 = arith.constant 0 : index
    %92 = vector.load %arg12[%c0_39, %c0_40] : memref<1x512xf32, #tpu.memory_space<vmem>>, vector<1x512xf32>
    %93 = vector.broadcast %92 : vector<1x512xf32> to vector<80x512xf32>
    %94 = arith.addf %91, %93 : vector<80x512xf32>
    %cst_41 = arith.constant 0.000000e+00 : f32
    %95 = vector.broadcast %cst_41 : f32 to vector<80x512xf32>
    %96 = arith.maximumf %94, %95 : vector<80x512xf32>
    %97 = arith.truncf %96 : vector<80x512xf32> to vector<80x512xbf16>
    %c0_42 = arith.constant 0 : index
    %c0_43 = arith.constant 0 : index
    %98 = vector.load %arg13[%c0_42, %c0_43] : memref<512x32xbf16, #tpu.memory_space<vmem>>, vector<512x32xbf16>
    %cst_44 = arith.constant dense<0.000000e+00> : vector<80x32xf32>
    %99 = tpu.matmul %97, %98, %cst_44 {dimension_numbers = #tpu.dot_dimension_numbers<[1], [0], [0], [1], [0, 0, 1, 1], [], []>} : vector<80x512xbf16>, vector<512x32xbf16>, vector<80x32xf32> -> vector<80x32xf32>
    %c0_45 = arith.constant 0 : index
    %c0_46 = arith.constant 0 : index
    %100 = vector.load %arg14[%c0_45, %c0_46] : memref<1x32xf32, #tpu.memory_space<vmem>>, vector<1x32xf32>
    %101 = vector.broadcast %100 : vector<1x32xf32> to vector<80x32xf32>
    %102 = arith.addf %99, %101 : vector<80x32xf32>
    %103 = tpu.iota {dimensions = array<i32: 1>} : vector<80x32xi32>
    %c16_i32 = arith.constant 16 : i32
    %104 = vector.broadcast %c16_i32 : i32 to vector<80x32xi32>
    %105 = arith.cmpi slt, %103, %104 : vector<80x32xi32>
    %cst_47 = arith.constant 0.000000e+00 : f32
    %106 = vector.broadcast %cst_47 : f32 to vector<80x32xf32>
    %107 = arith.maximumf %102, %106 : vector<80x32xf32>
    %108 = vector.broadcast %cst_47 : f32 to vector<80x32xf32>
    %109 = arith.subf %102, %108 : vector<80x32xf32>
    %110 = arith.cmpf one, %109, %109 : vector<80x32xf32>
    %111 = vector.broadcast %cst_47 : f32 to vector<80x32xf32>
    %112 = arith.addf %102, %111 : vector<80x32xf32>
    %113 = math.absf %109 : vector<80x32xf32>
    %cst_48 = arith.constant 0.000000e+00 : f32
    %114 = vector.broadcast %cst_48 : f32 to vector<80x32xf32>
    %115 = arith.subf %114, %113 : vector<80x32xf32>
    %116 = math.exp %115 : vector<80x32xf32>
    %117 = math.log1p %116 : vector<80x32xf32>
    %118 = arith.addf %107, %117 : vector<80x32xf32>
    %119 = arith.select %110, %112, %118 : vector<80x32xi1>, vector<80x32xf32>
    %120 = arith.select %105, %102, %119 : vector<80x32xi1>, vector<80x32xf32>
    %cst_49 = arith.constant 0.000000e+00 : f32
    %121 = vector.broadcast %cst_49 : f32 to vector<80x92xf32>
    %122 = tpu.concatenate %120, %80, %121 in 1 : vector<80x32xf32>, vector<80x4xf32>, vector<80x92xf32> -> vector<80x128xf32>
    %c0_50 = arith.constant 0 : index
    %c0_51 = arith.constant 0 : index
    %123 = vector.load %arg16[%c0_50, %c0_51] : memref<80x128xf32, #tpu.memory_space<vmem>>, vector<80x128xf32>
    tpu.vector_store %arg16[%c0_50, %c0_51], %122 {strides = array<i32>} : memref<80x128xf32, #tpu.memory_space<vmem>>, vector<80x128xf32>,
    %124 = vector.extract_strided_slice %102 {offsets = [0, 0], sizes = [80, 16], strides = [1, 1]} : vector<80x32xf32> to vector<80x16xf32>
    %125 = vector.extract_strided_slice %102 {offsets = [0, 16], sizes = [80, 16], strides = [1, 1]} : vector<80x32xf32> to vector<80x16xf32>
    %cst_52 = arith.constant 0.000000e+00 : f32
    %126 = vector.broadcast %cst_52 : f32 to vector<80x16xf32>
    %127 = arith.maximumf %125, %126 : vector<80x16xf32>
    %128 = vector.broadcast %cst_52 : f32 to vector<80x16xf32>
    %129 = arith.subf %125, %128 : vector<80x16xf32>
    %130 = arith.cmpf one, %129, %129 : vector<80x16xf32>
    %131 = vector.broadcast %cst_52 : f32 to vector<80x16xf32>
    %132 = arith.addf %125, %131 : vector<80x16xf32>
    %133 = math.absf %129 : vector<80x16xf32>
    %cst_53 = arith.constant 0.000000e+00 : f32
    %134 = vector.broadcast %cst_53 : f32 to vector<80x16xf32>
    %135 = arith.subf %134, %133 : vector<80x16xf32>
    %136 = math.exp %135 : vector<80x16xf32>
    %137 = math.log1p %136 : vector<80x16xf32>
    %138 = arith.addf %127, %137 : vector<80x16xf32>
    %139 = arith.select %130, %132, %138 : vector<80x16xi1>, vector<80x16xf32>
    %140 = arith.subf %77, %124 : vector<80x16xf32>
    %141 = arith.divf %140, %139 : vector<80x16xf32>
    %cst_54 = arith.constant -5.000000e-01 : f32
    %142 = vector.broadcast %cst_54 : f32 to vector<80x16xf32>
    %143 = arith.mulf %142, %141 : vector<80x16xf32>
    %144 = arith.mulf %143, %141 : vector<80x16xf32>
    %145 = math.log %139 : vector<80x16xf32>
    %146 = arith.subf %144, %145 : vector<80x16xf32>
    %cst_55 = arith.constant 0.918938517 : f32
    %147 = vector.broadcast %cst_55 : f32 to vector<80x16xf32>
    %148 = arith.subf %146, %147 : vector<80x16xf32>
    %cst_56 = arith.constant dense<0.000000e+00> : vector<80xf32>
    %149 = vector.multi_reduction <add>, %148, %cst_56 [1] : vector<80x16xf32> to vector<80xf32>
    %150 = vector.shape_cast %149 : vector<80xf32> to vector<80x1xf32>
    %cst_57 = arith.constant dense<0.000000e+00> : vector<1xf32>
    %151 = vector.multi_reduction <add>, %150, %cst_57 [0] : vector<80x1xf32> to vector<1xf32>
    %152 = vector.shape_cast %151 : vector<1xf32> to vector<1x1xf32>
    %153 = math.log %61 : vector<8x4xf32>
    %cst_58 = arith.constant 0.000000e+00 : f32
    %154 = vector.broadcast %cst_58 : f32 to vector<8x4xf32>
    %155 = arith.subf %154, %153 : vector<8x4xf32>
    %156 = arith.mulf %61, %61 : vector<8x4xf32>
    %157 = arith.mulf %46, %46 : vector<8x4xf32>
    %158 = arith.addf %156, %157 : vector<8x4xf32>
    %cst_59 = arith.constant 5.000000e-01 : f32
    %159 = vector.broadcast %cst_59 : f32 to vector<8x4xf32>
    %160 = arith.mulf %159, %158 : vector<8x4xf32>
    %161 = arith.addf %155, %160 : vector<8x4xf32>
    %cst_60 = arith.constant 5.000000e-01 : f32
    %162 = vector.broadcast %cst_60 : f32 to vector<8x4xf32>
    %163 = arith.subf %161, %162 : vector<8x4xf32>
    %cst_61 = arith.constant dense<0.000000e+00> : vector<8xf32>
    %164 = vector.multi_reduction <add>, %163, %cst_61 [1] : vector<8x4xf32> to vector<8xf32>
    %165 = vector.shape_cast %164 : vector<8xf32> to vector<8x1xf32>
    %cst_62 = arith.constant dense<0.000000e+00> : vector<1xf32>
    %166 = vector.multi_reduction <add>, %165, %cst_62 [0] : vector<8x1xf32> to vector<1xf32>
    %167 = vector.shape_cast %166 : vector<1xf32> to vector<1x1xf32>
    %168 = tpu.iota {dimensions = array<i32: 1>} : vector<8x128xi32>
    %169 = tpu.iota {dimensions = array<i32: 0>} : vector<8x128xi32>
    %c0_i32 = arith.constant 0 : i32
    %170 = vector.broadcast %c0_i32 : i32 to vector<8x128xi32>
    %171 = arith.cmpi eq, %168, %170 : vector<8x128xi32>
    %c1_i32_63 = arith.constant 1 : i32
    %172 = vector.broadcast %c1_i32_63 : i32 to vector<8x128xi32>
    %173 = arith.cmpi eq, %168, %172 : vector<8x128xi32>
    %cst_64 = arith.constant 0.000000e+00 : f32
    %174 = vector.shape_cast %167 : vector<1x1xf32> to vector<1x1xf32>
    %175 = vector.broadcast %174 : vector<1x1xf32> to vector<8x128xf32>
    %176 = vector.broadcast %cst_64 : f32 to vector<8x128xf32>
    %177 = arith.select %173, %175, %176 : vector<8x128xi1>, vector<8x128xf32>
    %178 = vector.shape_cast %152 : vector<1x1xf32> to vector<1x1xf32>
    %179 = vector.broadcast %178 : vector<1x1xf32> to vector<8x128xf32>
    %180 = arith.select %171, %179, %177 : vector<8x128xi1>, vector<8x128xf32>
    %c0_i32_65 = arith.constant 0 : i32
    %181 = vector.broadcast %c0_i32_65 : i32 to vector<8x128xi32>
    %182 = arith.cmpi eq, %169, %181 : vector<8x128xi32>
    %cst_66 = arith.constant 0.000000e+00 : f32
    %183 = vector.broadcast %cst_66 : f32 to vector<8x128xf32>
    %184 = arith.select %182, %180, %183 : vector<8x128xi1>, vector<8x128xf32>
    %c0_67 = arith.constant 0 : index
    %c0_68 = arith.constant 0 : index
    %185 = vector.load %arg17[%c0_67, %c0_68] : memref<8x128xf32, #tpu.memory_space<vmem>>, vector<8x128xf32>
    tpu.vector_store %arg17[%c0_67, %c0_68], %184 {strides = array<i32>} : memref<8x128xf32, #tpu.memory_space<vmem>>, vector<8x128xf32>,
    return
  }
  func.func @transform_0(%arg0: i32) -> (i32, i32) {
    %c0_i32 = arith.constant 0 : i32
    %c0_i32_0 = arith.constant 0 : i32
    return %arg0, %c0_i32 : i32, i32
  }
  func.func @transform_1(%arg0: i32) -> (i32, i32) {
    %c0_i32 = arith.constant 0 : i32
    %c0_i32_0 = arith.constant 0 : i32
    return %arg0, %c0_i32 : i32, i32
  }
  func.func @transform_2(%arg0: i32) -> (i32, i32) {
    %c0_i32 = arith.constant 0 : i32
    %c0_i32_0 = arith.constant 0 : i32
    %c0_i32_1 = arith.constant 0 : i32
    return %c0_i32, %c0_i32_0 : i32, i32
  }
  func.func @transform_3(%arg0: i32) -> (i32, i32) {
    %c0_i32 = arith.constant 0 : i32
    %c0_i32_0 = arith.constant 0 : i32
    %c0_i32_1 = arith.constant 0 : i32
    return %c0_i32, %c0_i32_0 : i32, i32
  }
  func.func @transform_4(%arg0: i32) -> (i32, i32) {
    %c0_i32 = arith.constant 0 : i32
    %c0_i32_0 = arith.constant 0 : i32
    %c0_i32_1 = arith.constant 0 : i32
    return %c0_i32, %c0_i32_0 : i32, i32
  }
  func.func @transform_5(%arg0: i32) -> (i32, i32) {
    %c0_i32 = arith.constant 0 : i32
    %c0_i32_0 = arith.constant 0 : i32
    %c0_i32_1 = arith.constant 0 : i32
    return %c0_i32, %c0_i32_0 : i32, i32
  }
  func.func @transform_6(%arg0: i32) -> (i32, i32) {
    %c0_i32 = arith.constant 0 : i32
    %c0_i32_0 = arith.constant 0 : i32
    %c0_i32_1 = arith.constant 0 : i32
    return %c0_i32, %c0_i32_0 : i32, i32
  }
  func.func @transform_7(%arg0: i32) -> (i32, i32) {
    %c0_i32 = arith.constant 0 : i32
    %c0_i32_0 = arith.constant 0 : i32
    %c0_i32_1 = arith.constant 0 : i32
    return %c0_i32, %c0_i32_0 : i32, i32
  }
  func.func @transform_8(%arg0: i32) -> (i32, i32) {
    %c0_i32 = arith.constant 0 : i32
    %c0_i32_0 = arith.constant 0 : i32
    %c0_i32_1 = arith.constant 0 : i32
    return %c0_i32, %c0_i32_0 : i32, i32
  }
  func.func @transform_9(%arg0: i32) -> (i32, i32) {
    %c0_i32 = arith.constant 0 : i32
    %c0_i32_0 = arith.constant 0 : i32
    %c0_i32_1 = arith.constant 0 : i32
    return %c0_i32, %c0_i32_0 : i32, i32
  }
  func.func @transform_10(%arg0: i32) -> (i32, i32) {
    %c0_i32 = arith.constant 0 : i32
    %c0_i32_0 = arith.constant 0 : i32
    %c0_i32_1 = arith.constant 0 : i32
    return %c0_i32, %c0_i32_0 : i32, i32
  }
  func.func @transform_11(%arg0: i32) -> (i32, i32) {
    %c0_i32 = arith.constant 0 : i32
    %c0_i32_0 = arith.constant 0 : i32
    %c0_i32_1 = arith.constant 0 : i32
    return %c0_i32, %c0_i32_0 : i32, i32
  }
  func.func @transform_12(%arg0: i32) -> (i32, i32) {
    %c0_i32 = arith.constant 0 : i32
    %c0_i32_0 = arith.constant 0 : i32
    %c0_i32_1 = arith.constant 0 : i32
    return %c0_i32, %c0_i32_0 : i32, i32
  }
  func.func @transform_13(%arg0: i32) -> (i32, i32) {
    %c0_i32 = arith.constant 0 : i32
    %c0_i32_0 = arith.constant 0 : i32
    %c0_i32_1 = arith.constant 0 : i32
    return %c0_i32, %c0_i32_0 : i32, i32
  }
  func.func @transform_14(%arg0: i32) -> (i32, i32) {
    %c0_i32 = arith.constant 0 : i32
    %c0_i32_0 = arith.constant 0 : i32
    return %arg0, %c0_i32 : i32, i32
  }
  func.func @transform_15(%arg0: i32) -> (i32, i32) {
    %c0_i32 = arith.constant 0 : i32
    %c0_i32_0 = arith.constant 0 : i32
    return %arg0, %c0_i32 : i32, i32
  }
  func.func @transform_16(%arg0: i32) -> (i32, i32) {
    %c0_i32 = arith.constant 0 : i32
    %c0_i32_0 = arith.constant 0 : i32
    return %arg0, %c0_i32 : i32, i32
  }
}

</mosaic_0001>

<bundles_post_ra>
// kernel: tpu_custom_call.1
= control target key start
LH: loop header
LB: loop body
LE: loop exit
PB: predicated region body
PF: predicated region fallthrough
CT: control target
= control target key end

     0   :  { %s6747_s0 = inlined_call_operand.hbm [shape: f32[16,16], index: 0, kind: input, shape index: {}]   ;;  %s6748_s1 = inlined_call_operand.vmem [shape: f32[160,4], index: 1, kind: input, shape index: {}]   ;;  %s6749_s2 = inlined_call_operand.hbm [shape: bf16[16,512], index: 2, kind: input, shape index: {}]   ;;  %s6750_s3 = inlined_call_operand.vmem [shape: f32[1,512], index: 3, kind: input, shape index: {}]   ;;  %s6751_s4 = inlined_call_operand.hbm [shape: bf16[512,256], index: 4, kind: input, shape index: {}]   ;;  %s6752_s5 = inlined_call_operand.hbm [shape: f32[1,256], index: 5, kind: input, shape index: {}]   ;;  %s6753_s6 = inlined_call_operand.hbm [shape: bf16[256,128], index: 6, kind: input, shape index: {}]   ;;  %s6754_s7 = inlined_call_operand.vmem [shape: f32[1,128], index: 7, kind: input, shape index: {}]   ;;  %s6755_s8 = inlined_call_operand.vmem [shape: bf16[4,256], index: 8, kind: input, shape index: {}]   ;;  %s6756_s9 = inlined_call_operand.hbm [shape: f32[1,256], index: 9, kind: input, shape index: {}]   ;;  %s6757_s10 = inlined_call_operand.vmem [shape: bf16[256,512], index: 10, kind: input, shape index: {}]   ;;  %s6758_s11 = inlined_call_operand.vmem [shape: f32[1,512], index: 11, kind: input, shape index: {}]   ;;  %s6759_s12 = inlined_call_operand.vmem [shape: bf16[512,32], index: 12, kind: input, shape index: {}]   ;;  %s6760_s13 = inlined_call_operand.vmem [shape: f32[1,32], index: 13, kind: input, shape index: {}]   ;;  %s6761_s14 = inlined_call_operand.hbm [shape: f32[16,128], index: 14, kind: output, shape index: {0}]   ;;  %s6762_s15 = inlined_call_operand.hbm [shape: f32[160,128], index: 15, kind: output, shape index: {1}]   ;;  %s6763_s16 = inlined_call_operand.hbm [shape: f32[16,128], index: 16, kind: output, shape index: {2}]  }
   0x1   :  { %6779 = sst [smem:[#allocation27_spill]] %s6747_s0 }
   0x2   :  { %6780 = sst [smem:[#allocation28_spill]] %s6748_s1 }
   0x3   :  { %6781 = sst [smem:[#allocation29_spill]] %s6749_s2 }
   0x4   :  { %6782 = sst [smem:[#allocation30_spill]] %s6750_s3 }
   0x5   :  { %6783 = sst [smem:[#allocation31_spill]] %s6751_s4 }
   0x6   :  { %6784 = sst [smem:[#allocation32_spill]] %s6752_s5 }
   0x7   :  { %6785 = sst [smem:[#allocation33_spill]] %s6758_s11 }
   0x8   :  { %6786 = sst [smem:[#allocation34_spill]] %s6759_s12 }
   0x9   :  { %6787 = sst [smem:[#allocation35_spill]] %s6760_s13 }
   0xa   :  { %6788 = sst [smem:[#allocation36_spill]] %s6761_s14 }
   0xb   :  { %6789 = sst [smem:[#allocation37_spill]] %s6762_s15 }
   0xc   :  { %6790 = sst [smem:[#allocation38_spill]] %s6763_s16 }
   0xd   :  { %22 = vsyncpa [#allocation3], 0 }
   0xe   :  { %24 = vsyncpa [#allocation3 + $0x1], 0 }
   0xf   :  { %25 = vsyncpa [#allocation6], 0 }
  0x10   :  { %26 = vsyncpa [#allocation9], 0 }
  0x11   :  { %27 = vsyncpa [#allocation12], 0 }
  0x12   :  { %28 = vsyncpa [#allocation4], 0 }
  0x13   :  { %30 = vsyncpa [#allocation4 + $0x1], 0 }
  0x14   :  { %31 = vsyncpa [#allocation15], 0 }
  0x15   :  { %33 = vsyncpa [#allocation15 + $0x1], 0  ;;  %s5258_s21 = smov 0   ;;  %s5260_s22 = smov 0  }
  0x16   :  { %s5262_s23 = smov 0   ;;  %s5264_s24 = smov 0  }
  0x17 LB: > { %s5150_s25 = smov [#allocation5]   ;;  %s5279_s27 = sadd.s32 4294967295, %s5148_s24   ;;  %s5148_s24 = sphi %s5264_s24, %s6842_s24   ;;  %s5144_s23 = sphi %s5262_s23, %s6841_s23   ;;  %s5140_s22 = sphi %s5260_s22, %s6840_s22   ;;  %s5136_s21 = sphi %s5258_s21, %s6839_s21  }
  0x18   : > { %s438_s26 = sshll.u32 %s5150_s25, 4  ;;  %p3896_p0 = scmp.ge.s32.totalorder %s5148_s24, 1  ;;  %s5284_s26 = int_to_ptr.vmem [resolvable:$true] %s438_s26 }
  0x19   : > { %p6769_p1 = scmp.eq.s32.totalorder %s5279_s27, 0  ;;  %p426_p2 = scmp.lt.s32.totalorder %s5148_s24, 3 }
  0x1a   : > { %s5151_s29 = smov [#allocation8]   ;;  %s5152_s17 = smov [#allocation7]  }
  0x1b   : > { %p5286_p3 = pnand %p3896_p0, %p426_p2  ;;  %s468_s30 = sshll.u32 %s5151_s29, 4  ;;  %s5299_s30 = int_to_ptr.vmem [resolvable:$true] %s468_s30 }
  0x1c   : > { %s454_s18 = sshll.u32 %s5152_s17, 4  ;;  %s6793_s2 = sld [smem:[#allocation29_spill]]  ;;  %s5301_s18 = int_to_ptr.vmem [resolvable:$true] %s454_s18 }
  0x1d   : > { %s6791_s28 = scalar_select %p5286_p3, 1, 0 }
  0x1e   : > { %p4414_p5 = pneg %p5286_p3 }
  0x20   : > { %p5295_p6 = pnand %p4414_p5, %p6769_p1 }
  0x22   : > { %s4840_s25 = scalar_lea.hbm %s6793_s2, 512  ;;  %p5311_p8 = pneg %p5295_p6 }
  0x23   : > { %p4841_p7 = scmp.ne.s32.totalorder %s6793_s2, %s4840_s25  ;;  %p4847_p11 = scmp.lt.u32.totalorder %s4840_s25, %s6793_s2 }
  0x25   : > { %p4843_p9 = pnand %p5311_p8, %p4841_p7 }
  0x27   : > { %p4844_p10 = pneg %p4843_p9 }
  0x29   : > { %p4849_p12 = pnand %p4847_p11, %p4844_p10 }
  0x2b   : > { %4852 = shalt.err (!%p4849_p12)
}
  0x2c   : > { %s4853_s15 = scalar_lea.vmem %s5284_s26, 512  ;;  %p4861_p5 = scmp.lt.s32.totalorder %s5284_s26, %s5284_s26 }
  0x2d   : > { %p4854_p13 = scmp.ne.s32.totalorder %s5284_s26, %s4853_s15  ;;  %p4862_p4 = scmp.lt.s32.totalorder %s4853_s15, %s4853_s15 }
  0x2f   : > { %p4856_p0 = pnand %p4854_p13, %p5311_p8  ;;  %p4863_p7 = por %p4862_p4, %p4861_p5 }
  0x31   : > { %p4857_p2 = pneg %p4856_p0 }
  0x33   : > { %p4864_p9 = pnand %p4863_p7, %p4857_p2 }
  0x35   : > { %4867 = shalt.err (!%p4864_p9)
}
  0x36   : > { %s5153_s16 = smov 256   ;;  %s5154_s14 = smov 16  }
  0x37   : > { %4417 = dma.hbm_to_vmem [thread:$0]  (!%p5295_p6), %s6793_s2, 512, %s5284_s26, [#allocation6], %s5153_s16, %s5153_s16, %s5154_s14  }
  0x38   : > { %s6795_s5 = sld [smem:[#allocation32_spill]] }
  0x3e   : > { %s4868_s13 = scalar_lea.hbm %s6795_s5, 32 }
  0x3f   : > { %p4869_p4 = scmp.ne.s32.totalorder %s6795_s5, %s4868_s13  ;;  %p4875_p12 = scmp.lt.u32.totalorder %s4868_s13, %s6795_s5 }
  0x41   : > { %p4871_p10 = pnand %p4869_p4, %p5311_p8 }
  0x43   : > { %p4872_p11 = pneg %p4871_p10 }
  0x45   : > { %p4877_p13 = pnand %p4875_p12, %p4872_p11 }
  0x47   : > { %4880 = shalt.err (!%p4877_p13)
}
  0x48   : > { %s4881_s26 = scalar_lea.vmem %s5299_s30, 32  ;;  %p4889_p7 = scmp.lt.s32.totalorder %s5299_s30, %s5299_s30 }
  0x49   : > { %p4882_p0 = scmp.ne.s32.totalorder %s5299_s30, %s4881_s26  ;;  %p4890_p9 = scmp.lt.s32.totalorder %s4881_s26, %s4881_s26 }
  0x4b   : > { %p4884_p2 = pnand %p4882_p0, %p5311_p8  ;;  %p4891_p4 = por %p4890_p9, %p4889_p7 }
  0x4d   : > { %p4885_p5 = pneg %p4884_p2 }
  0x4f   : > { %p4892_p10 = pnand %p4891_p4, %p4885_p5 }
  0x51   : > { %4895 = shalt.err (!%p4892_p10)
}
  0x52   : > { %4423 = dma.hbm_to_vmem [thread:$0]  (!%p5295_p6), %s6795_s5, 32, %s5299_s30, [#allocation9]  }
  0x53   : > { %s6796_s4 = sld [smem:[#allocation31_spill]] }
  0x59   : > { %s4896_s16 = scalar_lea.hbm %s6796_s4, 8192 }
  0x5a   : > { %p4897_p11 = scmp.ne.s32.totalorder %s6796_s4, %s4896_s16  ;;  %p4903_p0 = scmp.lt.u32.totalorder %s4896_s16, %s6796_s4 }
  0x5c   : > { %p4899_p12 = pnand %p4897_p11, %p5311_p8 }
  0x5e   : > { %p4900_p13 = pneg %p4899_p12 }
  0x60   : > { %p4905_p2 = pnand %p4903_p0, %p4900_p13 }
  0x62   : > { %4908 = shalt.err (!%p4905_p2)
}
  0x63   : > { %s4909_s30 = scalar_lea.vmem %s5301_s18, 8192  ;;  %p4917_p4 = scmp.lt.s32.totalorder %s5301_s18, %s5301_s18 }
  0x64   : > { %p4910_p5 = scmp.ne.s32.totalorder %s5301_s18, %s4909_s30  ;;  %p4918_p10 = scmp.lt.s32.totalorder %s4909_s30, %s4909_s30 }
  0x66   : > { %p4912_p7 = pnand %p4910_p5, %p5311_p8  ;;  %p4919_p11 = por %p4918_p10, %p4917_p4 }
  0x68   : > { %p4913_p9 = pneg %p4912_p7 }
  0x6a   : > { %p4920_p12 = pnand %p4919_p11, %p4913_p9 }
  0x6c   : > { %4923 = shalt.err (!%p4920_p12)
}
  0x6d   : > { %s5155_s17 = smov 128   ;;  %s5156_s15 = smov 8  }
  0x6e   : > { %4420 = dma.hbm_to_vmem [thread:$0]  (!%p5295_p6), %s6796_s4, 8192, %s5301_s18, [#allocation6], %s5155_s17, %s5155_s17, %s5156_s15  }
  0x6f   : > { %s5157_s11 = smov [#allocation10]   ;;  %s4924_s14 = scalar_lea.hbm %s6753_s6, 2048 }
  0x70   : > { %s478_s12 = sshll.u32 %s5157_s11, 4  ;;  %p4925_p13 = scmp.ne.s32.totalorder %s6753_s6, %s4924_s14  ;;  %s479_s12 = int_to_ptr.vmem [resolvable:$true] %s478_s12 }
  0x71   : > { %p4931_p5 = scmp.lt.u32.totalorder %s4924_s14, %s6753_s6 }
  0x72   : > { %p4927_p0 = pnand %p4925_p13, %p5311_p8 }
  0x74   : > { %p4928_p2 = pneg %p4927_p0 }
  0x76   : > { %p4933_p7 = pnand %p4931_p5, %p4928_p2 }
  0x78   : > { %4936 = shalt.err (!%p4933_p7)
}
  0x79   : > { %s4937_s18 = scalar_lea.vmem %s479_s12, 2048  ;;  %p4945_p11 = scmp.lt.s32.totalorder %s479_s12, %s479_s12 }
  0x7a   : > { %p4938_p9 = scmp.ne.s32.totalorder %s479_s12, %s4937_s18  ;;  %p4946_p12 = scmp.lt.s32.totalorder %s4937_s18, %s4937_s18 }
  0x7c   : > { %p4940_p4 = pnand %p4938_p9, %p5311_p8  ;;  %p4947_p1 = por %p4946_p12, %p4945_p11 }
  0x7e   : > { %p4941_p10 = pneg %p4940_p4 }
  0x80   : > { %p4948_p3 = pnand %p4947_p1, %p4941_p10 }
  0x82   : > { %4951 = shalt.err (!%p4948_p3)
}
  0x83   : > { %s5158_s17 = smov 64   ;;  %s5159_s15 = smov 4  }
  0x84   : > { %4426 = dma.hbm_to_vmem [thread:$0]  (!%p5295_p6), %s6753_s6, 2048, %s479_s12, [#allocation9], %s5158_s17, %s5158_s17, %s5159_s15  }
  0x85   : > { %s5160_s11 = smov [#allocation11]   ;;  %s4952_s19 = scalar_lea.hbm %s6756_s9, 32 }
  0x86   : > { %s498_s13 = sshll.u32 %s5160_s11, 4  ;;  %p4953_p1 = scmp.ne.s32.totalorder %s6756_s9, %s4952_s19  ;;  %s499_s13 = int_to_ptr.vmem [resolvable:$true] %s498_s13 }
  0x87   : > { %p4959_p0 = scmp.lt.u32.totalorder %s4952_s19, %s6756_s9 }
  0x88   : > { %p4955_p3 = pnand %p4953_p1, %p5311_p8 }
  0x8a   : > { %p4956_p13 = pneg %p4955_p3 }
  0x8c   : > { %p4961_p2 = pnand %p4959_p0, %p4956_p13 }
  0x8e   : > { %4964 = shalt.err (!%p4961_p2)
}
  0x8f   : > { %s4965_s12 = scalar_lea.vmem %s499_s13, 32  ;;  %p4973_p4 = scmp.lt.s32.totalorder %s499_s13, %s499_s13 }
  0x90   : > { %p4966_p5 = scmp.ne.s32.totalorder %s499_s13, %s4965_s12  ;;  %p4974_p10 = scmp.lt.s32.totalorder %s4965_s12, %s4965_s12 }
  0x92   : > { %p4968_p7 = pnand %p4966_p5, %p5311_p8  ;;  %p4975_p11 = por %p4974_p10, %p4973_p4 }
  0x94   : > { %p4969_p9 = pneg %p4968_p7 }
  0x96   : > { %p4976_p12 = pnand %p4975_p11, %p4969_p9 }
  0x98   : > { %4979 = shalt.err (!%p4976_p12)
}
  0x99   : > { %4429 = dma.hbm_to_vmem [thread:$0]  (!%p5295_p6), %s6756_s9, 32, %s499_s13, [#allocation12]  }
  0x9a   : > { %s6771_s0 = sadd.s32 4294967294, %s5148_s24   ;;  %s5416_s29 = sadd.s32 1, %s5148_s24  }
  0x9b   : > { %s46_s26 = sadd.s32 1, %s5144_s23  ;;  %s43_s1 = ssub.s32 %s5148_s24, %s5416_s29 }
  0x9c   : > { %p53_p8 = scmp.ne.s32.totalorder %s5144_s23, %s5140_s22  ;;  %p44_p1 = scmp.eq.s32.totalorder %s43_s1, 0 }
  0x9d   : > { %p54_p3 = scmp.eq.s32.totalorder %s5148_s24, 0  ;;  %p59_p13 = scmp.ne.s32.totalorder %s5140_s22, %s5136_s21 }
  0x9e   : > { %p361_p0 = scmp.eq.s32.totalorder %s5279_s27, 1  ;;  %p6797_p5 = scmp.eq.s32.totalorder %s5279_s27, 0 }
  0x9f   : > { %s5428_s11 = scalar_select %p44_p1, %s5144_s23, %s46_s26  }
  0xa0   : > { %p55_p2 = por %p54_p3, %p53_p8  ;;  %p5432_p7 = por %p6797_p5, %p59_p13 }
  0xa1   : > { %p5436_p6 = por %p361_p0, %p53_p8  ;;  %p367_p9 = scmp.eq.s32.totalorder %s6771_s0, 1 }
  0xa2   : > { %p4449_p4 = scmp.lt.s32.totalorder %s5148_s24, 2  ;;  %s521_s14 = sand.u32 1, %s5144_s23  }
  0xa3   : > { %s6799_s13 = scalar_select %p5436_p6, 1, 0 }
  0xa4   : > { %p5444_p10 = por %p367_p9, %p59_p13  ;;  %s3903_s20 = sshll.u32 %s521_s14, 3 }
  0xa5   : > { %s3904_s25 = sshll.u32 %s5148_s24, 7  ;;  %s6801_s12 = sld [smem:[#allocation27_spill]] }
  0xa6   : > { %s6800_s19 = scalar_select %p5444_p10, 1, 0 }
  0xa7   : > { %s525_s15 = scalar_lea.vmem [#allocation2], %s3903_s20  ;;  %p5454_p11 = pnand %p4449_p4, %p55_p2 }
  0xa8   : > { %s532_s26 = sshll.u32 %s525_s15, 4  ;;  %s522_s0 = scalar_lea.sflag [#allocation3], %s521_s14  ;;  %s5458_s26 = int_to_ptr.vmem [resolvable:$true] %s532_s26 }
  0xa9   : > { %p4982_p8 = pneg %p5454_p11 }
  0xab   : > { %s5452_s17 = scalar_lea.hbm %s6801_s12, %s3904_s25  ;;  %s4985_s30 = scalar_lea.hbm %s6801_s12, 256 }
  0xac   : > { %s4980_s2 = scalar_lea.hbm %s5452_s17, 128  ;;  %p4986_p13 = scmp.lt.u32.totalorder %s5452_s17, %s6801_s12 }
  0xad   : > { %p4981_p12 = scmp.ne.s32.totalorder %s5452_s17, %s4980_s2  ;;  %p4987_p0 = scmp.lt.u32.totalorder %s4985_s30, %s4980_s2 }
  0xae   : > { %p4989_p5 = scmp.lt.u32.totalorder %s4980_s2, %s5452_s17 }
  0xaf   : > { %p4983_p1 = pnand %p4982_p8, %p4981_p12  ;;  %p4988_p2 = por %p4987_p0, %p4986_p13 }
  0xb1   : > { %p4984_p3 = pneg %p4983_p1  ;;  %p4990_p9 = por %p4989_p5, %p4988_p2 }
  0xb3   : > { %p4991_p4 = pnand %p4990_p9, %p4984_p3 }
  0xb5   : > { %4994 = shalt.err (!%p4991_p4)
}
  0xb6   : > { %s4995_s14 = scalar_lea.vmem %s5458_s26, 128  ;;  %s5161_s25 = smov [#allocation2]  }
  0xb7   : > { %p4996_p12 = scmp.ne.s32.totalorder %s5458_s26, %s4995_s14  ;;  %s5000_s20 = sshll.u32 %s5161_s25, 4  ;;  %s5001_s20 = int_to_ptr.vmem [resolvable:$false] %s5000_s20 }
  0xb8   : > { %s5002_s18 = scalar_lea.vmem %s5001_s20, 256  ;;  %p5003_p6 = scmp.lt.s32.totalorder %s5458_s26, %s5001_s20 }
  0xb9   : > { %p4998_p1 = pnand %p4996_p12, %p4982_p8  ;;  %p5004_p13 = scmp.lt.s32.totalorder %s5002_s18, %s4995_s14 }
  0xbb   : > { %p4999_p10 = pneg %p4998_p1  ;;  %p5005_p0 = por %p5004_p13, %p5003_p6 }
  0xbd   : > { %p5006_p2 = pnand %p5005_p0, %p4999_p10 }
  0xbf   : > { %5009 = shalt.err (!%p5006_p2)
}
  0xc0   : > { %4433 = dma.hbm_to_vmem [thread:$0]  (!%p5454_p11), %s5452_s17, 128, %s5458_s26, %s522_s0  }
  0xc1   : > { %p6803_p3 = scmp.ne.s32.totalorder %s6791_s28, 0 }
  0xc3   : > { %550 = sbr.rel (%p6803_p3) target bundleno = 2488 (0x9b8), region = 76 }
  0xca   : > { %s5488_s2 = sand.u32 1, %s5140_s22  }
  0xcb   : > { %s5491_s30 = sshll.u32 %s5488_s2, 3  ;;  %s553_s15 = scalar_lea.sflag [#allocation3], %s5488_s2 }
  0xcc   : > { %s556_s14 = scalar_lea.vmem [#allocation2], %s5491_s30 }
  0xcd   : > { %5111 = dma.done.wait (%p5432_p7), %s553_s15, 128  }
  0xce   : > { %5113 = vsyncadd (%p5432_p7), %s553_s15, 4294967168  ;;  %p6804_p6 = scmp.eq.s32.totalorder %s5279_s27, 0 }
  0xd0   : > { %5115 = dma.done.wait (%p6804_p6), [#allocation6], 8704   ;;  %p6805_p10 = pmov %p6804_p6 }
  0xd1   : > { %p6806_p11 = pmov %p6804_p6 }
  0xd2   : > { %5117 = vsyncadd (%p6805_p10), [#allocation6], 4294958592 }
  0xd3   : > { %5119 = dma.done.wait (%p6806_p11), [#allocation9], 2080   ;;  %p6807_p8 = pmov %p6804_p6 }
  0xd4   : > { %p6808_p5 = pmov %p6804_p6 }
  0xd5   : > { %5121 = vsyncadd (%p6807_p8), [#allocation9], 4294965216 }
  0xd6   : > { %5123 = dma.done.wait (%p6808_p5), [#allocation12], 32   ;;  %p6809_p9 = pmov %p6808_p5 }
  0xd7   : > { %v5162_v0 = vmov 0   ;;  %v4507_v1 = vld [vmem:[#allocation5 + $0x4] ss:$16 sps:$4 sm:$0xff]   ;;  %v4509_v2 = vld [vmem:[#allocation5] ss:$16 sps:$4 sm:$0xff]   ;;  %vm696_vm0 = vcmask 130048   ;;  %v656_v52 = vlaneseq }
  0xd8   : > { %5125 = vsyncadd (%p6809_p9), [#allocation12], 4294967264  ;;  %732 = vmatprep.mubr.bf16.mxu1 %v5162_v0  ;;  %v648_v3 = vld [vmem:[%s556_s14] sm:$0xff]  ;;  %700 = vmatprep.subr.bf16.mxu1 %v4507_v1  ;;  %v4513_v7 = vld [vmem:[#allocation7 + $0x4] ss:$8 sps:$4 sm:$0xff]   ;;  %s6811_s3 = sld [smem:[#allocation30_spill]] }
  0xd9   : > { %v649_v4 = vpack.c.bf16 %v648_v3, %v648_v3  ;;  %v4510_v5 = vld [vmem:[#allocation5 + $0x8] ss:$16 sps:$4 sm:$0xff]   ;;  %v4512_v6 = vld [vmem:[#allocation5 + $0xc] ss:$16 sps:$4 sm:$0xff]   ;;  %701 = vmatpush1.bf16.msra.mxu1 %v4509_v2  ;;  %1186 = vmatprep.subr.bf16.mxu0 %v4513_v7  ;;  %v5518_v53 = vshrl.u32 %v656_v52, 7  ;;  %vm1540_vm6 = vcmask 64512  }
  0xda   : > { %741 = vmatprep.subr.bf16.mxu1 %v4512_v6  ;;  %v4515_v8 = vld [vmem:[#allocation7] ss:$8 sps:$4 sm:$0xff]   ;;  %v4516_v9 = vld [vmem:[#allocation7 + $0x14] ss:$8 sps:$4 sm:$0xff]   ;;  %v4518_v10 = vld [vmem:[#allocation7 + $0x10] ss:$8 sps:$4 sm:$0xff]  }
  0xdb   : > { %1187 = vmatpush1.bf16.msra.mxu0 %v4515_v8  ;;  %v4519_v11 = vld [vmem:[#allocation7 + $0x24] ss:$8 sps:$4 sm:$0xff]   ;;  %v4521_v12 = vld [vmem:[#allocation7 + $0x20] ss:$8 sps:$4 sm:$0xff]   ;;  %v4522_v13 = vld [vmem:[#allocation7 + $0x34] ss:$8 sps:$4 sm:$0xff]  }
  0xdc   : > { %3919 = vmatmul.mubr.msk.bf16.vlgmr.msra.gmra.mrb[0].mxu1 %vm696_vm0, %v649_v4  ;;  %1188 = vmatprep.subr.bf16.mxu0 %v4516_v9  ;;  %v4524_v14 = vld [vmem:[#allocation7 + $0x30] ss:$8 sps:$4 sm:$0xff]   ;;  %v4525_v15 = vld [vmem:[#allocation7 + $0x44] ss:$8 sps:$4 sm:$0xff]   ;;  %v4527_v16 = vld [vmem:[#allocation7 + $0x40] ss:$8 sps:$4 sm:$0xff]  }
  0xdd   : > { %742 = vmatpush1.bf16.msra.mxu1 %v4510_v5  ;;  %773 = vmatprep.mubr.bf16.mxu1 %v5162_v0  ;;  %v4528_v17 = vld [vmem:[#allocation7 + $0x54] ss:$8 sps:$4 sm:$0xff]   ;;  %v4530_v18 = vld [vmem:[#allocation7 + $0x50] ss:$8 sps:$4 sm:$0xff]   ;;  %v4531_v19 = vld [vmem:[#allocation7 + $0x64] ss:$8 sps:$4 sm:$0xff]  }
  0xde   : > { %v4533_v20 = vld [vmem:[#allocation7 + $0x60] ss:$8 sps:$4 sm:$0xff]   ;;  %v4534_v21 = vld [vmem:[#allocation7 + $0x74] ss:$8 sps:$4 sm:$0xff]   ;;  %v4536_v22 = vld [vmem:[#allocation7 + $0x70] ss:$8 sps:$4 sm:$0xff]  }
  0xdf   : > { %1189 = vmatpush1.bf16.msra.mxu0 %v4518_v10  ;;  %v4537_v23 = vld [vmem:[#allocation7 + $0x84] ss:$8 sps:$4 sm:$0xff]   ;;  %v4539_v24 = vld [vmem:[#allocation7 + $0x80] ss:$8 sps:$4 sm:$0xff]   ;;  %v4540_v25 = vld [vmem:[#allocation7 + $0x94] ss:$8 sps:$4 sm:$0xff]  }
  0xe0   : > { %1190 = vmatprep.subr.bf16.mxu0 %v4519_v11  ;;  %v4542_v26 = vld [vmem:[#allocation7 + $0x90] ss:$8 sps:$4 sm:$0xff]   ;;  %v4543_v27 = vld [vmem:[#allocation7 + $0xa4] ss:$8 sps:$4 sm:$0xff]   ;;  %v4545_v28 = vld [vmem:[#allocation7 + $0xa0] ss:$8 sps:$4 sm:$0xff]  }
  0xe1   : > { %v4546_v29 = vld [vmem:[#allocation7 + $0xb4] ss:$8 sps:$4 sm:$0xff]   ;;  %v4548_v30 = vld [vmem:[#allocation7 + $0xb0] ss:$8 sps:$4 sm:$0xff]   ;;  %v4549_v31 = vld [vmem:[#allocation7 + $0xc4] ss:$8 sps:$4 sm:$0xff]  }
  0xe2   : > { %v4551_v32 = vld [vmem:[#allocation7 + $0xc0] ss:$8 sps:$4 sm:$0xff]   ;;  %v4552_v33 = vld [vmem:[#allocation7 + $0xd4] ss:$8 sps:$4 sm:$0xff]   ;;  %v4554_v34 = vld [vmem:[#allocation7 + $0xd0] ss:$8 sps:$4 sm:$0xff]  }
  0xe3   : > { %1191 = vmatpush1.bf16.msra.mxu0 %v4521_v12  ;;  %v4555_v35 = vld [vmem:[#allocation7 + $0xe4] ss:$8 sps:$4 sm:$0xff]   ;;  %v4557_v36 = vld [vmem:[#allocation7 + $0xe0] ss:$8 sps:$4 sm:$0xff]   ;;  %v4558_v37 = vld [vmem:[#allocation7 + $0xf4] ss:$8 sps:$4 sm:$0xff]  }
  0xe4   : > { %3920 = vmatmul.mubr.msk.bf16.vlgmr.msra.gmra.mrb[4].mxu1 %vm696_vm0, %v649_v4  ;;  %1192 = vmatprep.subr.bf16.mxu0 %v4522_v13  ;;  %v4560_v38 = vld [vmem:[#allocation7 + $0xf0] ss:$8 sps:$4 sm:$0xff]   ;;  %v4563_v39 = vld [vmem:[#allocation7 + $0x104] ss:$8 sps:$4 sm:$0xff]   ;;  %6810 = vst [vmem:[#allocation23_spill] sm:$0xff] %v5518_v53  ;;  %v5521_v54 = vsub.s32 0, %v5518_v53 }
  0xe5   : > { %v4609_v40 = vld [vmem:[#allocation10 + $0x40] sm:$0xff]   ;;  %v4611_v42 = vld [vmem:[#allocation10 + $0x48] sm:$0xff]   ;;  %v4613_v44 = vld [vmem:[#allocation10 + $0x50] sm:$0xff]   ;;  %v5529_v56 = vsub.s32 1, %v5518_v53  ;;  %v670_v1 = vsub.s32 3, %v5518_v53  ;;  %s6774_s26 = smov 124  }
  0xe6   : > { %v4610_v41 = vld [vmem:[#allocation10] sm:$0xff]   ;;  %4165 = vmatprep.subr.bf16.mxu1 %v4609_v40  ;;  %v4612_v43 = vld [vmem:[#allocation10 + $0x8] sm:$0xff]   ;;  %v4614_v45 = vld [vmem:[#allocation10 + $0x10] sm:$0xff]   ;;  %v666_v40 = vsub.s32 2, %v5518_v53  ;;  %s6773_s1 = scalar_lea.vmem [#allocation13], %s5491_s30  ;;  %s5165_s25 = smov 4  }
  0xe7   : > { %1193 = vmatpush1.bf16.msra.mxu0 %v4524_v14  ;;  %4166 = vmatpush3.bf16.msra.mxu1 %v4610_v41  ;;  %v4615_v46 = vld [vmem:[#allocation10 + $0x58] sm:$0xff]   ;;  %v4617_v48 = vld [vmem:[#allocation10 + $0x60] sm:$0xff]   ;;  %v4619_v50 = vld [vmem:[#allocation10 + $0x68] sm:$0xff]   ;;  %s6812_s28 = sld [smem:[#allocation28_spill]]  ;;  %s6816_s20 = sld [smem:[#allocation34_spill]] }
  0xe8   : > { %1194 = vmatprep.subr.bf16.mxu0 %v4525_v15  ;;  %4167 = vmatprep.subr.bf16.mxu1 %v4611_v42  ;;  %v4616_v47 = vld [vmem:[#allocation10 + $0x18] sm:$0xff]   ;;  %v4618_v49 = vld [vmem:[#allocation10 + $0x20] sm:$0xff]   ;;  %v4620_v51 = vld [vmem:[#allocation10 + $0x28] sm:$0xff]   ;;  %s5166_s16 = smov 112   ;;  %s6823_s17 = smov 124  }
  0xe9   : > { %v5526_v55 = vld [vmem:[%s6811_s3] sm:$0xf]  ;;  %v4561_v6 = vld [vmem:[#allocation7 + $0x100] ss:$8 sps:$4 sm:$0xff]   ;;  %v4566_v9 = vld [vmem:[#allocation7 + $0x114] ss:$8 sps:$4 sm:$0xff]  }
  0xea   : > { %v659_v57 = vrot.slane %v5526_v55, %v5521_v54  ;;  %v663_v58 = vrot.slane %v5526_v55, %v5529_v56  ;;  %v671_v7 = vrot.slane %v5526_v55, %v670_v1  ;;  %v4564_v12 = vld [vmem:[#allocation7 + $0x110] ss:$8 sps:$4 sm:$0xff]   ;;  %v4569_v15 = vld [vmem:[#allocation7 + $0x124] ss:$8 sps:$4 sm:$0xff]   ;;  %v4602_v41 = vld [vmem:[#allocation7 + $0x1d4] ss:$8 sps:$4 sm:$0xff]  }
  0xeb   : > { %1195 = vmatpush1.bf16.msra.mxu0 %v4527_v16  ;;  %4168 = vmatpush3.bf16.msra.mxu1 %v4612_v43  ;;  %v4600_v42 = vld [vmem:[#allocation7 + $0x1d0] ss:$8 sps:$4 sm:$0xff]   ;;  %v667_v43 = vrot.slane %v5526_v55, %v666_v40  ;;  %p6832_p12 = scmp.ne.s32.totalorder %s6799_s13, 0  ;;  %s5168_s4 = smov [#allocation13]  }
  0xec   : > { %1196 = vmatprep.subr.bf16.mxu0 %v4528_v17  ;;  %4169 = vmatprep.subr.bf16.mxu1 %v4613_v44  ;;  %v4605_v44 = vld [vmem:[#allocation7 + $0x1e4] ss:$8 sps:$4 sm:$0xff]   ;;  %v4623_v55 = vld [vmem:[#allocation10 + $0x78] sm:$0xff]   ;;  %s5014_s5 = sshll.u32 %s5168_s4, 4  ;;  %s5015_s5 = int_to_ptr.vmem [resolvable:$false] %s5014_s5 }
  0xef   : > { %1197 = vmatpush1.bf16.msra.mxu0 %v4530_v18  ;;  %4170 = vmatpush3.bf16.msra.mxu1 %v4614_v45  ;;  %v4567_v18 = vld [vmem:[#allocation7 + $0x120] ss:$8 sps:$4 sm:$0xff]  }
  0xf0   : > { %1198 = vmatprep.subr.bf16.mxu0 %v4531_v19  ;;  %4171 = vmatprep.subr.bf16.mxu1 %v4615_v46  ;;  %v4603_v45 = vld [vmem:[#allocation7 + $0x1e0] ss:$8 sps:$4 sm:$0xff]  }
  0xf3   : > { %1199 = vmatpush1.bf16.msra.mxu0 %v4533_v20  ;;  %4172 = vmatpush3.bf16.msra.mxu1 %v4616_v47  ;;  %v4572_v20 = vld [vmem:[#allocation7 + $0x134] ss:$8 sps:$4 sm:$0xff]  }
  0xf4   : > { %1200 = vmatprep.subr.bf16.mxu0 %v4534_v21  ;;  %4173 = vmatprep.subr.bf16.mxu1 %v4617_v48  ;;  %v4570_v21 = vld [vmem:[#allocation7 + $0x130] ss:$8 sps:$4 sm:$0xff]   ;;  %v4608_v47 = vld [vmem:[#allocation7 + $0x1f4] ss:$8 sps:$4 sm:$0xff]  }
  0xf5   : > { %v4606_v48 = vld [vmem:[#allocation7 + $0x1f0] ss:$8 sps:$4 sm:$0xff]  }
  0xf7   : > { %1201 = vmatpush1.bf16.msra.mxu0 %v4536_v22  ;;  %4174 = vmatpush3.bf16.msra.mxu1 %v4618_v49  ;;  %v4575_v22 = vld [vmem:[#allocation7 + $0x144] ss:$8 sps:$4 sm:$0xff]  }
  0xf8   : > { %1202 = vmatprep.subr.bf16.mxu0 %v4537_v23  ;;  %4175 = vmatprep.subr.bf16.mxu1 %v4619_v50  ;;  %v4573_v23 = vld [vmem:[#allocation7 + $0x140] ss:$8 sps:$4 sm:$0xff]  }
  0xfb   : > { %1203 = vmatpush1.bf16.msra.mxu0 %v4539_v24  ;;  %4176 = vmatpush3.bf16.msra.mxu1 %v4620_v51  ;;  %v4578_v24 = vld [vmem:[#allocation7 + $0x154] ss:$8 sps:$4 sm:$0xff]  }
  0xfc   : > { %1204 = vmatprep.subr.bf16.mxu0 %v4540_v25  ;;  %v4576_v25 = vld [vmem:[#allocation7 + $0x150] ss:$8 sps:$4 sm:$0xff]  }
  0xfd   : > { %v4621_v51 = vld [vmem:[#allocation10 + $0x70] sm:$0xff]  }
  0xfe   : > { %4177 = vmatprep.subr.bf16.mxu1 %v4621_v51  ;;  %v1481_v51 = vadd.s32 64, %v5518_v53 }
  0xff   : > { %1205 = vmatpush1.bf16.msra.mxu0 %v4542_v26  ;;  %v4581_v26 = vld [vmem:[#allocation7 + $0x164] ss:$8 sps:$4 sm:$0xff]  }
 0x100   : > { %1206 = vmatprep.subr.bf16.mxu0 %v4543_v27  ;;  %v4579_v27 = vld [vmem:[#allocation7 + $0x160] ss:$8 sps:$4 sm:$0xff]  }
 0x103   : > { %1207 = vmatpush1.bf16.msra.mxu0 %v4545_v28  ;;  %v4584_v28 = vld [vmem:[#allocation7 + $0x174] ss:$8 sps:$4 sm:$0xff]  }
 0x104   : > { %1208 = vmatprep.subr.bf16.mxu0 %v4546_v29  ;;  %v4582_v29 = vld [vmem:[#allocation7 + $0x170] ss:$8 sps:$4 sm:$0xff]  }
 0x107   : > { %1209 = vmatpush1.bf16.msra.mxu0 %v4548_v30  ;;  %v4587_v30 = vld [vmem:[#allocation7 + $0x184] ss:$8 sps:$4 sm:$0xff]  }
 0x108   : > { %1210 = vmatprep.subr.bf16.mxu0 %v4549_v31  ;;  %v4585_v31 = vld [vmem:[#allocation7 + $0x180] ss:$8 sps:$4 sm:$0xff]  }
 0x10b   : > { %1211 = vmatpush1.bf16.msra.mxu0 %v4551_v32  ;;  %v4590_v32 = vld [vmem:[#allocation7 + $0x194] ss:$8 sps:$4 sm:$0xff]  }
 0x10c   : > { %1212 = vmatprep.subr.bf16.mxu0 %v4552_v33  ;;  %v4588_v33 = vld [vmem:[#allocation7 + $0x190] ss:$8 sps:$4 sm:$0xff]  }
 0x10f   : > { %1213 = vmatpush1.bf16.msra.mxu0 %v4554_v34  ;;  %v4593_v34 = vld [vmem:[#allocation7 + $0x1a4] ss:$8 sps:$4 sm:$0xff]  }
 0x110   : > { %1214 = vmatprep.subr.bf16.mxu0 %v4555_v35  ;;  %v4591_v35 = vld [vmem:[#allocation7 + $0x1a0] ss:$8 sps:$4 sm:$0xff]  }
 0x113   : > { %1215 = vmatpush1.bf16.msra.mxu0 %v4557_v36  ;;  %v4596_v36 = vld [vmem:[#allocation7 + $0x1b4] ss:$8 sps:$4 sm:$0xff]  }
 0x114   : > { %1216 = vmatprep.subr.bf16.mxu0 %v4558_v37  ;;  %v4594_v37 = vld [vmem:[#allocation7 + $0x1b0] ss:$8 sps:$4 sm:$0xff]  }
 0x117   : > { %1217 = vmatpush1.bf16.msra.mxu0 %v4560_v38  ;;  %v4599_v38 = vld [vmem:[#allocation7 + $0x1c4] ss:$8 sps:$4 sm:$0xff]  }
 0x118   : > { %1227 = vmatprep.subr.bf16.mxu0 %v4563_v39  ;;  %v4597_v39 = vld [vmem:[#allocation7 + $0x1c0] ss:$8 sps:$4 sm:$0xff]  }
 0x1af   : > { %v734_v59 = vpop.f32.mrb[0].mxu1 }
 0x1b0   : > { %v735_v60 = vadd.f32 %v734_v59, %v659_v57  ;;  %v736_v61 = vpop.f32.mrb[1].mxu1  ;;  %v4622_v57 = vld [vmem:[#allocation10 + $0x30] sm:$0xff]   ;;  %v854_v59 = vld [vmem:[#allocation8] sm:$0x3] }
 0x1b1   : > { %v737_v62 = vadd.f32 %v736_v61, %v663_v58  ;;  %v738_v63 = vpop.f32.mrb[2].mxu1  ;;  %4178 = vmatpush3.bf16.msra.mxu1 %v4622_v57  ;;  %v4624_v58 = vld [vmem:[#allocation10 + $0x38] sm:$0xff]   ;;  %v863_v61 = vrot.slane %v854_v59, %v5529_v56 }
 0x1b2   : > { %v782_v2 = vmax.f32 %v735_v60, 0.0  ;;  %v739_v3 = vpop.f32.mrb[3].mxu1  ;;  %4179 = vmatprep.subr.bf16.mxu1 %v4623_v55  ;;  %v859_v60 = vrot.slane %v854_v59, %v5521_v54 }
 0x1b3   : > { %v783_v4 = vmax.f32 %v737_v62, 0.0 }
 0x1b4   : > { %v786_v8 = vpack.c.bf16 %v782_v2, %v782_v2 }
 0x1b5   : > { %v787_v5 = vpack.c.bf16 %v783_v4, %v783_v4  ;;  %4180 = vmatpush3.bf16.msra.mxu1 %v4624_v58  ;;  %v1482_v58 = vadd.s32 72, %v5518_v53 }
 0x1b7   : > { %1218 = vmatprep.mubr.bf16.mxu0 %v787_v5  ;;  %v5539_v10 = vpop.f32.mrb[4].mxu1 }
 0x1b8   : > { %1219 = vmatmul.mubr.bf16.vlgmr.msra.gmra.mrb[0].mxu0 %v786_v8  ;;  %v777_v11 = vpop.f32.mrb[5].mxu1  ;;  %v776_v46 = vadd.f32 %v5539_v10, %v667_v43 }
 0x1b9   : > { %1228 = vmatpush1.bf16.msra.mxu0 %v4561_v6  ;;  %v778_v13 = vadd.f32 %v777_v11, %v671_v7  ;;  %v779_v14 = vpop.f32.mrb[6].mxu1  ;;  %v3985_v11 = vld [vmem:[%s6754_s7] ss:$0 sm:$0xff] }
 0x1ba   : > { %1229 = vmatprep.subr.bf16.mxu0 %v4566_v9  ;;  %v780_v16 = vpop.f32.mrb[7].mxu1  ;;  %v784_v49 = vmax.f32 %v776_v46, 0.0 }
 0x1bb   : > { %v785_v17 = vmax.f32 %v778_v13, 0.0 }
 0x1bc   : > { %v788_v50 = vpack.c.bf16 %v784_v49, %v784_v49 }
 0x1bd   : > { %1230 = vmatpush1.bf16.msra.mxu0 %v4564_v12  ;;  %v789_v19 = vpack.c.bf16 %v785_v17, %v785_v17 }
 0x1be   : > { %1231 = vmatprep.subr.bf16.mxu0 %v4569_v15 }
 0x1bf   : > { %1259 = vmatprep.mubr.bf16.mxu0 %v789_v19 }
 0x1c1   : > { %1232 = vmatpush1.bf16.msra.mxu0 %v4567_v18 }
 0x1c2   : > { %1233 = vmatprep.subr.bf16.mxu0 %v4572_v20  ;;  %v5555_v20 = vand.u32 127, %v656_v52  ;;  %v1475_v52 = vadd.s32 16, %v5518_v53 }
 0x1c5   : > { %1234 = vmatpush1.bf16.msra.mxu0 %v4570_v21 }
 0x1c6   : > { %1235 = vmatprep.subr.bf16.mxu0 %v4575_v22 }
 0x1c9   : > { %1236 = vmatpush1.bf16.msra.mxu0 %v4573_v23  ;;  %v1494_v23 = vadd.s32 1, %v5555_v20 }
 0x1ca   : > { %1237 = vmatprep.subr.bf16.mxu0 %v4578_v24  ;;  %v5559_v24 = vmul.u32 10, %v5555_v20 }
 0x1cc   : > { %vm1484_vm1 = vcmp.ge.s32.totalorder %v5518_v53, %v5559_v24  ;;  %vm1486_vm8 = vcmp.ge.s32.totalorder %v1475_v52, %v5559_v24 }
 0x1cd   : > { %1238 = vmatpush1.bf16.msra.mxu0 %v4576_v25  ;;  %v5561_v25 = vmul.u32 10, %v1494_v23  ;;  %v4670_v23 = vld [vmem:[%s6757_s10 + $0xe8] ss:$16 sps:$4 sm:$0xff]  }
 0x1ce   : > { %1239 = vmatprep.subr.bf16.mxu0 %v4581_v26  ;;  %v1474_v26 = vadd.s32 8, %v5518_v53 }
 0x1cf   : > { %vm1496_vm2 = vcmp.lt.s32.totalorder %v5518_v53, %v5561_v25  ;;  %vm1498_vm9 = vcmp.lt.s32.totalorder %v1475_v52, %v5561_v25  ;;  %v4690_v52 = vld [vmem:[%s6757_s10 + $0x14c] ss:$16 sps:$4 sm:$0xff]  }
 0x1d0   : > { %vm1485_vm3 = vcmp.ge.s32.totalorder %v1474_v26, %v5559_v24  ;;  %vm1497_vm4 = vcmp.lt.s32.totalorder %v1474_v26, %v5561_v25  ;;  %vm1506_vm5 = vmand %vm1484_vm1, %vm1496_vm2  ;;  %v4684_v26 = vld [vmem:[%s6757_s10 + $0x12c] ss:$16 sps:$4 sm:$0xff]  }
 0x1d1   : > { %1240 = vmatpush1.bf16.msra.mxu0 %v4579_v27  ;;  %vm1507_vm7 = vmand %vm1485_vm3, %vm1497_vm4 }
 0x1d2   : > { %1241 = vmatprep.subr.bf16.mxu0 %v4584_v28  ;;  %v5163_v28 = vmov 0.0   ;;  %vm1508_vm10 = vmand %vm1486_vm8, %vm1498_vm9 }
 0x1d5   : > { %1242 = vmatpush1.bf16.msra.mxu0 %v4582_v29  ;;  %v5572_v29 = vsel %vm1506_vm5, 1.0, %v5163_v28 }
 0x1d6   : > { %1243 = vmatprep.subr.bf16.mxu0 %v4587_v30  ;;  %v1476_v30 = vadd.s32 24, %v5518_v53 }
 0x1d8   : > { %vm1487_vm11 = vcmp.ge.s32.totalorder %v1476_v30, %v5559_v24  ;;  %vm1499_vm12 = vcmp.lt.s32.totalorder %v1476_v30, %v5561_v25  ;;  %v4694_v30 = vld [vmem:[%s6757_s10 + $0x168] ss:$16 sps:$4 sm:$0xff]  }
 0x1d9   : > { %1244 = vmatpush1.bf16.msra.mxu0 %v4585_v31  ;;  %v5578_v31 = vsel %vm1507_vm7, 1.0, %v5163_v28  ;;  %vm1509_vm13 = vmand %vm1487_vm11, %vm1499_vm12  ;;  %vm1450_vm7 = vcmp.lt.s32.totalorder %v5555_v20, 8 }
 0x1da   : > { %1245 = vmatprep.subr.bf16.mxu0 %v4590_v32 }
 0x1dd   : > { %1246 = vmatpush1.bf16.msra.mxu0 %v4588_v33 }
 0x1de   : > { %1247 = vmatprep.subr.bf16.mxu0 %v4593_v34  ;;  %v5585_v34 = vsel %vm1508_vm10, 1.0, %v5163_v28 }
 0x1e1   : > { %1248 = vmatpush1.bf16.msra.mxu0 %v4591_v35  ;;  %v1477_v35 = vadd.s32 32, %v5518_v53 }
 0x1e2   : > { %1249 = vmatprep.subr.bf16.mxu0 %v4596_v36  ;;  %v5589_v36 = vsel %vm1509_vm13, 1.0, %v5163_v28 }
 0x1e3   : > { %vm1488_vm14 = vcmp.ge.s32.totalorder %v1477_v35, %v5559_v24  ;;  %vm1500_vm15 = vcmp.lt.s32.totalorder %v1477_v35, %v5561_v25 }
 0x1e4   : > { %vm1510_vm1 = vmand %vm1488_vm14, %vm1500_vm15  ;;  %vm1449_vm14 = vcmp.lt.s32.totalorder %v5555_v20, 4 }
 0x1e5   : > { %1250 = vmatpush1.bf16.msra.mxu0 %v4594_v37  ;;  %v1478_v37 = vadd.s32 40, %v5518_v53  ;;  %v5598_v43 = vsel %vm1510_vm1, 1.0, %v5163_v28  ;;  %vm1492_vm1 = vcmp.ge.s32.totalorder %v1481_v51, %v5559_v24 }
 0x1e6   : > { %1251 = vmatprep.subr.bf16.mxu0 %v4599_v38 }
 0x1e7   : > { %vm1489_vm2 = vcmp.ge.s32.totalorder %v1478_v37, %v5559_v24  ;;  %vm1501_vm3 = vcmp.lt.s32.totalorder %v1478_v37, %v5561_v25 }
 0x1e8   : > { %vm1511_vm5 = vmand %vm1489_vm2, %vm1501_vm3  ;;  %vm1504_vm2 = vcmp.lt.s32.totalorder %v1481_v51, %v5561_v25 }
 0x1e9   : > { %1252 = vmatpush1.bf16.msra.mxu0 %v4597_v39  ;;  %v5602_v46 = vsel %vm1511_vm5, 1.0, %v5163_v28  ;;  %vm1514_vm3 = vmand %vm1492_vm1, %vm1504_vm2  ;;  %vm1505_vm5 = vcmp.lt.s32.totalorder %v1482_v58, %v5561_v25  ;;  %vm3140_vm2 = vcmp.lt.s32.totalorder %v5555_v20, 16 }
 0x1ea   : > { %1253 = vmatprep.subr.bf16.mxu0 %v4602_v41 }
 0x1ed   : > { %1254 = vmatpush1.bf16.msra.mxu0 %v4600_v42 }
 0x1ee   : > { %1255 = vmatprep.subr.bf16.mxu0 %v4605_v44  ;;  %v1479_v44 = vadd.s32 48, %v5518_v53 }
 0x1f0   : > { %vm1490_vm8 = vcmp.ge.s32.totalorder %v1479_v44, %v5559_v24  ;;  %vm1502_vm9 = vcmp.lt.s32.totalorder %v1479_v44, %v5561_v25 }
 0x1f1   : > { %1256 = vmatpush1.bf16.msra.mxu0 %v4603_v45  ;;  %vm1512_vm11 = vmand %vm1490_vm8, %vm1502_vm9  ;;  %vm1979_vm8 = vcmask 1041408  }
 0x1f2   : > { %1257 = vmatprep.subr.bf16.mxu0 %v4608_v47  ;;  %v1480_v47 = vadd.s32 56, %v5518_v53 }
 0x1f4   : > { %vm1491_vm12 = vcmp.ge.s32.totalorder %v1480_v47, %v5559_v24  ;;  %vm1503_vm13 = vcmp.lt.s32.totalorder %v1480_v47, %v5561_v25  ;;  %v4676_v25 = vld [vmem:[%s6757_s10 + $0x108] ss:$16 sps:$4 sm:$0xff]  }
 0x1f5   : > { %1258 = vmatpush1.bf16.msra.mxu0 %v4606_v48  ;;  %vm1513_vm15 = vmand %vm1491_vm12, %vm1503_vm13 }
 0x1f6   : > { %v4009_v55 = vsel %vm1513_vm15, 1.0, %v5163_v28 }
 0x1f8   : > { %1260 = vmatmul.mubr.bf16.vlgmr.msra.gmra.mrb[0].mxu0 %v788_v50  ;;  %v4008_v50 = vsel %vm1512_vm11, 1.0, %v5163_v28 }
 0x2cb   : > { %v1261_v62 = vpop.f32.mrb[0].mxu0 }
 0x2cc   : > { %v4379_v63 = vadd.f32 %v1261_v62, %v859_v60  ;;  %v1263_v2 = vpop.f32.mrb[1].mxu0 }
 0x2cd   : > { %v4380_v3 = vadd.f32 %v1263_v2, %v863_v61  ;;  %v1265_v4 = vpop.f32.mrb[2].mxu0  ;;  %v4010_v61 = vsel %vm1514_vm3, 1.0, %v5163_v28  ;;  %v4839_v2 = vld [vmem:[%s556_s14] sm:$0xff]  ;;  %s6830_s14 = sld [smem:[#allocation36_spill]] }
 0x2ce   : > { %v1268_v5 = vmax.f32 %v4379_v63, 0.0  ;;  %v1266_v6 = vpop.f32.mrb[3].mxu0 }
 0x2cf   : > { %v1269_v7 = vmax.f32 %v4380_v3, 0.0  ;;  %v4042_v3 = vld.sshfl [vmem:[%s6755_s8] sm:$0x33 pattern:$0x76325410] }
 0x2d0   : > { %v1270_v9 = vpack.c.bf16 %v1268_v5, %v1268_v5  ;;  %v1962_v4 = vcombine.high %v4042_v3, %v4042_v3  ;;  %v1981_v5 = vsel %vm1979_vm8, %v4042_v3, 0  ;;  %v4627_v6 = vld [vmem:[%s6757_s10 + $0x4] ss:$16 sps:$4 sm:$0xff]  }
 0x2d1   : > { %v1271_v8 = vpack.c.bf16 %v1269_v7, %v1269_v7  ;;  %v4628_v7 = vld [vmem:[%s6757_s10 + $0x8] ss:$16 sps:$4 sm:$0xff]  }
 0x2d3   : > { %1439 = vmatprep.mubr.bf16.mxu1 %v1271_v8  ;;  %v4630_v8 = vld [vmem:[%s6757_s10 + $0xc] ss:$16 sps:$4 sm:$0xff]  }
 0x2d4   : > { %1440 = vmatmul.mubr.bf16.vlgmr.msra.gmra.mrb[8].mxu1 %v1270_v9  ;;  %v4636_v9 = vld [vmem:[%s6757_s10 + $0x2c] ss:$16 sps:$4 sm:$0xff]   ;;  %2588 = vmatprep.subr.bf16.mxu0 %v4630_v8 }
 0x2d5   : > { %4314 = vmatprep.mubr.msk.f32.mxu1 %vm1540_vm6, %v5572_v29  ;;  %2589 = vmatpush1.bf16.msra.mxu0 %v4628_v7 }
 0x2d6   : > { %2590 = vmatprep.subr.bf16.mxu0 %v4636_v9 }
 0x3a7   : > { %v4181_v10 = vpop.f32.mrb[8].mxu1 }
 0x3a8   : > { %v4182_v12 = vpop.f32.mrb[9].mxu1 }
 0x3a9   : > { %v4183_v13 = vadd.f32 %v4182_v12, %v4181_v10  ;;  %v4184_v14 = vpop.f32.mrb[10].mxu1  ;;  %v4634_v10 = vld [vmem:[%s6757_s10 + $0x28] ss:$16 sps:$4 sm:$0xff]  }
 0x3aa   : > { %v4185_v15 = vpop.f32.mrb[11].mxu1  ;;  %2591 = vmatpush1.bf16.msra.mxu0 %v4634_v10  ;;  %v4640_v12 = vld [vmem:[%s6757_s10 + $0x48] ss:$16 sps:$4 sm:$0xff]   ;;  %v4625_v10 = vld [vmem:[%s6757_s10] ss:$16 sps:$4 sm:$0xff]  }
 0x3ab   : > { %v5551_v16 = vadd.f32 %v4183_v13, %v3985_v11  ;;  %v4642_v11 = vld [vmem:[%s6757_s10 + $0x4c] ss:$16 sps:$4 sm:$0xff]   ;;  %v4646_v14 = vld [vmem:[%s6757_s10 + $0x68] ss:$16 sps:$4 sm:$0xff]  }
 0x3ac   : > { %2592 = vmatprep.subr.bf16.mxu0 %v4642_v11  ;;  %v4648_v13 = vld [vmem:[%s6757_s10 + $0x6c] ss:$16 sps:$4 sm:$0xff]  }
 0x3ad   : > { %v1454_v17 = vand.u32 2147483647, %v5551_v16  ;;  %v1451_v42 = vmax.f32 %v5551_v16, 0.0  ;;  %vm1452_vm10 = vcmp.ne.f32.partialorder %v5551_v16, %v5551_v16  ;;  %v3622_v60 = vmul.f32 %v5551_v16, %v5551_v16  ;;  %v4654_v15 = vld [vmem:[%s6757_s10 + $0x8c] ss:$16 sps:$4 sm:$0xff]  }
 0x3ae   : > { %2593 = vmatpush1.bf16.msra.mxu0 %v4640_v12 }
 0x3af   : > { %v1455_v18 = vsub.f32 0.0, %v1454_v17  ;;  %2594 = vmatprep.subr.bf16.mxu0 %v4648_v13  ;;  %v4660_v17 = vld [vmem:[%s6757_s10 + $0xac] ss:$16 sps:$4 sm:$0xff]  }
 0x3b1   : > { %v1456_v19 = vmul.f32 1.442695, %v1455_v18  ;;  %v4658_v18 = vld [vmem:[%s6757_s10 + $0xa8] ss:$16 sps:$4 sm:$0xff]  }
 0x3b2   : > { %2595 = vmatpush1.bf16.msra.mxu0 %v4646_v14 }
 0x3b3   : > { %4753 = vpow2.f32 %v1456_v19  ;;  %2596 = vmatprep.subr.bf16.mxu0 %v4654_v15  ;;  %v4666_v19 = vld [vmem:[%s6757_s10 + $0xcc] ss:$16 sps:$4 sm:$0xff]   ;;  %v4633_v15 = vld [vmem:[%s6757_s10 + $0x24] ss:$16 sps:$4 sm:$0xff]  }
 0x3bd   : > { %v4754_v21 = vpop.eup %4753 }
 0x3be   : > { %v1458_v22 = vadd.f32 1.0, %v4754_v21  ;;  %v1461_v27 = vmul.f32 -0.5, %v4754_v21  ;;  %v1464_v33 = vand.u32 2147483647, %v4754_v21 }
 0x3c0   : > { %4755 = vlog2.f32 %v1458_v22  ;;  %v1462_v32 = vadd.f32 1.0, %v1461_v27  ;;  %vm1465_vm4 = vcmp.lt.f32.partialorder %v1464_v33, 0.0004427343  ;;  %v4672_v22 = vld [vmem:[%s6757_s10 + $0xec] ss:$16 sps:$4 sm:$0xff]  }
 0x3c1   : > { %v4682_v27 = vld [vmem:[%s6757_s10 + $0x128] ss:$16 sps:$4 sm:$0xff]   ;;  %v4708_v33 = vld [vmem:[%s6757_s10 + $0x1ac] ss:$16 sps:$4 sm:$0xff]  }
 0x3c2   : > { %v1463_v41 = vmul.f32 %v4754_v21, %v1462_v32  ;;  %v4664_v21 = vld [vmem:[%s6757_s10 + $0xc8] ss:$16 sps:$4 sm:$0xff]  }
 0x3c3   : > { %v4700_v32 = vld [vmem:[%s6757_s10 + $0x188] ss:$16 sps:$4 sm:$0xff]  }
 0x3ca   : > { %v4756_v38 = vpop.eup %4755 }
 0x3cb   : > { %v1460_v39 = vmul.f32 0.6931472, %v4756_v38 }
 0x3cd   : > { %v1466_v45 = vsel %vm1465_vm4, %v1463_v41, %v1460_v39  ;;  %vm1493_vm4 = vcmp.ge.s32.totalorder %v1482_v58, %v5559_v24  ;;  %v4678_v24 = vld [vmem:[%s6757_s10 + $0x10c] ss:$16 sps:$4 sm:$0xff]  }
 0x3ce   : > { %v1467_v48 = vadd.f32 %v1466_v45, %v1451_v42 }
 0x3d0   : > { %v5614_v49 = vsel %vm1452_vm10, %v5551_v16, %v1467_v48 }
 0x3d1   : > { %1537 = vrot.lane.b32.xlu0 %v5614_v49, %s6774_s26  ;;  %v1469_v57 = vsel %vm1450_vm7, %v5614_v49, 0.0  ;;  %vm1515_vm7 = vmand %vm1493_vm4, %vm1505_vm5 }
 0x3d2   : > { %v1470_v59 = vsel %vm1449_vm14, %v5551_v16, %v1469_v57  ;;  %v4011_v62 = vsel %vm1515_vm7, 1.0, %v5163_v28  ;;  %v4688_v28 = vld [vmem:[%s6757_s10 + $0x148] ss:$16 sps:$4 sm:$0xff]  }
 0x3d3   : > { %1471 = vst [vmem:[%s6773_s1] sm:$0xff] %v1470_v59  ;;  %s640_s1 = smul.u32 10, %s5279_s27 }
 0x3d5   : > { %3624 = vrot.lane.b32.xlu0 %v3622_v60, %s5165_s25  ;;  %p641_p7 = scmp.lt.s32.totalorder %s640_s1, 19  ;;  %s5167_s25 = smov 32  }
 0x3d7   : > { %s6844_s1 = smov (!%p641_p7, %s640_s1), 19 }
 0x3d8   : > { %s3914_s18 = sshll.u32 %s6844_s1, 3  ;;  %s4385_s1 = smul.u32 80, %s5488_s2 }
 0x3d9   : > { %s5798_s0 = scalar_lea.vmem %s6812_s28, %s3914_s18  ;;  %s6817_s18 = sld [smem:[#allocation33_spill]] }
 0x3da   : > { %v1802_v59 = vld [vmem:[%s5798_s0 + $0x8] sm:$0xff]  ;;  %v1804_v3 = vld [vmem:[%s5798_s0 + $0x18] sm:$0xff]  ;;  %s6818_s28 = sld [smem:[#allocation35_spill]]  ;;  %s6564_s26 = scalar_lea.vmem [#allocation14], %s4385_s1 }
 0x3db   : > { %v1806_v12 = vld [vmem:[%s5798_s0 + $0x28] sm:$0xff]  ;;  %s3652_s1 = scalar_lea.sflag [#allocation4], %s5488_s2 }
 0x443   : > { %v1538_v63 = vpop.permute.xlu0 %1537 }
 0x444   : > { %4312 = vmatprep.subr.mxu1 %v1538_v63 }
 0x445   : > { %4313 = vmatpush3.msra.mxu1 %v1538_v63 }
 0x446   : > { %4315 = vmatmul.mubr.msk.f32.vlgmr.msra.gmra.mrb[12].mxu1 %vm1540_vm6, %v5578_v31  ;;  %4329 = vmatprep.subr.mxu1 %v4839_v2 }
 0x447   : > { %4330 = vmatpush3.msra.mxu1 %v4839_v2  ;;  %4317 = vmatprep.mubr.msk.f32.mxu1 %vm1540_vm6, %v5585_v34 }
 0x448   : > { %4346 = vmatprep.subr.mxu1 %v5551_v16 }
 0x44a   : > { %4318 = vmatmul.mubr.msk.f32.gmra.mrb[14].mxu1 %vm1540_vm6, %v5589_v36 }
 0x44b   : > { %4320 = vmatprep.mubr.msk.f32.mxu1 %vm1540_vm6, %v5598_v43 }
 0x44e   : > { %4321 = vmatmul.mubr.msk.f32.gmra.mrb[16].mxu1 %vm1540_vm6, %v5602_v46 }
 0x44f   : > { %4323 = vmatprep.mubr.msk.f32.mxu1 %vm1540_vm6, %v4008_v50 }
 0x452   : > { %4324 = vmatmul.mubr.msk.f32.gmra.mrb[18].mxu1 %vm1540_vm6, %v4009_v55 }
 0x453   : > { %4326 = vmatprep.mubr.msk.f32.mxu1 %vm1540_vm6, %v4010_v61 }
 0x456   : > { %4327 = vmatmul.mubr.msk.f32.gmra.mrb[20].mxu1 %vm1540_vm6, %v4011_v62 }
 0x457   : > { %4331 = vmatprep.mubr.msk.f32.mxu1 %vm1540_vm6, %v5572_v29 }
 0x45a   : > { %4332 = vmatmul.mubr.msk.f32.vlgmr.msra.gmra.mrb[22].mxu1 %vm1540_vm6, %v5578_v31 }
 0x45b   : > { %4347 = vmatpush3.msra.mxu1 %v5551_v16  ;;  %4334 = vmatprep.mubr.msk.f32.mxu1 %vm1540_vm6, %v5585_v34  ;;  %v4652_v16 = vld [vmem:[%s6757_s10 + $0x88] ss:$16 sps:$4 sm:$0xff]  }
 0x45c   : > { %4043 = vmatprep.subr.msk.bf16.mxu1 %vm1979_vm8, %v1962_v4  ;;  %2597 = vmatpush1.bf16.msra.mxu0 %v4652_v16  ;;  %v1805_v16 = vld [vmem:[%s5798_s0 + $0x20] sm:$0xff] }
 0x45d   : > { %2598 = vmatprep.subr.bf16.mxu0 %v4660_v17 }
 0x45e   : > { %4335 = vmatmul.mubr.msk.f32.gmra.mrb[24].mxu1 %vm1540_vm6, %v5589_v36 }
 0x45f   : > { %4337 = vmatprep.mubr.msk.f32.mxu1 %vm1540_vm6, %v5598_v43 }
 0x460   : > { %2599 = vmatpush1.bf16.msra.mxu0 %v4658_v18 }
 0x461   : > { %2600 = vmatprep.subr.bf16.mxu0 %v4666_v19 }
 0x462   : > { %4338 = vmatmul.mubr.msk.f32.gmra.mrb[26].mxu1 %vm1540_vm6, %v5602_v46 }
 0x463   : > { %4340 = vmatprep.mubr.msk.f32.mxu1 %vm1540_vm6, %v4008_v50 }
 0x464   : > { %2601 = vmatpush1.bf16.msra.mxu0 %v4664_v21 }
 0x465   : > { %2602 = vmatprep.subr.bf16.mxu0 %v4672_v22  ;;  %v4631_v22 = vld [vmem:[%s6757_s10 + $0x20] ss:$16 sps:$4 sm:$0xff]  }
 0x466   : > { %4341 = vmatmul.mubr.msk.f32.gmra.mrb[28].mxu1 %vm1540_vm6, %v4009_v55 }
 0x467   : > { %4343 = vmatprep.mubr.msk.f32.mxu1 %vm1540_vm6, %v4010_v61 }
 0x468   : > { %2603 = vmatpush1.bf16.msra.mxu0 %v4670_v23 }
 0x469   : > { %2604 = vmatprep.subr.bf16.mxu0 %v4678_v24  ;;  %v1808_v24 = vld [vmem:[%s5798_s0 + $0x38] sm:$0xff] }
 0x46a   : > { %4344 = vmatmul.mubr.msk.f32.gmra.mrb[30].mxu1 %vm1540_vm6, %v4011_v62 }
 0x46b   : > { %4348 = vmatprep.mubr.msk.f32.mxu1 %vm1540_vm6, %v5572_v29  ;;  %v4696_v29 = vld [vmem:[%s6757_s10 + $0x16c] ss:$16 sps:$4 sm:$0xff]  }
 0x46c   : > { %2605 = vmatpush1.bf16.msra.mxu0 %v4676_v25 }
 0x46d   : > { %2606 = vmatprep.subr.bf16.mxu0 %v4684_v26  ;;  %v4639_v26 = vld [vmem:[%s6757_s10 + $0x44] ss:$16 sps:$4 sm:$0xff]  }
 0x46e   : > { %4349 = vmatmul.mubr.msk.f32.vlgmr.msra.gmra.mrb[32].mxu1 %vm1540_vm6, %v5578_v31  ;;  %v4702_v31 = vld [vmem:[%s6757_s10 + $0x18c] ss:$16 sps:$4 sm:$0xff]  }
 0x46f   : > { %4351 = vmatprep.mubr.msk.f32.mxu1 %vm1540_vm6, %v5585_v34  ;;  %1987 = vmatpush1.bf16.msra.mxu1 %v1981_v5  ;;  %v1803_v5 = vld [vmem:[%s5798_s0 + $0x10] sm:$0xff] }
 0x470   : > { %2505 = vmatprep.subr.bf16.mxu1 %v4627_v6  ;;  %2607 = vmatpush1.bf16.msra.mxu0 %v4682_v27  ;;  %v1807_v27 = vld [vmem:[%s5798_s0 + $0x30] sm:$0xff] }
 0x471   : > { %2608 = vmatprep.subr.bf16.mxu0 %v4690_v52 }
 0x472   : > { %4352 = vmatmul.mubr.msk.f32.gmra.mrb[34].mxu1 %vm1540_vm6, %v5589_v36  ;;  %v4706_v36 = vld [vmem:[%s6757_s10 + $0x1a8] ss:$16 sps:$4 sm:$0xff]  }
 0x473   : > { %4354 = vmatprep.mubr.msk.f32.mxu1 %vm1540_vm6, %v5598_v43 }
 0x474   : > { %2609 = vmatpush1.bf16.msra.mxu0 %v4688_v28 }
 0x475   : > { %2610 = vmatprep.subr.bf16.mxu0 %v4696_v29 }
 0x476   : > { %4355 = vmatmul.mubr.msk.f32.gmra.mrb[36].mxu1 %vm1540_vm6, %v5602_v46 }
 0x477   : > { %4357 = vmatprep.mubr.msk.f32.mxu1 %vm1540_vm6, %v4008_v50 }
 0x478   : > { %2611 = vmatpush1.bf16.msra.mxu0 %v4694_v30 }
 0x479   : > { %2612 = vmatprep.subr.bf16.mxu0 %v4702_v31  ;;  %v4637_v31 = vld [vmem:[%s6757_s10 + $0x40] ss:$16 sps:$4 sm:$0xff]  }
 0x47a   : > { %4358 = vmatmul.mubr.msk.f32.gmra.mrb[38].mxu1 %vm1540_vm6, %v4009_v55 }
 0x47b   : > { %4360 = vmatprep.mubr.msk.f32.mxu1 %vm1540_vm6, %v4010_v61  ;;  %v1801_v61 = vld [vmem:[%s5798_s0] sm:$0xff] }
 0x47c   : > { %2613 = vmatpush1.bf16.msra.mxu0 %v4700_v32 }
 0x47d   : > { %2614 = vmatprep.subr.bf16.mxu0 %v4708_v33  ;;  %v1810_v33 = vld [vmem:[%s5798_s0 + $0x48] sm:$0xff] }
 0x47e   : > { %4361 = vmatmul.mubr.msk.f32.gmra.mrb[40].mxu1 %vm1540_vm6, %v4011_v62  ;;  %vm1963_vm6 = vcmask 31744  }
 0x47f   : > { %2018 = vmatprep.mubr.bf16.mxu1 %v5162_v0 }
 0x480   : > { %2615 = vmatpush1.bf16.msra.mxu0 %v4706_v36  ;;  %v4645_v36 = vld [vmem:[%s6757_s10 + $0x64] ss:$16 sps:$4 sm:$0xff]  }
 0x519   : > { %v4316_v34 = vpop.f32.mrb[12].mxu1 }
 0x51a   : > { %v1637_v35 = vpop.f32.mrb[13].mxu1  ;;  %v1812_v63 = vmul.f32 %v4316_v34, %v1802_v59 }
 0x51b   : > { %v1811_v2 = vmul.f32 %v1801_v61, %v1637_v35 }
 0x51d   : > { %v4319_v37 = vpop.f32.mrb[14].mxu1 }
 0x51e   : > { %v1647_v38 = vpop.f32.mrb[15].mxu1  ;;  %v1814_v9 = vmul.f32 %v4319_v37, %v1804_v3  ;;  %v1809_v37 = vld [vmem:[%s5798_s0 + $0x40] sm:$0xff]  ;;  %s4159_s0 = sshll.u32 %s5279_s27, 7 }
 0x51f   : > { %v1813_v11 = vmul.f32 %v1803_v5, %v1647_v38 }
 0x521   : > { %v4322_v39 = vpop.f32.mrb[16].mxu1 }
 0x522   : > { %v1657_v41 = vpop.f32.mrb[17].mxu1  ;;  %v1816_v21 = vmul.f32 %v4322_v39, %v1806_v12  ;;  %v4669_v12 = vld [vmem:[%s6757_s10 + $0xe4] ss:$16 sps:$4 sm:$0xff]  }
 0x523   : > { %v1815_v23 = vmul.f32 %v1805_v16, %v1657_v41 }
 0x525   : > { %v4325_v42 = vpop.f32.mrb[18].mxu1 }
 0x526   : > { %v1667_v43 = vpop.f32.mrb[19].mxu1  ;;  %v1818_v30 = vmul.f32 %v4325_v42, %v1808_v24  ;;  %v4691_v24 = vld [vmem:[%s6757_s10 + $0x160] ss:$16 sps:$4 sm:$0xff]  }
 0x527   : > { %v1817_v32 = vmul.f32 %v1807_v27, %v1667_v43  ;;  %v4643_v43 = vld [vmem:[%s6757_s10 + $0x60] ss:$16 sps:$4 sm:$0xff]   ;;  %v4705_v27 = vld [vmem:[%s6757_s10 + $0x1a4] ss:$16 sps:$4 sm:$0xff]  }
 0x529   : > { %v5776_v44 = vpop.f32.mrb[20].mxu1 }
 0x52a   : > { %v5778_v45 = vpop.f32.mrb[21].mxu1  ;;  %v1820_v42 = vmul.f32 %v5776_v44, %v1810_v33  ;;  %v4649_v44 = vld [vmem:[%s6757_s10 + $0x80] ss:$16 sps:$4 sm:$0xff]   ;;  %v4712_v33 = vld [vmem:[%s6757_s10 + $0x1c8] ss:$16 sps:$4 sm:$0xff]  }
 0x52b   : > { %v1819_v59 = vmul.f32 %v1809_v37, %v5778_v45  ;;  %v4657_v45 = vld [vmem:[%s6757_s10 + $0xa4] ss:$16 sps:$4 sm:$0xff]   ;;  %v4718_v37 = vld [vmem:[%s6757_s10 + $0x1e8] ss:$16 sps:$4 sm:$0xff]  }
 0x52d   : > { %v5781_v46 = vpop.f32.mrb[22].mxu1 }
 0x52e   : > { %v5783_v47 = vpop.f32.mrb[23].mxu1 }
 0x531   : > { %v5785_v48 = vpop.f32.mrb[24].mxu1 }
 0x532   : > { %v5787_v50 = vpop.f32.mrb[25].mxu1 }
 0x535   : > { %v5789_v51 = vpop.f32.mrb[26].mxu1 }
 0x536   : > { %v5791_v57 = vpop.f32.mrb[27].mxu1 }
 0x539   : > { %v5793_v55 = vpop.f32.mrb[28].mxu1 }
 0x53a   : > { %v5800_v58 = vpop.f32.mrb[29].mxu1 }
 0x53d   : > { %v5803_v60 = vpop.f32.mrb[30].mxu1 }
 0x53e   : > { %v5806_v62 = vpop.f32.mrb[31].mxu1 }
 0x541   : > { %v4350_v4 = vpop.f32.mrb[32].mxu1 }
 0x542   : > { %v5810_v6 = vadd.f32 %v4350_v4, %v1812_v63  ;;  %v1887_v7 = vpop.f32.mrb[33].mxu1  ;;  %v4651_v63 = vld [vmem:[%s6757_s10 + $0x84] ss:$16 sps:$4 sm:$0xff]  }
 0x543   : > { %v5812_v8 = vadd.f32 %v1887_v7, %v1811_v2  ;;  %v4655_v7 = vld [vmem:[%s6757_s10 + $0xa0] ss:$16 sps:$4 sm:$0xff]  }
 0x545   : > { %v1936_v13 = vpack.c.bf16 %v5810_v6, %v5812_v8  ;;  %v4353_v14 = vpop.f32.mrb[34].mxu1 }
 0x546   : > { %v5824_v17 = vadd.f32 %v4353_v14, %v1814_v9  ;;  %v1897_v18 = vpop.f32.mrb[35].mxu1  ;;  %v4663_v9 = vld [vmem:[%s6757_s10 + $0xc4] ss:$16 sps:$4 sm:$0xff]  }
 0x547   : > { %v5826_v19 = vadd.f32 %v1897_v18, %v1813_v11  ;;  %4044 = vmatmul.mubr.msk.bf16.vlgmr.msra.gmra.mrb[44].mxu1 %vm1963_vm6, %v1936_v13  ;;  %v4667_v13 = vld [vmem:[%s6757_s10 + $0xe0] ss:$16 sps:$4 sm:$0xff]   ;;  %v4675_v14 = vld [vmem:[%s6757_s10 + $0x104] ss:$16 sps:$4 sm:$0xff]  }
 0x548   : > { %2028 = vmatprep.mubr.bf16.mxu1 %v5162_v0  ;;  %2506 = vmatpush1.bf16.msra.mxu1 %v4625_v10  ;;  %v4661_v10 = vld [vmem:[%s6757_s10 + $0xc0] ss:$16 sps:$4 sm:$0xff]  }
 0x549   : > { %v4356_v25 = vpop.f32.mrb[36].mxu1  ;;  %2507 = vmatprep.subr.bf16.mxu1 %v4633_v15  ;;  %v1937_v34 = vpack.c.bf16 %v5824_v17, %v5826_v19  ;;  %v4673_v15 = vld [vmem:[%s6757_s10 + $0x100] ss:$16 sps:$4 sm:$0xff]  }
 0x54a   : > { %v5838_v52 = vadd.f32 %v4356_v25, %v1816_v21  ;;  %v1907_v28 = vpop.f32.mrb[37].mxu1  ;;  %v4679_v18 = vld [vmem:[%s6757_s10 + $0x120] ss:$16 sps:$4 sm:$0xff]   ;;  %v4687_v21 = vld [vmem:[%s6757_s10 + $0x144] ss:$16 sps:$4 sm:$0xff]  }
 0x54b   : > { %v5840_v29 = vadd.f32 %v1907_v28, %v1815_v23  ;;  %v4693_v23 = vld [vmem:[%s6757_s10 + $0x164] ss:$16 sps:$4 sm:$0xff]   ;;  %v4703_v28 = vld [vmem:[%s6757_s10 + $0x1a0] ss:$16 sps:$4 sm:$0xff]  }
 0x54c   : > { %2508 = vmatpush1.bf16.msra.mxu1 %v4631_v22  ;;  %v4685_v22 = vld [vmem:[%s6757_s10 + $0x140] ss:$16 sps:$4 sm:$0xff]   ;;  %v4699_v25 = vld [vmem:[%s6757_s10 + $0x184] ss:$16 sps:$4 sm:$0xff]  }
 0x54d   : > { %6813 = vst [vmem:[#allocation24_spill] sm:$0xff] %v5840_v29  ;;  %v4359_v35 = vpop.f32.mrb[38].mxu1  ;;  %2509 = vmatprep.subr.bf16.mxu1 %v4639_v26  ;;  %v1938_v5 = vpack.c.bf16 %v5838_v52, %v5840_v29  ;;  %v4697_v26 = vld [vmem:[%s6757_s10 + $0x180] ss:$16 sps:$4 sm:$0xff]  }
 0x54e   : > { %v5852_v38 = vadd.f32 %v4359_v35, %v1818_v30  ;;  %v1917_v39 = vpop.f32.mrb[39].mxu1  ;;  %v4711_v30 = vld [vmem:[%s6757_s10 + $0x1c4] ss:$16 sps:$4 sm:$0xff]   ;;  %v4720_v35 = vld [vmem:[%s6757_s10 + $0x1ec] ss:$16 sps:$4 sm:$0xff]  }
 0x54f   : > { %v5854_v41 = vadd.f32 %v1917_v39, %v1817_v32  ;;  %4045 = vmatmul.mubr.msk.bf16.gmra.mrb[48].mxu1 %vm1963_vm6, %v1937_v34  ;;  %v4709_v32 = vld [vmem:[%s6757_s10 + $0x1c0] ss:$16 sps:$4 sm:$0xff]   ;;  %v4717_v34 = vld [vmem:[%s6757_s10 + $0x1e4] ss:$16 sps:$4 sm:$0xff]  }
 0x550   : > { %2038 = vmatprep.mubr.bf16.mxu1 %v5162_v0  ;;  %2510 = vmatpush1.bf16.msra.mxu1 %v4637_v31  ;;  %v4714_v31 = vld [vmem:[%s6757_s10 + $0x1cc] ss:$16 sps:$4 sm:$0xff]   ;;  %v4721_v39 = vld [vmem:[%s6816_s20 + $0x40] sm:$0xff]  }
 0x551   : > { %6814 = vst [vmem:[#allocation25_spill] sm:$0xff] %v5854_v41  ;;  %v4362_v61 = vpop.f32.mrb[40].mxu1  ;;  %2511 = vmatprep.subr.bf16.mxu1 %v4645_v36  ;;  %v1939_v11 = vpack.c.bf16 %v5852_v38, %v5854_v41  ;;  %2616 = vmatprep.subr.bf16.mxu0 %v4714_v31  ;;  %v4715_v36 = vld [vmem:[%s6757_s10 + $0x1e0] ss:$16 sps:$4 sm:$0xff]  }
 0x552   : > { %v5866_v2 = vadd.f32 %v4362_v61, %v1820_v42  ;;  %v1927_v3 = vpop.f32.mrb[41].mxu1  ;;  %2617 = vmatpush1.bf16.msra.mxu0 %v4712_v33  ;;  %v5968_v42 = vld [vmem:[%s6816_s20 + $0xc0] sm:$0xff]   ;;  %v6008_v33 = vld [vmem:[%s6816_s20 + $0x88] sm:$0xff]  }
 0x553   : > { %v5868_v4 = vadd.f32 %v1927_v3, %v1819_v59  ;;  %2618 = vmatprep.subr.bf16.mxu0 %v4720_v35 }
 0x554   : > { %2512 = vmatpush1.bf16.msra.mxu1 %v4643_v43  ;;  %v1942_v43 = vld [vmem:[#allocation11] sm:$0x3] }
 0x555   : > { %6815 = vst [vmem:[#allocation26_spill] sm:$0xff] %v5868_v4  ;;  %2513 = vmatprep.subr.bf16.mxu1 %v4651_v63  ;;  %v1940_v16 = vpack.c.bf16 %v5866_v2, %v5868_v4  ;;  %v5972_v59 = vrot.slane %v1942_v43, %v5521_v54  ;;  %v5975_v61 = vrot.slane %v1942_v43, %v5529_v56 }
 0x556   : > { %2619 = vmatpush1.bf16.msra.mxu0 %v4718_v37  ;;  %v6017_v37 = vld [vmem:[%s6816_s20 + $0xd0] sm:$0xff]  }
 0x557   : > { %4046 = vmatmul.mubr.msk.bf16.gmra.mrb[52].mxu1 %vm1963_vm6, %v1938_v5  ;;  %4266 = vmatprep.subr.bf16.mxu0 %v5968_v42 }
 0x558   : > { %2048 = vmatprep.mubr.bf16.mxu1 %v5162_v0  ;;  %2514 = vmatpush1.bf16.msra.mxu1 %v4649_v44 }
 0x559   : > { %2515 = vmatprep.subr.bf16.mxu1 %v4657_v45 }
 0x55c   : > { %2516 = vmatpush1.bf16.msra.mxu1 %v4655_v7 }
 0x55d   : > { %2517 = vmatprep.subr.bf16.mxu1 %v4663_v9 }
 0x55f   : > { %4047 = vmatmul.mubr.msk.bf16.gmra.mrb[56].mxu1 %vm1963_vm6, %v1939_v11 }
 0x560   : > { %2058 = vmatprep.mubr.bf16.mxu1 %v5162_v0  ;;  %2518 = vmatpush1.bf16.msra.mxu1 %v4661_v10  ;;  %v4681_v0 = vld [vmem:[%s6757_s10 + $0x124] ss:$16 sps:$4 sm:$0xff]  }
 0x561   : > { %2519 = vmatprep.subr.bf16.mxu1 %v4669_v12 }
 0x564   : > { %2520 = vmatpush1.bf16.msra.mxu1 %v4667_v13 }
 0x565   : > { %2521 = vmatprep.subr.bf16.mxu1 %v4675_v14 }
 0x567   : > { %4048 = vmatmul.mubr.msk.bf16.gmra.mrb[60].mxu1 %vm1963_vm6, %v1940_v16 }
 0x568   : > { %2522 = vmatpush1.bf16.msra.mxu1 %v4673_v15 }
 0x569   : > { %2523 = vmatprep.subr.bf16.mxu1 %v4681_v0 }
 0x56c   : > { %2524 = vmatpush1.bf16.msra.mxu1 %v4679_v18  ;;  %v4722_v18 = vld [vmem:[%s6816_s20] sm:$0xff]  }
 0x56d   : > { %2525 = vmatprep.subr.bf16.mxu1 %v4687_v21  ;;  %v5987_v21 = vld [vmem:[%s6816_s20 + $0x80] sm:$0xff]  }
 0x570   : > { %2526 = vmatpush1.bf16.msra.mxu1 %v4685_v22 }
 0x571   : > { %2527 = vmatprep.subr.bf16.mxu1 %v4693_v23 }
 0x574   : > { %2528 = vmatpush1.bf16.msra.mxu1 %v4691_v24  ;;  %v4725_v24 = vld [vmem:[%s6816_s20 + $0x48] sm:$0xff]  }
 0x575   : > { %2529 = vmatprep.subr.bf16.mxu1 %v4699_v25  ;;  %v5996_v25 = vld [vmem:[%s6816_s20 + $0xc8] sm:$0xff]  }
 0x578   : > { %2530 = vmatpush1.bf16.msra.mxu1 %v4697_v26 }
 0x579   : > { %2531 = vmatprep.subr.bf16.mxu1 %v4705_v27 }
 0x57c   : > { %2532 = vmatpush1.bf16.msra.mxu1 %v4703_v28 }
 0x57d   : > { %2533 = vmatprep.subr.bf16.mxu1 %v4711_v30 }
 0x580   : > { %2534 = vmatpush1.bf16.msra.mxu1 %v4709_v32  ;;  %v4726_v32 = vld [vmem:[%s6816_s20 + $0x8] sm:$0xff]  }
 0x581   : > { %2535 = vmatprep.subr.bf16.mxu1 %v4717_v34 }
 0x584   : > { %2536 = vmatpush1.bf16.msra.mxu1 %v4715_v36  ;;  %v4729_v36 = vld [vmem:[%s6816_s20 + $0x50] sm:$0xff]  }
 0x585   : > { %4220 = vmatprep.subr.bf16.mxu1 %v4721_v39 }
 0x61a   : > { %v2020_v63 = vpop.f32.mrb[44].mxu1 }
 0x61b   : > { %v2021_v3 = vadd.f32 %v2020_v63, %v5972_v59  ;;  %v2022_v44 = vpop.f32.mrb[45].mxu1 }
 0x61c   : > { %v2023_v5 = vadd.f32 %v2022_v44, %v5975_v61  ;;  %v2024_v45 = vpop.f32.mrb[46].mxu1 }
 0x61d   : > { %v2025_v7 = vadd.f32 %v2024_v45, %v5972_v59  ;;  %v2026_v9 = vpop.f32.mrb[47].mxu1  ;;  %v2069_v11 = vmax.f32 %v2021_v3, 0.0  ;;  %v6026_v45 = vld [vmem:[%s6816_s20 + $0x90] sm:$0xff]  }
 0x61e   : > { %v2027_v10 = vadd.f32 %v2026_v9, %v5975_v61  ;;  %v2070_v13 = vmax.f32 %v2023_v5, 0.0  ;;  %v4731_v5 = vld [vmem:[%s6816_s20 + $0x10] sm:$0xff]  }
 0x61f   : > { %v2071_v12 = vmax.f32 %v2025_v7, 0.0 }
 0x620   : > { %v2072_v14 = vmax.f32 %v2027_v10, 0.0  ;;  %v4733_v10 = vld [vmem:[%s6816_s20 + $0x58] sm:$0xff]  }
 0x621   : > { %v2089_v15 = vpack.c.bf16 %v2071_v12, %v2069_v11  ;;  %v6036_v11 = vld [vmem:[%s6816_s20 + $0xd8] sm:$0xff]  }
 0x622   : > { %v2090_v16 = vpack.c.bf16 %v2072_v14, %v2070_v13  ;;  %v2030_v0 = vpop.f32.mrb[48].mxu1 }
 0x623   : > { %v2031_v22 = vadd.f32 %v2030_v0, %v5972_v59  ;;  %v2032_v23 = vpop.f32.mrb[49].mxu1  ;;  %v4735_v0 = vld [vmem:[%s6816_s20 + $0x18] sm:$0xff]  }
 0x624   : > { %v2033_v26 = vadd.f32 %v2032_v23, %v5975_v61  ;;  %v2034_v27 = vpop.f32.mrb[50].mxu1  ;;  %2537 = vmatprep.mubr.bf16.mxu1 %v2090_v16  ;;  %2620 = vmatprep.mubr.bf16.mxu0 %v2090_v16 }
 0x625   : > { %v2035_v28 = vadd.f32 %v2034_v27, %v5972_v59  ;;  %v2036_v30 = vpop.f32.mrb[51].mxu1  ;;  %2538 = vmatmul.mubr.bf16.vlgmr.msra.gmra.mrb[64].mxu1 %v2089_v15  ;;  %2621 = vmatmul.mubr.bf16.vlgmr.msra.gmra.mrb[4].mxu0 %v2089_v15  ;;  %v2073_v34 = vmax.f32 %v2031_v22, 0.0 }
 0x626   : > { %v2037_v31 = vadd.f32 %v2036_v30, %v5975_v61  ;;  %4221 = vmatpush3.bf16.msra.mxu1 %v4722_v18  ;;  %4267 = vmatpush3.bf16.msra.mxu0 %v5987_v21  ;;  %v2074_v39 = vmax.f32 %v2033_v26, 0.0  ;;  %v6048_v18 = vld [vmem:[%s6816_s20 + $0x98] sm:$0xff]   ;;  %v6057_v26 = vld [vmem:[%s6816_s20 + $0xe0] sm:$0xff]  }
 0x627   : > { %v2075_v35 = vmax.f32 %v2035_v28, 0.0  ;;  %4222 = vmatprep.subr.bf16.mxu1 %v4725_v24  ;;  %4268 = vmatprep.subr.bf16.mxu0 %v5996_v25  ;;  %v4737_v24 = vld [vmem:[%s6816_s20 + $0x60] sm:$0xff]  }
 0x628   : > { %v2076_v43 = vmax.f32 %v2037_v31, 0.0 }
 0x629   : > { %v2091_v63 = vpack.c.bf16 %v2075_v35, %v2073_v34  ;;  %v4739_v34 = vld [vmem:[%s6816_s20 + $0x20] sm:$0xff]  }
 0x62a   : > { %v2092_v3 = vpack.c.bf16 %v2076_v43, %v2074_v39  ;;  %v2040_v44 = vpop.f32.mrb[52].mxu1  ;;  %4223 = vmatpush3.bf16.msra.mxu1 %v4726_v32  ;;  %4269 = vmatpush3.bf16.msra.mxu0 %v6008_v33  ;;  %v6066_v35 = vld [vmem:[%s6816_s20 + $0xa0] sm:$0xff]   ;;  %v4741_v43 = vld [vmem:[%s6816_s20 + $0x68] sm:$0xff]  }
 0x62b   : > { %v2041_v7 = vadd.f32 %v2040_v44, %v5972_v59  ;;  %v2042_v9 = vpop.f32.mrb[53].mxu1  ;;  %4224 = vmatprep.subr.bf16.mxu1 %v4729_v36  ;;  %4270 = vmatprep.subr.bf16.mxu0 %v6017_v37 }
 0x62c   : > { %v2043_v12 = vadd.f32 %v2042_v9, %v5975_v61  ;;  %v2044_v13 = vpop.f32.mrb[54].mxu1  ;;  %2547 = vmatprep.mubr.bf16.mxu1 %v2092_v3  ;;  %2630 = vmatprep.mubr.bf16.mxu0 %v2092_v3 }
 0x62d   : > { %v2045_v14 = vadd.f32 %v2044_v13, %v5972_v59  ;;  %v2046_v15 = vpop.f32.mrb[55].mxu1  ;;  %2548 = vmatmul.mubr.bf16.gmra.mrb[68].mxu1 %v2091_v63  ;;  %2631 = vmatmul.mubr.bf16.gmra.mrb[8].mxu0 %v2091_v63  ;;  %v2077_v22 = vmax.f32 %v2041_v7, 0.0  ;;  %v6076_v63 = vld [vmem:[%s6816_s20 + $0xe8] sm:$0xff]  }
 0x62e   : > { %v2047_v16 = vadd.f32 %v2046_v15, %v5975_v61  ;;  %4225 = vmatpush3.bf16.msra.mxu1 %v4731_v5  ;;  %4271 = vmatpush3.bf16.msra.mxu0 %v6026_v45  ;;  %v2078_v27 = vmax.f32 %v2043_v12, 0.0 }
 0x62f   : > { %v2079_v23 = vmax.f32 %v2045_v14, 0.0  ;;  %4226 = vmatprep.subr.bf16.mxu1 %v4733_v10  ;;  %4272 = vmatprep.subr.bf16.mxu0 %v6036_v11 }
 0x630   : > { %v2080_v28 = vmax.f32 %v2047_v16, 0.0 }
 0x631   : > { %v2093_v30 = vpack.c.bf16 %v2079_v23, %v2077_v22 }
 0x632   : > { %v2094_v31 = vpack.c.bf16 %v2080_v28, %v2078_v27  ;;  %v2050_v32 = vpop.f32.mrb[56].mxu1  ;;  %4227 = vmatpush3.bf16.msra.mxu1 %v4735_v0  ;;  %4273 = vmatpush3.bf16.msra.mxu0 %v6048_v18 }
 0x633   : > { %v2051_v36 = vadd.f32 %v2050_v32, %v5972_v59  ;;  %v2052_v39 = vpop.f32.mrb[57].mxu1  ;;  %4228 = vmatprep.subr.bf16.mxu1 %v4737_v24  ;;  %4274 = vmatprep.subr.bf16.mxu0 %v6057_v26 }
 0x634   : > { %v2053_v3 = vadd.f32 %v2052_v39, %v5975_v61  ;;  %v2054_v44 = vpop.f32.mrb[58].mxu1  ;;  %2557 = vmatprep.mubr.bf16.mxu1 %v2094_v31  ;;  %2640 = vmatprep.mubr.bf16.mxu0 %v2094_v31 }
 0x635   : > { %v2055_v5 = vadd.f32 %v2054_v44, %v5972_v59  ;;  %v2056_v7 = vpop.f32.mrb[59].mxu1  ;;  %2558 = vmatmul.mubr.bf16.gmra.mrb[72].mxu1 %v2093_v30  ;;  %2641 = vmatmul.mubr.bf16.gmra.mrb[12].mxu0 %v2093_v30  ;;  %v2081_v10 = vmax.f32 %v2051_v36, 0.0  ;;  %v4743_v44 = vld [vmem:[%s6816_s20 + $0x28] sm:$0xff]  }
 0x636   : > { %v2057_v9 = vadd.f32 %v2056_v7, %v5975_v61  ;;  %4229 = vmatpush3.bf16.msra.mxu1 %v4739_v34  ;;  %4275 = vmatpush3.bf16.msra.mxu0 %v6066_v35  ;;  %v2082_v13 = vmax.f32 %v2053_v3, 0.0  ;;  %v4747_v7 = vld [vmem:[%s6816_s20 + $0x30] sm:$0xff]  }
 0x637   : > { %v2083_v12 = vmax.f32 %v2055_v5, 0.0  ;;  %4230 = vmatprep.subr.bf16.mxu1 %v4741_v43  ;;  %4276 = vmatprep.subr.bf16.mxu0 %v6076_v63  ;;  %v6102_v5 = vld [vmem:[%s6816_s20 + $0xf0] sm:$0xff]  }
 0x638   : > { %v2084_v14 = vmax.f32 %v2057_v9, 0.0  ;;  %v6110_v9 = vld [vmem:[%s6816_s20 + $0xb0] sm:$0xff]  }
 0x639   : > { %v2095_v15 = vpack.c.bf16 %v2083_v12, %v2081_v10  ;;  %v4749_v10 = vld [vmem:[%s6816_s20 + $0x78] sm:$0xff]  }
 0x63a   : > { %v2096_v16 = vpack.c.bf16 %v2084_v14, %v2082_v13  ;;  %v2060_v0 = vpop.f32.mrb[60].mxu1  ;;  %4231 = vmatpush3.bf16.msra.mxu1 %v4743_v44  ;;  %v6120_v12 = vld [vmem:[%s6816_s20 + $0xf8] sm:$0xff]  }
 0x63b   : > { %v2061_v22 = vadd.f32 %v2060_v0, %v5972_v59  ;;  %v2062_v23 = vpop.f32.mrb[61].mxu1  ;;  %v4751_v13 = vld [vmem:[%s6816_s20 + $0x38] sm:$0xff]  }
 0x63c   : > { %v2063_v24 = vadd.f32 %v2062_v23, %v5975_v61  ;;  %v2064_v27 = vpop.f32.mrb[62].mxu1  ;;  %2567 = vmatprep.mubr.bf16.mxu1 %v2096_v16  ;;  %2650 = vmatprep.mubr.bf16.mxu0 %v2096_v16  ;;  %v6128_v14 = vld [vmem:[%s6816_s20 + $0xb8] sm:$0xff]  }
 0x63d   : > { %v2065_v28 = vadd.f32 %v2064_v27, %v5972_v59  ;;  %v2066_v30 = vpop.f32.mrb[63].mxu1  ;;  %2568 = vmatmul.mubr.bf16.gmra.mrb[76].mxu1 %v2095_v15  ;;  %2651 = vmatmul.mubr.bf16.gmra.mrb[16].mxu0 %v2095_v15  ;;  %v2085_v32 = vmax.f32 %v2061_v22, 0.0  ;;  %v6093_v59 = vld [vmem:[%s6816_s20 + $0xa8] sm:$0xff]   ;;  %v2163_v15 = vld [vmem:[%s6817_s18] sm:$0xf] }
 0x63e   : > { %v2067_v31 = vadd.f32 %v2066_v30, %v5975_v61  ;;  %v2086_v36 = vmax.f32 %v2063_v24, 0.0  ;;  %4277 = vmatpush3.bf16.msra.mxu0 %v6093_v59  ;;  %v4745_v61 = vld [vmem:[%s6816_s20 + $0x70] sm:$0xff]   ;;  %v6137_v16 = vrot.slane %v2163_v15, %v5521_v54  ;;  %v6141_v0 = vrot.slane %v2163_v15, %v666_v40 }
 0x63f   : > { %v2087_v34 = vmax.f32 %v2065_v28, 0.0  ;;  %4232 = vmatprep.subr.bf16.mxu1 %v4745_v61  ;;  %4278 = vmatprep.subr.bf16.mxu0 %v6102_v5  ;;  %v6144_v22 = vrot.slane %v2163_v15, %v5529_v56  ;;  %v6148_v23 = vrot.slane %v2163_v15, %v670_v1 }
 0x640   : > { %v2088_v39 = vmax.f32 %v2067_v31, 0.0  ;;  %4233 = vmatpush3.bf16.msra.mxu1 %v4747_v7 }
 0x641   : > { %v2097_v43 = vpack.c.bf16 %v2087_v34, %v2085_v32  ;;  %4234 = vmatprep.subr.bf16.mxu1 %v4749_v10 }
 0x642   : > { %v2098_v3 = vpack.c.bf16 %v2088_v39, %v2086_v36  ;;  %4279 = vmatpush3.bf16.msra.mxu0 %v6110_v9 }
 0x643   : > { %4280 = vmatprep.subr.bf16.mxu0 %v6120_v12 }
 0x644   : > { %2577 = vmatprep.mubr.bf16.mxu1 %v2098_v3  ;;  %2660 = vmatprep.mubr.bf16.mxu0 %v2098_v3 }
 0x645   : > { %2578 = vmatmul.mubr.bf16.gmra.mrb[80].mxu1 %v2097_v43  ;;  %2661 = vmatmul.mubr.bf16.gmra.mrb[20].mxu0 %v2097_v43 }
 0x646   : > { %4235 = vmatpush3.bf16.msra.mxu1 %v4751_v13  ;;  %4281 = vmatpush3.bf16.msra.mxu0 %v6128_v14 }
 0x647   : > { %4363 = vmatprep.subr.bf16.mxu1 %v5968_v42 }
 0x6f8   : > { %v2539_v24 = vpop.f32.mrb[64].mxu1  ;;  %v2622_v42 = vpop.f32.mrb[4].mxu0 }
 0x6f9   : > { %v2540_v27 = vadd.f32 %v2539_v24, %v6137_v16  ;;  %v2623_v28 = vadd.f32 %v2622_v42, %v6141_v0  ;;  %v2541_v30 = vpop.f32.mrb[65].mxu1  ;;  %v2624_v54 = vpop.f32.mrb[5].mxu0 }
 0x6fa   : > { %v2542_v31 = vadd.f32 %v2541_v30, %v6144_v22  ;;  %v2625_v40 = vadd.f32 %v2624_v54, %v6148_v23  ;;  %v2543_v32 = vpop.f32.mrb[66].mxu1  ;;  %v2626_v34 = vpop.f32.mrb[6].mxu0 }
 0x6fb   : > { %v2544_v56 = vadd.f32 %v2543_v32, %v6137_v16  ;;  %v2627_v36 = vadd.f32 %v2626_v34, %v6141_v0  ;;  %v2545_v1 = vpop.f32.mrb[67].mxu1  ;;  %v2628_v39 = vpop.f32.mrb[7].mxu0  ;;  %v2671_v44 = vmax.f32 %v2540_v27, 0.0  ;;  %v2673_v61 = vmax.f32 %v2623_v28, 0.0 }
 0x6fc   : > { %v2546_v43 = vadd.f32 %v2545_v1, %v6144_v22  ;;  %v2629_v3 = vadd.f32 %v2628_v39, %v6148_v23  ;;  %v2672_v13 = vmax.f32 %v2542_v31, 0.0  ;;  %v2674_v15 = vmax.f32 %v2625_v40, 0.0 }
 0x6fd   : > { %v2675_v7 = vmax.f32 %v2544_v56, 0.0  ;;  %v2677_v10 = vmax.f32 %v2627_v36, 0.0 }
 0x6fe   : > { %v2676_v24 = vmax.f32 %v2546_v43, 0.0  ;;  %v2678_v42 = vmax.f32 %v2629_v3, 0.0 }
 0x6ff   : > { %v2711_v30 = vpack.c.bf16 %v2675_v7, %v2671_v44  ;;  %v2713_v54 = vpack.c.bf16 %v2677_v10, %v2673_v61 }
 0x700   : > { %v2712_v53 = vpack.c.bf16 %v2676_v24, %v2672_v13  ;;  %v2714_v32 = vpack.c.bf16 %v2678_v42, %v2674_v15  ;;  %v2549_v4 = vpop.f32.mrb[68].mxu1  ;;  %v2632_v34 = vpop.f32.mrb[8].mxu0 }
 0x701   : > { %v2550_v41 = vadd.f32 %v2549_v4, %v6137_v16  ;;  %v2633_v1 = vadd.f32 %v2632_v34, %v6141_v0  ;;  %v2551_v29 = vpop.f32.mrb[69].mxu1  ;;  %v2634_v39 = vpop.f32.mrb[9].mxu0 }
 0x702   : > { %v2552_v27 = vadd.f32 %v2551_v29, %v6144_v22  ;;  %v2635_v28 = vadd.f32 %v2634_v39, %v6148_v23  ;;  %v2553_v31 = vpop.f32.mrb[70].mxu1  ;;  %v2636_v40 = vpop.f32.mrb[10].mxu0  ;;  %3026 = vmatprep.mubr.bf16.mxu1 %v2712_v53  ;;  %3099 = vmatprep.mubr.bf16.mxu0 %v2714_v32 }
 0x703   : > { %v2554_v56 = vadd.f32 %v2553_v31, %v6137_v16  ;;  %v2637_v36 = vadd.f32 %v2636_v40, %v6141_v0  ;;  %v2555_v43 = vpop.f32.mrb[71].mxu1  ;;  %v2638_v3 = vpop.f32.mrb[11].mxu0  ;;  %3027 = vmatmul.mubr.bf16.vlgmr.msra.gmra.mrb[84].mxu1 %v2711_v30  ;;  %3100 = vmatmul.mubr.bf16.vlgmr.msra.gmra.mrb[24].mxu0 %v2713_v54  ;;  %v2679_v29 = vmax.f32 %v2550_v41, 0.0  ;;  %v2681_v61 = vmax.f32 %v2633_v1, 0.0 }
 0x704   : > { %v2556_v4 = vadd.f32 %v2555_v43, %v6144_v22  ;;  %v2639_v44 = vadd.f32 %v2638_v3, %v6148_v23  ;;  %4371 = vmatpush3.bf16.msra.mxu1 %v5987_v21  ;;  %v2680_v53 = vmax.f32 %v2552_v27, 0.0  ;;  %v2682_v13 = vmax.f32 %v2635_v28, 0.0 }
 0x705   : > { %v2683_v7 = vmax.f32 %v2554_v56, 0.0  ;;  %v2685_v10 = vmax.f32 %v2637_v36, 0.0  ;;  %4364 = vmatprep.subr.bf16.mxu1 %v5996_v25 }
 0x706   : > { %v2684_v15 = vmax.f32 %v2556_v4, 0.0  ;;  %v2686_v24 = vmax.f32 %v2639_v44, 0.0 }
 0x707   : > { %v2715_v42 = vpack.c.bf16 %v2683_v7, %v2679_v29  ;;  %v2717_v32 = vpack.c.bf16 %v2685_v10, %v2681_v61 }
 0x708   : > { %v2716_v30 = vpack.c.bf16 %v2684_v15, %v2680_v53  ;;  %v2718_v54 = vpack.c.bf16 %v2686_v24, %v2682_v13  ;;  %v2559_v34 = vpop.f32.mrb[72].mxu1  ;;  %v2642_v39 = vpop.f32.mrb[12].mxu0  ;;  %4372 = vmatpush3.bf16.msra.mxu1 %v6008_v33 }
 0x709   : > { %v2560_v21 = vadd.f32 %v2559_v34, %v6137_v16  ;;  %v2643_v41 = vadd.f32 %v2642_v39, %v6141_v0  ;;  %v2561_v1 = vpop.f32.mrb[73].mxu1  ;;  %v2644_v31 = vpop.f32.mrb[13].mxu0  ;;  %4365 = vmatprep.subr.bf16.mxu1 %v6017_v37 }
 0x70a   : > { %v2562_v25 = vadd.f32 %v2561_v1, %v6144_v22  ;;  %v2645_v27 = vadd.f32 %v2644_v31, %v6148_v23  ;;  %v2563_v28 = vpop.f32.mrb[74].mxu1  ;;  %v2646_v40 = vpop.f32.mrb[14].mxu0  ;;  %3034 = vmatprep.mubr.bf16.mxu1 %v2716_v30  ;;  %3107 = vmatprep.mubr.bf16.mxu0 %v2718_v54 }
 0x70b   : > { %v2564_v56 = vadd.f32 %v2563_v28, %v6137_v16  ;;  %v2647_v33 = vadd.f32 %v2646_v40, %v6141_v0  ;;  %v2565_v36 = vpop.f32.mrb[75].mxu1  ;;  %v2648_v43 = vpop.f32.mrb[15].mxu0  ;;  %3035 = vmatmul.mubr.bf16.gmra.mrb[88].mxu1 %v2715_v42  ;;  %3108 = vmatmul.mubr.bf16.gmra.mrb[28].mxu0 %v2717_v32  ;;  %v2687_v4 = vmax.f32 %v2560_v21, 0.0  ;;  %v2689_v44 = vmax.f32 %v2643_v41, 0.0 }
 0x70c   : > { %v2566_v3 = vadd.f32 %v2565_v36, %v6144_v22  ;;  %v2649_v37 = vadd.f32 %v2648_v43, %v6148_v23  ;;  %4373 = vmatpush3.bf16.msra.mxu1 %v6026_v45  ;;  %v2688_v7 = vmax.f32 %v2562_v25, 0.0  ;;  %v2690_v10 = vmax.f32 %v2645_v27, 0.0 }
 0x70d   : > { %v2691_v29 = vmax.f32 %v2564_v56, 0.0  ;;  %v2693_v61 = vmax.f32 %v2647_v33, 0.0  ;;  %4366 = vmatprep.subr.bf16.mxu1 %v6036_v11 }
 0x70e   : > { %v2692_v53 = vmax.f32 %v2566_v3, 0.0  ;;  %v2694_v13 = vmax.f32 %v2649_v37, 0.0 }
 0x70f   : > { %v2719_v15 = vpack.c.bf16 %v2691_v29, %v2687_v4  ;;  %v2721_v24 = vpack.c.bf16 %v2693_v61, %v2689_v44 }
 0x710   : > { %v2720_v42 = vpack.c.bf16 %v2692_v53, %v2688_v7  ;;  %v2722_v32 = vpack.c.bf16 %v2694_v13, %v2690_v10  ;;  %v2569_v30 = vpop.f32.mrb[76].mxu1  ;;  %v2652_v54 = vpop.f32.mrb[16].mxu0  ;;  %4374 = vmatpush3.bf16.msra.mxu1 %v6048_v18 }
 0x711   : > { %v2570_v45 = vadd.f32 %v2569_v30, %v6137_v16  ;;  %v2653_v34 = vadd.f32 %v2652_v54, %v6141_v0  ;;  %v2571_v39 = vpop.f32.mrb[77].mxu1  ;;  %v2654_v21 = vpop.f32.mrb[17].mxu0  ;;  %4367 = vmatprep.subr.bf16.mxu1 %v6057_v26 }
 0x712   : > { %v2572_v11 = vadd.f32 %v2571_v39, %v6144_v22  ;;  %v2655_v41 = vadd.f32 %v2654_v21, %v6148_v23  ;;  %v2573_v1 = vpop.f32.mrb[78].mxu1  ;;  %v2656_v31 = vpop.f32.mrb[18].mxu0  ;;  %3042 = vmatprep.mubr.bf16.mxu1 %v2720_v42  ;;  %3115 = vmatprep.mubr.bf16.mxu0 %v2722_v32 }
 0x713   : > { %v2574_v25 = vadd.f32 %v2573_v1, %v6137_v16  ;;  %v2657_v18 = vadd.f32 %v2656_v31, %v6141_v0  ;;  %v2575_v27 = vpop.f32.mrb[79].mxu1  ;;  %v2658_v28 = vpop.f32.mrb[19].mxu0  ;;  %3043 = vmatmul.mubr.bf16.gmra.mrb[92].mxu1 %v2719_v15  ;;  %3116 = vmatmul.mubr.bf16.gmra.mrb[32].mxu0 %v2721_v24  ;;  %v2695_v56 = vmax.f32 %v2570_v45, 0.0  ;;  %v2697_v33 = vmax.f32 %v2653_v34, 0.0 }
 0x714   : > { %v2576_v40 = vadd.f32 %v2575_v27, %v6144_v22  ;;  %v2659_v26 = vadd.f32 %v2658_v28, %v6148_v23  ;;  %4375 = vmatpush3.bf16.msra.mxu1 %v6066_v35  ;;  %v2696_v3 = vmax.f32 %v2572_v11, 0.0  ;;  %v2698_v37 = vmax.f32 %v2655_v41, 0.0 }
 0x715   : > { %v2699_v36 = vmax.f32 %v2574_v25, 0.0  ;;  %v2701_v43 = vmax.f32 %v2657_v18, 0.0  ;;  %4368 = vmatprep.subr.bf16.mxu1 %v6076_v63 }
 0x716   : > { %v2700_v4 = vmax.f32 %v2576_v40, 0.0  ;;  %v2702_v44 = vmax.f32 %v2659_v26, 0.0 }
 0x717   : > { %v2723_v29 = vpack.c.bf16 %v2699_v36, %v2695_v56  ;;  %v2725_v61 = vpack.c.bf16 %v2701_v43, %v2697_v33 }
 0x718   : > { %v2724_v7 = vpack.c.bf16 %v2700_v4, %v2696_v3  ;;  %v2726_v10 = vpack.c.bf16 %v2702_v44, %v2698_v37  ;;  %v2579_v53 = vpop.f32.mrb[80].mxu1  ;;  %v2662_v13 = vpop.f32.mrb[20].mxu0  ;;  %4376 = vmatpush3.bf16.msra.mxu1 %v6093_v59 }
 0x719   : > { %v2580_v35 = vadd.f32 %v2579_v53, %v6137_v16  ;;  %v2663_v15 = vadd.f32 %v2662_v13, %v6141_v0  ;;  %v2581_v24 = vpop.f32.mrb[81].mxu1  ;;  %v2664_v42 = vpop.f32.mrb[21].mxu0  ;;  %4369 = vmatprep.subr.bf16.mxu1 %v6102_v5 }
 0x71a   : > { %v2582_v63 = vadd.f32 %v2581_v24, %v6144_v22  ;;  %v2665_v32 = vadd.f32 %v2664_v42, %v6148_v23  ;;  %v2583_v30 = vpop.f32.mrb[82].mxu1  ;;  %v2666_v54 = vpop.f32.mrb[22].mxu0  ;;  %3050 = vmatprep.mubr.bf16.mxu1 %v2724_v7  ;;  %3123 = vmatprep.mubr.bf16.mxu0 %v2726_v10 }
 0x71b   : > { %v2584_v45 = vadd.f32 %v2583_v30, %v6137_v16  ;;  %v2667_v59 = vadd.f32 %v2666_v54, %v6141_v0  ;;  %v2585_v34 = vpop.f32.mrb[83].mxu1  ;;  %v2668_v39 = vpop.f32.mrb[23].mxu0  ;;  %3051 = vmatmul.mubr.bf16.gmra.mrb[96].mxu1 %v2723_v29  ;;  %3124 = vmatmul.mubr.bf16.gmra.mrb[36].mxu0 %v2725_v61  ;;  %v2703_v11 = vmax.f32 %v2580_v35, 0.0  ;;  %v2705_v41 = vmax.f32 %v2663_v15, 0.0 }
 0x71c   : > { %v2586_v21 = vadd.f32 %v2585_v34, %v6144_v22  ;;  %v2669_v5 = vadd.f32 %v2668_v39, %v6148_v23  ;;  %4377 = vmatpush3.bf16.msra.mxu1 %v6110_v9  ;;  %v2704_v25 = vmax.f32 %v2582_v63, 0.0  ;;  %v2706_v16 = vmax.f32 %v2665_v32, 0.0 }
 0x71d   : > { %v2707_v1 = vmax.f32 %v2584_v45, 0.0  ;;  %v2709_v31 = vmax.f32 %v2667_v59, 0.0  ;;  %4370 = vmatprep.subr.bf16.mxu1 %v6120_v12  ;;  %v6208_v12 = vld [vmem:[%s6818_s28] ss:$0 sm:$0xff]  ;;  %s6616_s28 = scalar_lea.hbm %s6830_s14, %s4159_s0 }
 0x71e   : > { %v2708_v18 = vmax.f32 %v2586_v21, 0.0  ;;  %v2710_v0 = vmax.f32 %v2669_v5, 0.0 }
 0x71f   : > { %v2727_v27 = vpack.c.bf16 %v2707_v1, %v2703_v11  ;;  %v2729_v28 = vpack.c.bf16 %v2709_v31, %v2705_v41 }
 0x720   : > { %v2728_v40 = vpack.c.bf16 %v2708_v18, %v2704_v25  ;;  %v2730_v26 = vpack.c.bf16 %v2710_v0, %v2706_v16  ;;  %4378 = vmatpush3.bf16.msra.mxu1 %v6128_v14 }
 0x722   : > { %3058 = vmatprep.mubr.bf16.mxu1 %v2728_v40 }
 0x723   : > { %3059 = vmatmul.mubr.bf16.gmra.mrb[100].mxu1 %v2727_v27 }
 0x724   : > { %3131 = vmatprep.mubr.bf16.mxu1 %v2730_v26 }
 0x72b   : > { %3132 = vmatmul.mubr.bf16.vlgmr.msra.gmra.mrb[104].mxu1 %v2729_v28 }
 0x7d6   : > { %v4236_v9 = vpop.f32.mrb[84].mxu1  ;;  %v4282_v22 = vpop.f32.mrb[24].mxu0 }
 0x7d7   : > { %v4237_v23 = vpop.f32.mrb[85].mxu1  ;;  %v4283_v56 = vpop.f32.mrb[25].mxu0 }
 0x7d8   : > { %v4238_v33 = vadd.f32 %v4237_v23, %v4236_v9  ;;  %v4284_v36 = vadd.f32 %v4283_v56, %v4282_v22  ;;  %v4239_v43 = vpop.f32.mrb[86].mxu1  ;;  %v4285_v3 = vpop.f32.mrb[26].mxu0 }
 0x7d9   : > { %v4240_v37 = vpop.f32.mrb[87].mxu1  ;;  %v4286_v4 = vpop.f32.mrb[27].mxu0 }
 0x7da   : > { %v3029_v14 = vadd.f32 %v4238_v33, %v6208_v12  ;;  %v4241_v44 = vadd.f32 %v4240_v37, %v4239_v43  ;;  %v4287_v29 = vadd.f32 %v4286_v4, %v4285_v3 }
 0x7dc   : > { %v6211_v61 = vadd.f32 %v4284_v36, %v3029_v14  ;;  %v3032_v7 = vadd.f32 %v4241_v44, %v6208_v12 }
 0x7de   : > { %v3171_v10 = vand.u32 2147483647, %v6211_v61  ;;  %v6215_v53 = vadd.f32 %v4287_v29, %v3032_v7  ;;  %v4242_v13 = vpop.f32.mrb[88].mxu1  ;;  %v4288_v35 = vpop.f32.mrb[28].mxu0  ;;  %v3403_v42 = vsub.f32 %v5783_v47, %v6211_v61  ;;  %vm3151_vm9 = vcmp.ne.f32.partialorder %v6211_v61, %v6211_v61 }
 0x7df   : > { %v4243_v15 = vpop.f32.mrb[89].mxu1  ;;  %v4289_v24 = vpop.f32.mrb[29].mxu0 }
 0x7e0   : > { %v3181_v63 = vsub.f32 0.0, %v3171_v10  ;;  %v3172_v32 = vand.u32 2147483647, %v6215_v53  ;;  %v4244_v30 = vadd.f32 %v4243_v15, %v4242_v13  ;;  %v4290_v54 = vadd.f32 %v4289_v24, %v4288_v35  ;;  %v4245_v45 = vpop.f32.mrb[90].mxu1  ;;  %v4291_v59 = vpop.f32.mrb[30].mxu0 }
 0x7e1   : > { %v4246_v34 = vpop.f32.mrb[91].mxu1  ;;  %v4292_v39 = vpop.f32.mrb[31].mxu0  ;;  %v3404_v21 = vsub.f32 %v5781_v46, %v6215_v53  ;;  %vm3152_vm10 = vcmp.ne.f32.partialorder %v6215_v53, %v6215_v53 }
 0x7e2   : > { %v3191_v5 = vmul.f32 1.442695, %v3181_v63  ;;  %v3182_v11 = vsub.f32 0.0, %v3172_v32  ;;  %v3037_v41 = vadd.f32 %v4244_v30, %v6208_v12  ;;  %v4247_v1 = vadd.f32 %v4246_v34, %v4245_v45 }
 0x7e3   : > { %v4293_v31 = vadd.f32 %v4292_v39, %v4291_v59 }
 0x7e4   : > { %4757 = vpow2.f32 %v3191_v5  ;;  %v3193_v25 = vmul.f32 1.442695, %v3182_v11  ;;  %v6223_v16 = vadd.f32 %v4290_v54, %v3037_v41  ;;  %v3040_v18 = vadd.f32 %v4247_v1, %v6208_v12 }
 0x7e6   : > { %4759 = vpow2.f32 %v3193_v25  ;;  %v3173_v0 = vand.u32 2147483647, %v6223_v16  ;;  %v6227_v27 = vadd.f32 %v4293_v31, %v3040_v18  ;;  %v4248_v28 = vpop.f32.mrb[92].mxu1  ;;  %v4294_v40 = vpop.f32.mrb[32].mxu0  ;;  %v3405_v22 = vsub.f32 %v5787_v50, %v6223_v16 }
 0x7e7   : > { %v4249_v26 = vpop.f32.mrb[93].mxu1  ;;  %v4295_v9 = vpop.f32.mrb[33].mxu0  ;;  %vm3153_vm13 = vcmp.ne.f32.partialorder %v6223_v16, %v6223_v16 }
 0x7e8   : > { %v3183_v23 = vsub.f32 0.0, %v3173_v0  ;;  %v3174_v56 = vand.u32 2147483647, %v6227_v27  ;;  %v4250_v33 = vadd.f32 %v4249_v26, %v4248_v28  ;;  %v4296_v36 = vadd.f32 %v4295_v9, %v4294_v40  ;;  %v4251_v43 = vpop.f32.mrb[94].mxu1  ;;  %v4297_v3 = vpop.f32.mrb[34].mxu0 }
 0x7e9   : > { %v4252_v37 = vpop.f32.mrb[95].mxu1  ;;  %v4298_v4 = vpop.f32.mrb[35].mxu0  ;;  %v3406_v14 = vsub.f32 %v5785_v48, %v6227_v27  ;;  %vm3154_vm14 = vcmp.ne.f32.partialorder %v6227_v27, %v6227_v27 }
 0x7ea   : > { %v3195_v44 = vmul.f32 1.442695, %v3183_v23  ;;  %v3184_v29 = vsub.f32 0.0, %v3174_v56  ;;  %v3045_v7 = vadd.f32 %v4250_v33, %v6208_v12  ;;  %v4253_v10 = vadd.f32 %v4252_v37, %v4251_v43 }
 0x7eb   : > { %v4299_v13 = vadd.f32 %v4298_v4, %v4297_v3 }
 0x7ec   : > { %4761 = vpow2.f32 %v3195_v44  ;;  %v3197_v35 = vmul.f32 1.442695, %v3184_v29  ;;  %v6235_v15 = vadd.f32 %v4296_v36, %v3045_v7  ;;  %v3048_v24 = vadd.f32 %v4253_v10, %v6208_v12 }
 0x7ee   : > { %v6238_v63 = vpop.eup %4757  ;;  %4763 = vpow2.f32 %v3197_v35  ;;  %v3175_v32 = vand.u32 2147483647, %v6235_v15  ;;  %v6241_v30 = vadd.f32 %v4299_v13, %v3048_v24  ;;  %v4254_v54 = vpop.f32.mrb[96].mxu1  ;;  %v3141_v35 = vmax.f32 %v6211_v61, 0.0 }
 0x7ef   : > { %v4300_v45 = vpop.f32.mrb[36].mxu0  ;;  %v4255_v59 = vpop.f32.mrb[97].mxu1  ;;  %v3211_v39 = vadd.f32 1.0, %v6238_v63  ;;  %v3214_v36 = vmul.f32 -0.5, %v6238_v63  ;;  %vm3155_vm3 = vcmp.ne.f32.partialorder %v6235_v15, %v6235_v15 }
 0x7f0   : > { %v4301_v34 = vpop.f32.mrb[37].mxu0  ;;  %v6244_v5 = vpop.eup %4759  ;;  %v3185_v11 = vsub.f32 0.0, %v3175_v32  ;;  %v3176_v41 = vand.u32 2147483647, %v6241_v30  ;;  %v4256_v1 = vadd.f32 %v4255_v59, %v4254_v54  ;;  %vm3156_vm7 = vcmp.ne.f32.partialorder %v6241_v30, %v6241_v30 }
 0x7f1   : > { %v4302_v31 = vadd.f32 %v4301_v34, %v4300_v45  ;;  %v4257_v25 = vpop.f32.mrb[98].mxu1  ;;  %v4303_v18 = vpop.f32.mrb[38].mxu0  ;;  %4765 = vlog2.f32 %v3211_v39  ;;  %v3220_v40 = vadd.f32 1.0, %v6244_v5  ;;  %v3223_v4 = vmul.f32 -0.5, %v6244_v5 }
 0x7f2   : > { %v4258_v0 = vpop.f32.mrb[99].mxu1  ;;  %v4304_v28 = vpop.f32.mrb[39].mxu0  ;;  %v3199_v26 = vmul.f32 1.442695, %v3185_v11  ;;  %v3186_v9 = vsub.f32 0.0, %v3176_v41  ;;  %v3053_v23 = vadd.f32 %v4256_v1, %v6208_v12  ;;  %v3215_v39 = vadd.f32 1.0, %v3214_v36 }
 0x7f3   : > { %v4259_v56 = vadd.f32 %v4258_v0, %v4257_v25  ;;  %v4305_v33 = vadd.f32 %v4304_v28, %v4303_v18  ;;  %4767 = vlog2.f32 %v3220_v40  ;;  %v3217_v41 = vand.u32 2147483647, %v6238_v63 }
 0x7f4   : > { %4769 = vpow2.f32 %v3199_v26  ;;  %v3201_v43 = vmul.f32 1.442695, %v3186_v9  ;;  %v6250_v3 = vadd.f32 %v4302_v31, %v3053_v23  ;;  %v3224_v1 = vadd.f32 1.0, %v3223_v4 }
 0x7f5   : > { %v3056_v37 = vadd.f32 %v4259_v56, %v6208_v12  ;;  %v3226_v28 = vand.u32 2147483647, %v6244_v5  ;;  %v3142_v26 = vmax.f32 %v6215_v53, 0.0  ;;  %v3143_v9 = vmax.f32 %v6223_v16, 0.0 }
 0x7f6   : > { %v6254_v44 = vpop.eup %4761  ;;  %4771 = vpow2.f32 %v3201_v43  ;;  %v3177_v29 = vand.u32 2147483647, %v6250_v3  ;;  %v4260_v10 = vpop.f32.mrb[100].mxu1  ;;  %v3216_v36 = vmul.f32 %v6238_v63, %v3215_v39  ;;  %vm3218_vm11 = vcmp.lt.f32.partialorder %v3217_v41, 0.0004427343 }
 0x7f7   : > { %v6257_v7 = vadd.f32 %v4305_v33, %v3056_v37  ;;  %v4261_v13 = vpop.f32.mrb[101].mxu1  ;;  %v3229_v24 = vadd.f32 1.0, %v6254_v44  ;;  %v3232_v23 = vmul.f32 -0.5, %v6254_v44  ;;  %v3225_v37 = vmul.f32 %v6244_v5, %v3224_v1 }
 0x7f8   : > { %v6261_v32 = vpop.eup %4763  ;;  %v3187_v54 = vsub.f32 0.0, %v3177_v29  ;;  %v4262_v59 = vadd.f32 %v4261_v13, %v4260_v10  ;;  %v4263_v34 = vpop.f32.mrb[102].mxu1  ;;  %v3144_v4 = vmax.f32 %v6227_v27, 0.0  ;;  %vm3227_vm12 = vcmp.lt.f32.partialorder %v3226_v28, 0.0004427343 }
 0x7f9   : > { %v3178_v45 = vand.u32 2147483647, %v6257_v7  ;;  %v4264_v11 = vpop.f32.mrb[103].mxu1  ;;  %4773 = vlog2.f32 %v3229_v24  ;;  %v3238_v31 = vadd.f32 1.0, %v6261_v32  ;;  %v3241_v29 = vmul.f32 -0.5, %v6261_v32 }
 0x7fa   : > { %v3203_v25 = vmul.f32 1.442695, %v3187_v54  ;;  %v4265_v0 = vadd.f32 %v4264_v11, %v4263_v34  ;;  %v3233_v34 = vadd.f32 1.0, %v3232_v23  ;;  %v3235_v39 = vand.u32 2147483647, %v6254_v44 }
 0x7fb   : > { %v3188_v18 = vsub.f32 0.0, %v3178_v45  ;;  %v4766_v40 = vpop.eup %4765  ;;  %4775 = vlog2.f32 %v3238_v31  ;;  %v3061_v5 = vadd.f32 %v4262_v59, %v6208_v12  ;;  %v3242_v23 = vadd.f32 1.0, %v3241_v29 }
 0x7fc   : > { %4777 = vpow2.f32 %v3203_v25  ;;  %v3213_v33 = vmul.f32 0.6931472, %v4766_v40  ;;  %v3064_v59 = vadd.f32 %v4265_v0, %v6208_v12  ;;  %vm6304_vm15 = vcmp.lt.f32.partialorder %v3235_v39, 0.0004427343 }
 0x7fd   : > { %v3205_v56 = vmul.f32 1.442695, %v3188_v18  ;;  %v4768_v43 = vpop.eup %4767  ;;  %v3407_v18 = vsub.f32 %v5791_v57, %v6235_v15  ;;  %v3244_v12 = vand.u32 2147483647, %v6261_v32 }
 0x7fe   : > { %v6278_v10 = vpop.eup %4769  ;;  %v4306_v13 = vpop.f32.mrb[104].mxu1  ;;  %v3219_v24 = vsel %vm3218_vm11, %v3216_v36, %v3213_v33  ;;  %v3222_v54 = vmul.f32 0.6931472, %v4768_v43  ;;  %v3234_v43 = vmul.f32 %v6254_v44, %v3233_v34  ;;  %vm3158_vm11 = vcmp.ne.f32.partialorder %v6257_v7, %v6257_v7 }
 0x7ff   : > { %4779 = vpow2.f32 %v3205_v56  ;;  %v4307_v45 = vpop.f32.mrb[105].mxu1  ;;  %v3301_v63 = vadd.f32 %v3219_v24, %v3141_v35  ;;  %v3247_v11 = vadd.f32 1.0, %v6278_v10  ;;  %v3250_v24 = vmul.f32 -0.5, %v6278_v10 }
 0x800   : > { %v6282_v41 = vpop.eup %4771  ;;  %v4308_v1 = vadd.f32 %v4307_v45, %v4306_v13  ;;  %v4309_v31 = vpop.f32.mrb[106].mxu1  ;;  %v3228_v25 = vsel %vm3227_vm12, %v3225_v37, %v3222_v54  ;;  %v3243_v45 = vmul.f32 %v6261_v32, %v3242_v23  ;;  %vm3245_vm1 = vcmp.lt.f32.partialorder %v3244_v12, 0.0004427343 }
 0x801   : > { %v4310_v28 = vpop.f32.mrb[107].mxu1  ;;  %v6293_v35 = vsel %vm3151_vm9, %v6211_v61, %v3301_v63  ;;  %v3302_v40 = vadd.f32 %v3228_v25, %v3142_v26  ;;  %4781 = vlog2.f32 %v3247_v11  ;;  %v3256_v0 = vadd.f32 1.0, %v6282_v41 }
 0x802   : > { %v6296_v56 = vadd.f32 %v4308_v1, %v3061_v5  ;;  %v4311_v33 = vadd.f32 %v4310_v28, %v4309_v31  ;;  %3423 = vrot.lane.b32.xlu1 %v6293_v35, %s5166_s16  ;;  %4783 = vlog2.f32 %v6293_v35  ;;  %v3259_v63 = vmul.f32 -0.5, %v6282_v41 }
 0x803   : > { %v4774_v36 = vpop.eup %4773  ;;  %v6318_v44 = vsel %vm3152_vm10, %v6215_v53, %v3302_v40  ;;  %4785 = vlog2.f32 %v3256_v0  ;;  %v3253_v32 = vand.u32 2147483647, %v6278_v10  ;;  %v3262_v12 = vand.u32 2147483647, %v6282_v41 }
 0x804   : > { %v3179_v37 = vand.u32 2147483647, %v6296_v56  ;;  %v6311_v29 = vadd.f32 %v4311_v33, %v3064_v59  ;;  %v3231_v13 = vmul.f32 0.6931472, %v4774_v36  ;;  %v3251_v33 = vadd.f32 1.0, %v3250_v24 }
 0x805   : > { %v4776_v54 = vpop.eup %4775  ;;  %vm3254_vm4 = vcmp.lt.f32.partialorder %v3253_v32, 0.0004427343  ;;  %vm6363_vm5 = vcmp.lt.f32.partialorder %v3262_v12, 0.0004427343  ;;  %vm3157_vm9 = vcmp.ne.f32.partialorder %v6250_v3, %v6250_v3 }
 0x806   : > { %v6322_v34 = vpop.eup %4777  ;;  %v3189_v39 = vsub.f32 0.0, %v3179_v37  ;;  %v3180_v11 = vand.u32 2147483647, %v6311_v29  ;;  %3425 = vrot.lane.b32.xlu1 %v6318_v44, %s5166_s16  ;;  %v3237_v5 = vsel %vm6304_vm15, %v3234_v43, %v3231_v13  ;;  %v3240_v1 = vmul.f32 0.6931472, %v4776_v54 }
 0x807   : > { %v3303_v31 = vadd.f32 %v3237_v5, %v3143_v9  ;;  %v3265_v25 = vadd.f32 1.0, %v6322_v34  ;;  %v3260_v43 = vadd.f32 1.0, %v3259_v63  ;;  %v3145_v54 = vmax.f32 %v6235_v15, 0.0 }
 0x808   : > { %v3207_v40 = vmul.f32 1.442695, %v3189_v39  ;;  %v3190_v23 = vsub.f32 0.0, %v3180_v11  ;;  %v3246_v59 = vsel %vm3245_vm1, %v3243_v45, %v3240_v1  ;;  %v3252_v63 = vmul.f32 %v6278_v10, %v3251_v33 }
 0x809   : > { %v6333_v28 = vpop.eup %4779  ;;  %v6339_v36 = vsel %vm3153_vm13, %v6223_v16, %v3303_v31  ;;  %v3304_v9 = vadd.f32 %v3246_v59, %v3144_v4  ;;  %4787 = vlog2.f32 %v3265_v25  ;;  %v3268_v4 = vmul.f32 -0.5, %v6322_v34 }
 0x80a   : > { %4789 = vpow2.f32 %v3207_v40  ;;  %v3209_v26 = vmul.f32 1.442695, %v3190_v23  ;;  %3427 = vrot.lane.b32.xlu0 %v6339_v36, %s5166_s16  ;;  %v3274_v0 = vadd.f32 1.0, %v6333_v28  ;;  %v3146_v11 = vmax.f32 %v6241_v30, 0.0 }
 0x80b   : > { %v4782_v37 = vpop.eup %4781  ;;  %v6351_v13 = vsel %vm3154_vm14, %v6227_v27, %v3304_v9  ;;  %v3261_v1 = vmul.f32 %v6282_v41, %v3260_v43  ;;  %v3269_v10 = vadd.f32 1.0, %v3268_v4  ;;  %v3271_v23 = vand.u32 2147483647, %v6322_v34 }
 0x80c   : > { %v4784_v24 = vpop.eup %4783  ;;  %4791 = vpow2.f32 %v3209_v26  ;;  %3429 = vrot.lane.b32.xlu1 %v6351_v13, %s5166_s16  ;;  %v3249_v45 = vmul.f32 0.6931472, %v4782_v37  ;;  %v3277_v59 = vmul.f32 -0.5, %v6333_v28  ;;  %v3409_v33 = vsub.f32 %v5800_v58, %v6250_v3 }
 0x80d   : > { %v3494_v39 = vmul.f32 0.6931472, %v4784_v24  ;;  %4793 = vlog2.f32 %v3274_v0  ;;  %v4786_v25 = vpop.eup %4785  ;;  %v3408_v41 = vsub.f32 %v5789_v51, %v6241_v30  ;;  %v6388_v0 = vsel %vm3140_vm2, %v6211_v61, %v6293_v35 }
 0x80e   : > { %v3255_v5 = vsel %vm3254_vm4, %v3252_v63, %v3249_v45  ;;  %v3258_v32 = vmul.f32 0.6931472, %v4786_v25  ;;  %v6396_v4 = vsel %vm3140_vm2, %v6223_v16, %v6339_v36  ;;  %v6402_v24 = vsel %vm3140_vm2, %v6227_v27, %v6351_v13 }
 0x80f   : > { %3523 = vrot.lane.b32.xlu0 %v3494_v39, %s5166_s16  ;;  %v3305_v40 = vadd.f32 %v3255_v5, %v3145_v54  ;;  %v6409_v45 = vsel %vm3140_vm2, %v6215_v53, %v6318_v44  ;;  %v3147_v5 = vmax.f32 %v6250_v3, 0.0  ;;  %vm3272_vm8 = vcmp.lt.f32.partialorder %v3271_v23, 0.0004427343 }
 0x810   : > { %v3264_v37 = vsel %vm6363_vm5, %v3261_v1, %v3258_v32  ;;  %v3278_v25 = vadd.f32 1.0, %v3277_v59  ;;  %v3280_v12 = vand.u32 2147483647, %v6333_v28  ;;  %vm3159_vm13 = vcmp.ne.f32.partialorder %v6296_v56, %v6296_v56 }
 0x811   : > { %v3315_v43 = vsel %vm3155_vm3, %v6235_v15, %v3305_v40  ;;  %v3306_v35 = vadd.f32 %v3264_v37, %v3146_v11  ;;  %v3270_v11 = vmul.f32 %v6322_v34, %v3269_v10  ;;  %vm3160_vm15 = vcmp.ne.f32.partialorder %v6311_v29, %v6311_v29 }
 0x812   : > { %v6414_v63 = vsel %vm3140_vm2, %v6235_v15, %v3315_v43  ;;  %v3279_v59 = vmul.f32 %v6333_v28, %v3278_v25  ;;  %vm3281_vm10 = vcmp.lt.f32.partialorder %v3280_v12, 0.0004427343  ;;  %v6824_v51 = vsub.f32 %v5793_v55, %v6257_v7 }
 0x813   : > { %v4788_v54 = vpop.eup %4787  ;;  %3431 = vrot.lane.b32.xlu0 %v3315_v43, %s5166_s16  ;;  %v3316_v31 = vsel %vm3156_vm7, %v6241_v30, %v3306_v35  ;;  %v3148_v35 = vmax.f32 %v6257_v7, 0.0  ;;  %vm3371_vm1 = vcmask 261120  }
 0x814   : > { %v4790_v39 = vpop.eup %4789  ;;  %v3267_v1 = vmul.f32 0.6931472, %v4788_v54  ;;  %3433 = vrot.lane.b32.xlu1 %v3316_v31, %s5166_s16  ;;  %v6426_v9 = vsel %vm3140_vm2, %v6241_v30, %v3316_v31 }
 0x815   : > { %v3283_v40 = vadd.f32 1.0, %v4790_v39  ;;  %v3289_v12 = vand.u32 2147483647, %v4790_v39 }
 0x816   : > { %v4792_v32 = vpop.eup %4791  ;;  %v3273_v37 = vsel %vm3272_vm8, %v3270_v11, %v3267_v1  ;;  %v3286_v1 = vmul.f32 -0.5, %v4790_v39 }
 0x817   : > { %v3307_v26 = vadd.f32 %v3273_v37, %v3147_v5  ;;  %4795 = vlog2.f32 %v3283_v40  ;;  %v4794_v54 = vpop.eup %4793  ;;  %v3292_v34 = vadd.f32 1.0, %v4792_v32  ;;  %v3295_v25 = vmul.f32 -0.5, %v4792_v32 }
 0x818   : > { %v3276_v23 = vmul.f32 0.6931472, %v4794_v54  ;;  %vm3290_vm12 = vcmp.lt.f32.partialorder %v3289_v12, 0.0004427343 }
 0x819   : > { %v3317_v10 = vsel %vm3157_vm9, %v6250_v3, %v3307_v26  ;;  %4797 = vlog2.f32 %v3292_v34  ;;  %v3287_v26 = vadd.f32 1.0, %v3286_v1 }
 0x81a   : > { %3435 = vrot.lane.b32.xlu0 %v3317_v10, %s5166_s16  ;;  %v6437_v5 = vsel %vm3140_vm2, %v6250_v3, %v3317_v10  ;;  %v3282_v11 = vsel %vm3281_vm10, %v3279_v59, %v3276_v23  ;;  %4799 = vlog2.f32 %v6339_v36  ;;  %v3296_v23 = vadd.f32 1.0, %v3295_v25 }
 0x81b   : > { %v3308_v40 = vadd.f32 %v3282_v11, %v3148_v35  ;;  %4801 = vlog2.f32 %v6318_v44  ;;  %v3288_v34 = vmul.f32 %v4790_v39, %v3287_v26  ;;  %v3149_v59 = vmax.f32 %v6296_v56, 0.0 }
 0x81c   : > { %4803 = vlog2.f32 %v3315_v43  ;;  %v3298_v35 = vand.u32 2147483647, %v4792_v32  ;;  %v3297_v43 = vmul.f32 %v4792_v32, %v3296_v23  ;;  %v3150_v26 = vmax.f32 %v6311_v29, 0.0 }
 0x81d   : > { %v3318_v28 = vsel %vm3158_vm11, %v6257_v7, %v3308_v40  ;;  %4805 = vlog2.f32 %v5614_v49 }
 0x81e   : > { %3437 = vrot.lane.b32.xlu1 %v3318_v28, %s5166_s16  ;;  %v6447_v37 = vsel %vm3140_vm2, %v6257_v7, %v3318_v28  ;;  %4807 = vlog2.f32 %v6351_v13  ;;  %vm3299_vm14 = vcmp.lt.f32.partialorder %v3298_v35, 0.0004427343  ;;  %v6826_v7 = vsub.f32 %v5803_v60, %v6311_v29 }
 0x81f   : > { %4809 = vlog2.f32 %v3317_v10 }
 0x820   : > { %4811 = vlog2.f32 %v3316_v31  ;;  %v3621_v31 = vmul.f32 %v5614_v49, %v5614_v49 }
 0x821   : > { %v4796_v54 = vpop.eup %4795 }
 0x822   : > { %v3285_v36 = vmul.f32 0.6931472, %v4796_v54 }
 0x823   : > { %v4798_v11 = vpop.eup %4797 }
 0x824   : > { %v3291_v1 = vsel %vm3290_vm12, %v3288_v34, %v3285_v36  ;;  %v3294_v44 = vmul.f32 0.6931472, %v4798_v11  ;;  %v4800_v54 = vpop.eup %4799  ;;  %v3625_v34 = vpop.permute.xlu0 %3624 }
 0x825   : > { %v3309_v40 = vadd.f32 %v3291_v1, %v3149_v59  ;;  %v4802_v12 = vpop.eup %4801  ;;  %v3498_v32 = vmul.f32 0.6931472, %v4800_v54  ;;  %v3627_v11 = vadd.f32 %v3625_v34, %v3621_v31 }
 0x826   : > { %v3300_v25 = vsel %vm3299_vm14, %v3297_v43, %v3294_v44  ;;  %v4804_v36 = vpop.eup %4803 }
 0x827   : > { %v3319_v39 = vsel %vm3159_vm13, %v6296_v56, %v3309_v40  ;;  %v3310_v10 = vadd.f32 %v3300_v25, %v3150_v26  ;;  %v4806_v35 = vpop.eup %4805  ;;  %v3496_v40 = vmul.f32 0.6931472, %v4802_v12  ;;  %v3502_v44 = vmul.f32 0.6931472, %v4804_v36 }
 0x828   : > { %3439 = vrot.lane.b32.xlu0 %v3319_v39, %s5166_s16  ;;  %v6461_v13 = vsel %vm3140_vm2, %v6296_v56, %v3319_v39  ;;  %4813 = vlog2.f32 %v3319_v39  ;;  %v4808_v1 = vpop.eup %4807  ;;  %v3619_v54 = vmul.f32 0.6931472, %v4806_v35  ;;  %v3628_v39 = vmul.f32 0.5, %v3627_v11 }
 0x829   : > { %v3320_v23 = vsel %vm3160_vm15, %v6311_v29, %v3310_v10  ;;  %4815 = vlog2.f32 %v3318_v28  ;;  %v4810_v43 = vpop.eup %4809  ;;  %v3500_v26 = vmul.f32 0.6931472, %v4808_v1 }
 0x82a   : > { %3441 = vrot.lane.b32.xlu1 %v3320_v23, %s5166_s16  ;;  %v6473_v59 = vsel %vm3140_vm2, %v6311_v29, %v3320_v23  ;;  %4817 = vlog2.f32 %v3320_v23  ;;  %v4812_v49 = vpop.eup %4811  ;;  %v3506_v25 = vmul.f32 0.6931472, %v4810_v43  ;;  %vm3382_vm2 = vcmask 293888  }
 0x82b   : > { %v3504_v12 = vmul.f32 0.6931472, %v4812_v49 }
 0x82c   : > { %3527 = vrot.lane.b32.xlu0 %v3498_v32, %s5166_s16  ;;  %v3620_v32 = vsub.f32 0.0, %v3619_v54 }
 0x82e   : > { %3525 = vrot.lane.b32.xlu1 %v3496_v40, %s5166_s16  ;;  %v3629_v28 = vadd.f32 %v3628_v39, %v3620_v32 }
 0x830   : > { %3531 = vrot.lane.b32.xlu0 %v3502_v44, %s5166_s16  ;;  %v4156_v31 = vadd.f32 -0.5, %v3629_v28 }
 0x832   : > { %v4814_v10 = vpop.eup %4813  ;;  %3529 = vrot.lane.b32.xlu1 %v3500_v26, %s5166_s16 }
 0x833   : > { %v3510_v36 = vmul.f32 0.6931472, %v4814_v10  ;;  %v4816_v34 = vpop.eup %4815 }
 0x834   : > { %3535 = vrot.lane.b32.xlu0 %v3506_v25, %s5166_s16  ;;  %v3508_v23 = vmul.f32 0.6931472, %v4816_v34  ;;  %v4818_v35 = vpop.eup %4817 }
 0x835   : > { %v3512_v1 = vmul.f32 0.6931472, %v4818_v35 }
 0x836   : > { %3533 = vrot.lane.b32.xlu1 %v3504_v12, %s5166_s16 }
 0x838   : > { %3539 = vrot.lane.b32.xlu0 %v3510_v36, %s5166_s16 }
 0x83a   : > { %3537 = vrot.lane.b32.xlu1 %v3508_v23, %s5166_s16 }
 0x83c   : > { %3632 = vrot.lane.b32.xlu0 %v4156_v31, %s6823_s17 }
 0x83e   : > { %3541 = vrot.lane.b32.xlu1 %v3512_v1, %s5166_s16  ;;  %s6831_s16 = scalar_lea.vmem [#allocation13], %s5491_s30 }
 0x83f   : > { %s3675_s17 = sshll.u32 %s6831_s16, 4  ;;  %s3676_s17 = int_to_ptr.vmem [resolvable:$true] %s3675_s17 }
 0x840   : > { %s5010_s3 = scalar_lea.vmem %s3676_s17, 128  ;;  %p5017_p0 = scmp.lt.s32.totalorder %s3676_s17, %s5015_s5 }
 0x841   : > { %p5011_p4 = scmp.ne.s32.totalorder %s3676_s17, %s5010_s3 }
 0x842   : > { %3341 = vrot.lane.b32.xlu1 %v5812_v8, %s5167_s25 }
 0x843   : > { %p5012_p1 = pnand %p5011_p4, %p6832_p12 }
 0x845   : > { %p5013_p13 = pneg %p5012_p1 }
 0x846   : > { %3345 = vrot.lane.b32.xlu1 %v5826_v19, %s5167_s25 }
 0x84a   : > { %3347 = vrot.lane.b32.xlu1 %v5824_v17, %s5167_s25 }
 0x84e   : > { %3351 = vrot.lane.b32.xlu1 %v5838_v52, %s5167_s25 }
 0x852   : > { %3355 = vrot.lane.b32.xlu1 %v5852_v38, %s5167_s25 }
 0x874   : > { %v3424_v11 = vpop.permute.xlu1 %3423 }
 0x875   : > { %4819 = vrcp.f32 %v3424_v11 }
 0x878   : > { %v3426_v40 = vpop.permute.xlu1 %3425 }
 0x879   : > { %4821 = vrcp.f32 %v3426_v40 }
 0x87c   : > { %v3428_v44 = vpop.permute.xlu0 %3427 }
 0x87d   : > { %4823 = vrcp.f32 %v3428_v44 }
 0x87f   : > { %v4820_v43 = vpop.eup %4819 }
 0x880   : > { %v3454_v8 = vmul.f32 %v4820_v43, %v3403_v42  ;;  %v3430_v42 = vpop.permute.xlu1 %3429 }
 0x881   : > { %v3524_v19 = vpop.permute.xlu0 %3523 }
 0x882   : > { %v3473_v54 = vmul.f32 -0.5, %v3454_v8 }
 0x883   : > { %v4822_v17 = vpop.eup %4821 }
 0x884   : > { %v3483_v49 = vmul.f32 %v3473_v54, %v3454_v8  ;;  %v3456_v52 = vmul.f32 %v4822_v17, %v3404_v21 }
 0x885   : > { %v3432_v38 = vpop.permute.xlu0 %3431 }
 0x886   : > { %v3553_v39 = vsub.f32 %v3483_v49, %v3524_v19  ;;  %4825 = vrcp.f32 %v3432_v38  ;;  %v3434_v28 = vpop.permute.xlu1 %3433  ;;  %v3474_v36 = vmul.f32 -0.5, %v3456_v52  ;;  %v6825_v49 = vsub.f32 %v5806_v62, %v6296_v56 }
 0x887   : > { %v4824_v26 = vpop.eup %4823 }
 0x888   : > { %v4146_v25 = vadd.f32 -0.9189385, %v3553_v39  ;;  %v3458_v10 = vmul.f32 %v4824_v26, %v3405_v22  ;;  %v6519_v3 = vmul.f32 %v3474_v36, %v3456_v52 }
 0x88a   : > { %v3573_v47 = vsel %vm696_vm0, %v4146_v25, 0.0  ;;  %v3475_v16 = vmul.f32 -0.5, %v3458_v10 }
 0x88b   : > { %3574 = vadd.xlane.f32.xlu1 %v3573_v47 }
 0x88c   : > { %v3436_v61 = vpop.permute.xlu0 %3435  ;;  %v6510_v34 = vmul.f32 %v3475_v16, %v3458_v10 }
 0x88d   : > { %4827 = vrcp.f32 %v3436_v61 }
 0x88e   : > { %4829 = vrcp.f32 %v3430_v42 }
 0x88f   : > { %4831 = vrcp.f32 %v3434_v28 }
 0x890   : > { %v4826_v32 = vpop.eup %4825  ;;  %v3438_v53 = vpop.permute.xlu1 %3437 }
 0x891   : > { %v3462_v46 = vmul.f32 %v4826_v32, %v3407_v18  ;;  %4833 = vrcp.f32 %v3438_v53 }
 0x893   : > { %v3477_v31 = vmul.f32 -0.5, %v3462_v46 }
 0x897   : > { %v4828_v21 = vpop.eup %4827 }
 0x898   : > { %v3466_v50 = vmul.f32 %v4828_v21, %v3409_v33  ;;  %v4830_v22 = vpop.eup %4829  ;;  %v6521_v33 = vmul.f32 %v3477_v31, %v3462_v46 }
 0x899   : > { %v3460_v57 = vmul.f32 %v4830_v22, %v3406_v14  ;;  %v4832_v15 = vpop.eup %4831 }
 0x89a   : > { %v3440_v12 = vpop.permute.xlu0 %3439  ;;  %v3479_v1 = vmul.f32 -0.5, %v3466_v50  ;;  %v3464_v11 = vmul.f32 %v4832_v15, %v3408_v41 }
 0x89b   : > { %4835 = vrcp.f32 %v3440_v12  ;;  %v3476_v35 = vmul.f32 -0.5, %v3460_v57  ;;  %v4834_v48 = vpop.eup %4833 }
 0x89c   : > { %v3442_v18 = vpop.permute.xlu1 %3441  ;;  %v6534_v19 = vmul.f32 %v3479_v1, %v3466_v50  ;;  %v3478_v54 = vmul.f32 -0.5, %v3464_v11  ;;  %v3468_v30 = vmul.f32 %v4834_v48, %v6824_v51 }
 0x89d   : > { %4837 = vrcp.f32 %v3442_v18  ;;  %v3486_v8 = vmul.f32 %v3476_v35, %v3460_v57 }
 0x89e   : > { %v6515_v23 = vpop.permute.xlu0 %3527  ;;  %v3488_v47 = vmul.f32 %v3478_v54, %v3464_v11  ;;  %v3480_v61 = vmul.f32 -0.5, %v3468_v30 }
 0x89f   : > { %v3555_v58 = vsub.f32 %v6510_v34, %v6515_v23 }
 0x8a0   : > { %v6526_v27 = vpop.permute.xlu1 %3525  ;;  %v3490_v21 = vmul.f32 %v3480_v61, %v3468_v30 }
 0x8a1   : > { %v3554_v40 = vsub.f32 %v6519_v3, %v6526_v27 }
 0x8a2   : > { %v6528_v14 = vpop.permute.xlu0 %3531 }
 0x8a3   : > { %v3557_v44 = vsub.f32 %v6521_v33, %v6528_v14  ;;  %v6829_v33 = vld [vmem:[#allocation26_spill] sm:$0xff] }
 0x8a4   : > { %v3530_v41 = vpop.permute.xlu1 %3529 }
 0x8a5   : > { %v4836_v43 = vpop.eup %4835  ;;  %v3556_v38 = vsub.f32 %v3486_v8, %v3530_v41 }
 0x8a6   : > { %v6539_v17 = vpop.permute.xlu0 %3535  ;;  %v3470_v52 = vmul.f32 %v4836_v43, %v6825_v49 }
 0x8a7   : > { %v3559_v39 = vsub.f32 %v6534_v19, %v6539_v17  ;;  %v4838_v25 = vpop.eup %4837  ;;  %v4149_v10 = vadd.f32 -0.9189385, %v3556_v38 }
 0x8a8   : > { %v3481_v26 = vmul.f32 -0.5, %v3470_v52  ;;  %v3534_v42 = vpop.permute.xlu1 %3533  ;;  %v3472_v28 = vmul.f32 %v4838_v25, %v6826_v7 }
 0x8a9   : > { %v3558_v62 = vsub.f32 %v3488_v47, %v3534_v42  ;;  %v3582_v56 = vsel %vm696_vm0, %v4149_v10, 0.0  ;;  %v4147_v10 = vadd.f32 -0.9189385, %v3554_v40  ;;  %v4152_v3 = vadd.f32 -0.9189385, %v3559_v39 }
 0x8aa   : > { %v6546_v32 = vmul.f32 %v3481_v26, %v3470_v52  ;;  %v6548_v55 = vpop.permute.xlu0 %3539  ;;  %3583 = vadd.xlane.f32.xlu1 %v3582_v56  ;;  %v3482_v50 = vmul.f32 -0.5, %v3472_v28 }
 0x8ab   : > { %v4151_v53 = vadd.f32 -0.9189385, %v3558_v62 }
 0x8ac   : > { %v3561_v46 = vsub.f32 %v6546_v32, %v6548_v55  ;;  %v3538_v16 = vpop.permute.xlu1 %3537  ;;  %v3492_v29 = vmul.f32 %v3482_v50, %v3472_v28 }
 0x8ad   : > { %v3560_v12 = vsub.f32 %v3490_v21, %v3538_v16  ;;  %v3588_v36 = vsel %vm696_vm0, %v4151_v53, 0.0 }
 0x8ae   : > { %v3633_v22 = vpop.permute.xlu0 %3632  ;;  %3589 = vadd.xlane.f32.xlu1 %v3588_v36  ;;  %v4154_v23 = vadd.f32 -0.9189385, %v3561_v46 }
 0x8af   : > { %v3635_v31 = vsel %vm1963_vm6, %v3633_v22, 0.0  ;;  %v4153_v60 = vadd.f32 -0.9189385, %v3560_v12 }
 0x8b0   : > { %3636 = vadd.xlane.f32.xlu0 %v3635_v31  ;;  %v3542_v57 = vpop.permute.xlu1 %3541  ;;  %v3597_v27 = vsel %vm696_vm0, %v4154_v23, 0.0 }
 0x8b1   : > { %v3562_v15 = vsub.f32 %v3492_v29, %v3542_v57  ;;  %v3594_v18 = vsel %vm696_vm0, %v4153_v60, 0.0 }
 0x8b2   : > { %3595 = vadd.xlane.f32.xlu1 %v3594_v18 }
 0x8b3   : > { %v4155_v35 = vadd.f32 -0.9189385, %v3562_v15 }
 0x8b4   : > { %v3342_v1 = vpop.permute.xlu1 %3341 }
 0x8b5   : > { %v3372_v11 = vsel %vm3371_vm1, %v6388_v0, %v3342_v1  ;;  %v3600_v48 = vsel %vm696_vm0, %v4155_v35, 0.0 }
 0x8b6   : > { %v3383_v43 = vsel %vm3382_vm2, %v3372_v11, 0.0  ;;  %3601 = vadd.xlane.f32.xlu1 %v3600_v48 }
 0x8b7   : > { %3393 = vst [vmem:[%s6564_s26] sm:$0xff] %v3383_v43 }
 0x8b8   : > { %v3346_v8 = vpop.permute.xlu1 %3345 }
 0x8b9   : > { %v3374_v54 = vsel %vm3371_vm1, %v6396_v4, %v3346_v8 }
 0x8ba   : > { %v3385_v51 = vsel %vm3382_vm2, %v3374_v54, 0.0 }
 0x8bb   : > { %3395 = vst [vmem:[%s6564_s26 + $0x10] sm:$0xff] %v3385_v51 }
 0x8bc   : > { %v3348_v0 = vpop.permute.xlu1 %3347 }
 0x8bd   : > { %v3375_v30 = vsel %vm3371_vm1, %v6402_v24, %v3348_v0  ;;  %v6827_v24 = vld [vmem:[#allocation24_spill] sm:$0xff] }
 0x8be   : > { %v3386_v41 = vsel %vm3382_vm2, %v3375_v30, 0.0 }
 0x8bf   : > { %3396 = vst [vmem:[%s6564_s26 + $0x18] sm:$0xff] %v3386_v41 }
 0x8c0   : > { %v3352_v49 = vpop.permute.xlu1 %3351 }
 0x8c1   : > { %v3377_v52 = vsel %vm3371_vm1, %v6426_v9, %v3352_v49  ;;  %v6828_v9 = vld [vmem:[#allocation25_spill] sm:$0xff] }
 0x8c2   : > { %v3388_v38 = vsel %vm3382_vm2, %v3377_v52, 0.0 }
 0x8c3   : > { %3398 = vst [vmem:[%s6564_s26 + $0x28] sm:$0xff] %v3388_v38 }
 0x8c4   : > { %v3356_v26 = vpop.permute.xlu1 %3355 }
 0x8c5   : > { %v3379_v4 = vsel %vm3371_vm1, %v6447_v37, %v3356_v26  ;;  %v3576_v37 = vsel %vm696_vm0, %v4147_v10, 0.0 }
 0x8c6   : > { %3343 = vrot.lane.b32.xlu0 %v5810_v6, %s5167_s25  ;;  %v3390_v25 = vsel %vm3382_vm2, %v3379_v4, 0.0  ;;  %v4148_v6 = vadd.f32 -0.9189385, %v3555_v58  ;;  %v3591_v58 = vsel %vm696_vm0, %v4152_v3, 0.0 }
 0x8c7   : > { %3400 = vst [vmem:[%s6564_s26 + $0x38] sm:$0xff] %v3390_v25  ;;  %3359 = vrot.lane.b32.xlu1 %v5866_v2, %s5167_s25  ;;  %v4150_v2 = vadd.f32 -0.9189385, %v3557_v44 }
 0x8c8   : > { %v3579_v47 = vsel %vm696_vm0, %v4148_v6, 0.0 }
 0x8c9   : > { %v3585_v34 = vsel %vm696_vm0, %v4150_v2, 0.0 }
 0x8ca   : > { %3349 = vrot.lane.b32.xlu0 %v6827_v24, %s5167_s25 }
 0x8ce   : > { %3353 = vrot.lane.b32.xlu0 %v6828_v9, %s5167_s25 }
 0x8ed   : > { %3577 = vadd.xlane.f32.xlu0 %v3576_v37 }
 0x8f1   : > { %3580 = vadd.xlane.f32.xlu0 %v3579_v47 }
 0x8f5   : > { %3586 = vadd.xlane.f32.xlu0 %v3585_v34 }
 0x8f9   : > { %3592 = vadd.xlane.f32.xlu0 %v3591_v58 }
 0x8fd   : > { %3598 = vadd.xlane.f32.xlu0 %v3597_v27 }
 0x913   : > { %3357 = vrot.lane.b32.xlu0 %v6829_v33, %s5167_s25  ;;  %s5016_s25 = scalar_lea.vmem %s5015_s5, 256 }
 0x914   : > { %p5018_p2 = scmp.lt.s32.totalorder %s5016_s25, %s5010_s3 }
 0x916   : > { %p5019_p3 = por %p5018_p2, %p5017_p0 }
 0x918   : > { %p5020_p6 = pnand %p5019_p3, %p5013_p13 }
 0x91a   : > { %5023 = shalt.err (!%p5020_p6)
}
 0x91b   : > { %s5024_s2 = scalar_lea.hbm %s6616_s28, 128  ;;  %s5028_s4 = scalar_lea.hbm %s6830_s14, 256 }
 0x91c   : > { %p5025_p10 = scmp.ne.s32.totalorder %s6616_s28, %s5024_s2  ;;  %p5029_p5 = scmp.lt.u32.totalorder %s6616_s28, %s6830_s14 }
 0x91d   : > { %p5030_p9 = scmp.lt.u32.totalorder %s5028_s4, %s5024_s2  ;;  %p5032_p4 = scmp.lt.u32.totalorder %s5024_s2, %s6616_s28 }
 0x91e   : > { %p5026_p11 = pnand %p5025_p10, %p6832_p12 }
 0x91f   : > { %p5031_p7 = por %p5030_p9, %p5029_p5 }
 0x920   : > { %p5027_p8 = pneg %p5026_p11 }
 0x921   : > { %p5033_p1 = por %p5032_p4, %p5031_p7 }
 0x923   : > { %p5034_p13 = pnand %p5033_p1, %p5027_p8 }
 0x925   : > { %5037 = shalt.err (!%p5034_p13)
}
 0x926   : > { %4408 = dma.vmem_to_hbm [thread:$0]  (%p6832_p12), %s3676_s17, 128, %s6616_s28, %s3652_s1   ;;  %v3575_v14 = vpop.xlane.xlu1 %3574 }
 0x927   : > { %s3656_s3 = sand.u32 1, %s5279_s27   ;;  %s4164_s28 = smul.u32 1280, %s5279_s27 }
 0x928   : > { %s3688_s17 = sshll.u32 %s6564_s26, 4  ;;  %s6833_s2 = sld [smem:[#allocation37_spill]]  ;;  %s6662_s17 = int_to_ptr.vmem [resolvable:$true] %s3688_s17 }
 0x929   : > { %s6668_s15 = scalar_lea.sflag [#allocation15], %s3656_s3  ;;  %s5038_s4 = scalar_lea.vmem %s6662_s17, 1280 }
 0x92a   : > { %p5039_p0 = scmp.ne.s32.totalorder %s6662_s17, %s5038_s4  ;;  %s5169_s16 = smov [#allocation14]  }
 0x92b   : > { %s5042_s5 = sshll.u32 %s5169_s16, 4  ;;  %s5043_s5 = int_to_ptr.vmem [resolvable:$false] %s5042_s5 }
 0x92c   : > { %p5040_p2 = pnand %p5039_p0, %p6832_p12  ;;  %p5045_p6 = scmp.lt.s32.totalorder %s6662_s17, %s5043_s5 }
 0x92e   : > { %s6660_s18 = scalar_lea.hbm %s6833_s2, %s4164_s28  ;;  %p5041_p3 = pneg %p5040_p2 }
 0x92f   : > { %s5044_s28 = scalar_lea.vmem %s5043_s5, 2560 }
 0x930   : > { %p5046_p10 = scmp.lt.s32.totalorder %s5044_s28, %s5038_s4 }
 0x932   : > { %p5047_p11 = por %p5046_p10, %p5045_p6 }
 0x934   : > { %p5048_p8 = pnand %p5047_p11, %p5041_p3 }
 0x937   : > { %v3584_v40 = vpop.xlane.xlu1 %3583 }
 0x93b   : > { %v3590_v44 = vpop.xlane.xlu1 %3589 }
 0x93d   : > { %v3637_v19 = vpop.xlane.xlu0 %3636 }
 0x93e   : > { %v3638_v36 = vrot.slane %v3637_v19, 4 }
 0x93f   : > { %v3596_v17 = vpop.xlane.xlu1 %3595 }
 0x940   : > { %v3639_v29 = vadd.f32 %v3638_v36, %v3637_v19 }
 0x941   : > { %v3344_v39 = vpop.permute.xlu0 %3343 }
 0x942   : > { %v3373_v61 = vsel %vm3371_vm1, %v6409_v45, %v3344_v39  ;;  %v3640_v18 = vrot.slane %v3639_v29, 2 }
 0x943   : > { %v3384_v42 = vsel %vm3382_vm2, %v3373_v61, 0.0  ;;  %v3602_v32 = vpop.xlane.xlu1 %3601 }
 0x944   : > { %3394 = vst [vmem:[%s6564_s26 + $0x8] sm:$0xff] %v3384_v42  ;;  %v3641_v48 = vadd.f32 %v3640_v18, %v3639_v29 }
 0x945   : > { %v3350_v55 = vpop.permute.xlu0 %3349 }
 0x946   : > { %v3376_v7 = vsel %vm3371_vm1, %v6414_v63, %v3350_v55  ;;  %v3642_v30 = vrot.slane %v3641_v48, 1 }
 0x947   : > { %v3387_v28 = vsel %vm3382_vm2, %v3376_v7, 0.0  ;;  %v3360_v62 = vpop.permute.xlu1 %3359 }
 0x948   : > { %3397 = vst [vmem:[%s6564_s26 + $0x20] sm:$0xff] %v3387_v28  ;;  %v3381_v46 = vsel %vm3371_vm1, %v6473_v59, %v3360_v62 }
 0x949   : > { %v3354_v56 = vpop.permute.xlu0 %3353  ;;  %v3392_v45 = vsel %vm3382_vm2, %v3381_v46, 0.0 }
 0x94a   : > { %v3378_v53 = vsel %vm3371_vm1, %v6437_v5, %v3354_v56  ;;  %3402 = vst [vmem:[%s6564_s26 + $0x48] sm:$0xff] %v3392_v45 }
 0x94b   : > { %v3389_v21 = vsel %vm3382_vm2, %v3378_v53, 0.0 }
 0x94c   : > { %3399 = vst [vmem:[%s6564_s26 + $0x30] sm:$0xff] %v3389_v21 }
 0x97a   : > { %v3578_v50 = vpop.xlane.xlu0 %3577 }
 0x97b   : > { %v3603_v63 = vadd.f32 %v3578_v50, %v3575_v14 }
 0x97e   : > { %v3581_v16 = vpop.xlane.xlu0 %3580 }
 0x97f   : > { %v3604_v22 = vadd.f32 %v3603_v63, %v3581_v16 }
 0x981   : > { %v3605_v12 = vadd.f32 %v3604_v22, %v3584_v40 }
 0x982   : > { %v3587_v31 = vpop.xlane.xlu0 %3586 }
 0x983   : > { %v3606_v59 = vadd.f32 %v3605_v12, %v3587_v31 }
 0x985   : > { %v3607_v60 = vadd.f32 %v3606_v59, %v3590_v44 }
 0x986   : > { %v3593_v5 = vpop.xlane.xlu0 %3592 }
 0x987   : > { %v3608_v57 = vadd.f32 %v3607_v60, %v3593_v5 }
 0x989   : > { %v3609_v15 = vadd.f32 %v3608_v57, %v3596_v17 }
 0x98a   : > { %v3599_v35 = vpop.xlane.xlu0 %3598 }
 0x98b   : > { %v3610_v1 = vadd.f32 %v3609_v15, %v3599_v35 }
 0x98d   : > { %v3611_v11 = vadd.f32 %v3610_v1, %v3602_v32 }
 0x98e   : > { %v3358_v43 = vpop.permute.xlu0 %3357 }
 0x98f   : > { %v3612_v8 = vrot.slane %v3611_v11, 4  ;;  %v3380_v54 = vsel %vm3371_vm1, %v6461_v13, %v3358_v43 }
 0x990   : > { %v3391_v51 = vsel %vm3382_vm2, %v3380_v54, 0.0 }
 0x991   : > { %v3613_v0 = vadd.f32 %v3612_v8, %v3611_v11  ;;  %3401 = vst [vmem:[%s6564_s26 + $0x40] sm:$0xff] %v3391_v51 }
 0x992   : > { %5051 = shalt.err (!%p5048_p8)
}
 0x993   : > { %s5052_s26 = scalar_lea.hbm %s6660_s18, 1280  ;;  %s5056_s25 = scalar_lea.hbm %s6833_s2, 2560 }
 0x994   : > { %p5053_p5 = scmp.ne.s32.totalorder %s6660_s18, %s5052_s26  ;;  %p5057_p4 = scmp.lt.u32.totalorder %s6660_s18, %s6833_s2 }
 0x995   : > { %p5058_p1 = scmp.lt.u32.totalorder %s5056_s25, %s5052_s26  ;;  %p5060_p0 = scmp.lt.u32.totalorder %s5052_s26, %s6660_s18 }
 0x996   : > { %p5054_p9 = pnand %p5053_p5, %p6832_p12 }
 0x997   : > { %p5059_p13 = por %p5058_p1, %p5057_p4 }
 0x998   : > { %p5055_p7 = pneg %p5054_p9 }
 0x999   : > { %p5061_p2 = por %p5060_p0, %p5059_p13 }
 0x99b   : > { %p5062_p3 = pnand %p5061_p2, %p5055_p7 }
 0x99d   : > { %5065 = shalt.err (!%p5062_p3)
}
 0x99e   : > { %s5170_s4 = smov 128   ;;  %s5171_s28 = smov 8   ;;  %v3614_v13 = vrot.slane %v3613_v0, 2  ;;  %v3643_v49 = vadd.f32 %v3642_v30, %v3641_v48  ;;  %vm3645_vm0 = vcmp.eq.s32.totalorder %v5555_v20, 1  ;;  %vm3644_vm6 = vcmp.eq.s32.totalorder %v5555_v20, 0  ;;  %v6834_v26 = vld [vmem:[#allocation23_spill] sm:$0xff] }
 0x99f   : > { %4409 = dma.vmem_to_hbm [thread:$0]  (%p6832_p12), %s6662_s17, 1280, %s6660_s18, %s6668_s15, %s5170_s4, %s5170_s4, %s5171_s28   ;;  %vm3648_vm3 = vcmp.eq.s32.totalorder %v6834_v26, 0 }
 0x9a0   : > { %v3615_v41 = vadd.f32 %v3614_v13, %v3613_v0  ;;  %s639_s26 = scalar_lea.vmem [#allocation16], %s5491_s30  ;;  %v3646_v4 = vsel %vm3645_vm0, %v3643_v49, 0.0  ;;  %s6835_s16 = sld [smem:[#allocation38_spill]] }
 0x9a1   : > { %s3704_s3 = sshll.u32 %s639_s26, 4  ;;  %s5172_s18 = smov [#allocation16]   ;;  %s6703_s3 = int_to_ptr.vmem [resolvable:$true] %s3704_s3 }
 0x9a2   : > { %v3616_v52 = vrot.slane %v3615_v41, 1  ;;  %s5066_s30 = scalar_lea.vmem %s6703_s3, 128  ;;  %s5070_s27 = sshll.u32 %s5172_s18, 4  ;;  %s5071_s27 = int_to_ptr.vmem [resolvable:$false] %s5070_s27 }
 0x9a3   : > { %p5067_p6 = scmp.ne.s32.totalorder %s6703_s3, %s5066_s30  ;;  %s5072_s5 = scalar_lea.vmem %s5071_s27, 256 }
 0x9a4   : > { %v3617_v38 = vadd.f32 %v3616_v52, %v3615_v41  ;;  %p5073_p8 = scmp.lt.s32.totalorder %s6703_s3, %s5071_s27  ;;  %p5074_p5 = scmp.lt.s32.totalorder %s5072_s5, %s5066_s30 }
 0x9a5   : > { %p5068_p10 = pnand %p5067_p6, %p6832_p12 }
 0x9a6   : > { %s6701_s17 = scalar_lea.hbm %s6835_s16, %s4159_s0  ;;  %v3647_v25 = vsel %vm3644_vm6, %v3617_v38, %v3646_v4  ;;  %p5075_p9 = por %p5074_p5, %p5073_p8 }
 0x9a7   : > { %v3649_v24 = vsel %vm3648_vm3, %v3647_v25, 0.0  ;;  %p5069_p11 = pneg %p5068_p10 }
 0x9a8   : > { %3650 = vst [vmem:[%s639_s26] sm:$0xff] %v3649_v24 }
 0x9a9   : > { %p5076_p7 = pnand %p5075_p9, %p5069_p11 }
 0x9ab   : > { %5079 = shalt.err (!%p5076_p7)
}
 0x9ac   : > { %s5080_s0 = scalar_lea.hbm %s6701_s17, 128  ;;  %s5084_s26 = scalar_lea.hbm %s6835_s16, 256 }
 0x9ad   : > { %p5081_p4 = scmp.ne.s32.totalorder %s6701_s17, %s5080_s0  ;;  %p5085_p0 = scmp.lt.u32.totalorder %s6701_s17, %s6835_s16 }
 0x9ae   : > { %p5086_p2 = scmp.lt.u32.totalorder %s5084_s26, %s5080_s0  ;;  %p5088_p6 = scmp.lt.u32.totalorder %s5080_s0, %s6701_s17 }
 0x9af   : > { %p5082_p1 = pnand %p5081_p4, %p6832_p12 }
 0x9b0   : > { %p5087_p3 = por %p5086_p2, %p5085_p0 }
 0x9b1   : > { %p5083_p13 = pneg %p5082_p1 }
 0x9b2   : > { %p5089_p10 = por %p5088_p6, %p5087_p3 }
 0x9b4   : > { %p5090_p11 = pnand %p5089_p10, %p5083_p13 }
 0x9b6   : > { %5093 = shalt.err (!%p5090_p11)
}
 0x9b7   : > { %4410 = dma.vmem_to_hbm [thread:$0]  (%p6832_p12), %s6703_s3, 128, %s6701_s17, %s6668_s15  }
 0x9b8 PF: > { %s3716_s30 = sand.u32 1, %s5136_s21   ;;  %p6836_p8 = scmp.ne.s32.totalorder %s6800_s19, 0 }
 0x9b9   : > { %p6837_p5 = scmp.ge.s32.totalorder %s5148_s24, 2  ;;  %s3717_s18 = scalar_lea.sflag [#allocation4], %s3716_s30 }
 0x9bb   : > { %p4435_p9 = pnand %p6837_p5, %p6836_p8 }
 0x9bd   : > { %5127 = dma.done.wait (!%p4435_p9), %s3717_s18, 128  }
 0x9be   : > { %5129 = vsyncadd (!%p4435_p9), %s3717_s18, 4294967168  ;;  %s6838_s27 = sadd.s32 4294967294, %s5148_s24  }
 0x9bf   : > { %s3725_s5 = sand.u32 1, %s6838_s27  }
 0x9c0   : > { %s3726_s0 = scalar_lea.sflag [#allocation15], %s3725_s5 }
 0x9c1   : > { %5131 = dma.done.wait (!%p4435_p9), %s3726_s0, 1408  }
 0x9c2   : > { %5133 = vsyncadd (!%p4435_p9), %s3726_s0, 4294965888  ;;  %p36_p12 = scmp.ge.s32.totalorder %s5416_s29, 4   ;;  %s6839_s21 = smov %s5140_s22 }
 0x9c3   : > { %s6840_s22 = smov %s5144_s23  ;;  %s6841_s23 = smov %s5428_s11 }
 0x9c4   : > { %s6842_s24 = smov %s5416_s29  ;;  %38 = sbr.rel (!%p36_p12) target bundleno = 23 (0x17), region = 176 }
 0x9cb   :  { %3740 = vsyncpa [#allocation3], 1 }
 0x9cc   :  { %3742 = vsyncpa [#allocation3 + $0x1], 1 }
 0x9cd   :  { %3743 = vsyncpa [#allocation6], 1 }
 0x9ce   :  { %3744 = vsyncpa [#allocation9], 1 }
 0x9cf   :  { %3745 = vsyncpa [#allocation12], 1 }
 0x9d0   :  { %3746 = vsyncpa [#allocation4], 1 }
 0x9d1   :  { %3748 = vsyncpa [#allocation4 + $0x1], 1 }
 0x9d2   :  { %3749 = vsyncpa [#allocation15], 1 }
 0x9d3   :  { %3751 = vsyncpa [#allocation15 + $0x1], 1 }

</bundles_post_ra>
